<compile_context>
chip_gen: v5e
topology: v5e:2x2
jax: 0.10.0
libtpu: 0.0.40
codegen_flags: <defaults>
</compile_context>

<pallas_src>
import numpy as np
import jax
import jax.numpy as jnp
from jax import lax
from jax.experimental import pallas as pl
from jax.experimental.pallas import tpu as pltpu

# ----- static architecture constants (LeNet on 32x32x3, batch 2) -----
K = 5                                   # conv kernel size
N_BATCH = 2
H1, CIN1, COUT1 = 32, 3, 6
OH1 = H1 - K + 1                        # 28
PH1 = OH1 // 2                          # 14
H2, CIN2, COUT2 = PH1, COUT1, 16        # 14, 6, 16
OH2 = H2 - K + 1                        # 10
PH2 = OH2 // 2                          # 5
FC1_OUT, FC2_OUT, FC3_OUT = 120, 84, 2


# ----------------------------- fused Pallas kernel -----------------------------

def _lenet_fused_kernel(x_ref, t1_ref, r1_ref, b1_ref, p1r_ref, p1c_ref,
                        t2_ref, r2_ref, b2_ref, p2r_ref, p2c_ref,
                        ef_ref, g1_ref, fb1_ref, w2_ref, fb2_ref,
                        w3_ref, fb3_ref, out_ref):
    f32 = jnp.float32

    def mm(a, b):
        return jnp.dot(a, b, preferred_element_type=f32)

    x = x_ref[...]                                             # (N*32, 3*32)

    # ---- conv1 + bias + ReLU: sum over kernel-row ki of (row-shift sel) @ x @ Toeplitz(ki)
    acc = mm(mm(r1_ref[0], x), t1_ref[0])
    for ki in range(1, K):
        acc = acc + mm(mm(r1_ref[ki], x), t1_ref[ki])
    y1 = jnp.maximum(acc + b1_ref[...], 0.0)                   # (N*28, 6*28)

    # ---- pool1 (2x2 max): row/col 0/1-selection matmuls + elementwise max
    m1 = jnp.maximum(mm(p1r_ref[0], y1), mm(p1r_ref[1], y1))   # (N*14, 6*28)
    p1 = jnp.maximum(mm(m1, p1c_ref[0]), mm(m1, p1c_ref[1]))   # (N*14, 6*14)

    # ---- conv2 + bias + ReLU
    acc2 = mm(mm(r2_ref[0], p1), t2_ref[0])
    for ki in range(1, K):
        acc2 = acc2 + mm(mm(r2_ref[ki], p1), t2_ref[ki])
    y2 = jnp.maximum(acc2 + b2_ref[...], 0.0)                  # (N*10, 16*10)

    # ---- pool2
    m2 = jnp.maximum(mm(p2r_ref[0], y2), mm(p2r_ref[1], y2))   # (N*5, 16*10)
    p2 = jnp.maximum(mm(m2, p2c_ref[0]), mm(m2, p2c_ref[1]))   # (N*5, 16*5)

    # ---- flatten in torch (C,H,W) order fused with fc1 (per pooled-row selection + weights)
    h = mm(mm(ef_ref[0], p2), g1_ref[0])
    for ph in range(1, PH2):
        h = h + mm(mm(ef_ref[ph], p2), g1_ref[ph])
    h = jnp.maximum(h + fb1_ref[...], 0.0)                     # (N, 120)

    # ---- fc2 + ReLU, fc3
    h = jnp.maximum(mm(h, w2_ref[...]) + fb2_ref[...], 0.0)    # (N, 84)
    out_ref[...] = (mm(h, w3_ref[...]) + fb3_ref[...]).astype(out_ref.dtype)


# -------------------- one-time parameter rearrangement (numpy) --------------------

def prepare_inputs(params, n):
    w1 = np.asarray(params["conv1_w"], np.float32)   # (6, 3, 5, 5)
    b1 = np.asarray(params["conv1_b"], np.float32)
    w2 = np.asarray(params["conv2_w"], np.float32)   # (16, 6, 5, 5)
    b2 = np.asarray(params["conv2_b"], np.float32)
    fc1w = np.asarray(params["fc1_w"], np.float32)   # (120, 400)
    fc1b = np.asarray(params["fc1_b"], np.float32)
    fc2w = np.asarray(params["fc2_w"], np.float32)   # (84, 120)
    fc2b = np.asarray(params["fc2_b"], np.float32)
    fc3w = np.asarray(params["fc3_w"], np.float32)   # (2, 84)
    fc3b = np.asarray(params["fc3_b"], np.float32)

    def toeplitz(w, cin, cout, width, ow):
        # t[ki, ci*width + (o+kj), co*ow + o] = w[co, ci, ki, kj]   (1-D conv along W as matmul)
        t = np.zeros((K, cin * width, cout * ow), np.float32)
        o = np.arange(ow)
        for ki in range(K):
            for kj in range(K):
                for ci in range(cin):
                    for co in range(cout):
                        t[ki, ci * width + o + kj, co * ow + o] = w[co, ci, ki, kj]
        return t

    def row_shift_sel(oh, h):
        # r[ki, b*oh + o, b*h + o + ki] = 1   (selects input row oh+ki of image b)
        r = np.zeros((K, n * oh, n * h), np.float32)
        o = np.arange(oh)
        for ki in range(K):
            for b in range(n):
                r[ki, b * oh + o, b * h + o + ki] = 1.0
        return r

    def pool_row_sel(oh):
        ph = oh // 2
        p = np.zeros((2, n * ph, n * oh), np.float32)
        o = np.arange(ph)
        for dy in range(2):
            for b in range(n):
                p[dy, b * ph + o, b * oh + 2 * o + dy] = 1.0
        return p

    def pool_col_sel(ch, ow):
        pw = ow // 2
        s = np.zeros((2, ch * ow, ch * pw), np.float32)
        o = np.arange(pw)
        for dx in range(2):
            for c in range(ch):
                s[dx, c * ow + 2 * o + dx, c * pw + o] = 1.0
        return s

    # flatten (torch C,H,W order) folded into fc1 weights, decomposed over pooled row ph:
    #   g1[ph, co*5 + pw, j] = fc1_w[j, co*25 + ph*5 + pw]
    g1 = np.zeros((PH2, COUT2 * PH2, FC1_OUT), np.float32)
    for ph in range(PH2):
        for co in range(COUT2):
            for pw in range(PH2):
                g1[ph, co * PH2 + pw, :] = fc1w[:, co * PH2 * PH2 + ph * PH2 + pw]

    ef = np.zeros((PH2, n, n * PH2), np.float32)     # ef[ph, b, b*5 + ph] = 1
    for ph in range(PH2):
        for b in range(n):
            ef[ph, b, b * PH2 + ph] = 1.0

    prep = {
        "t1":  toeplitz(w1, CIN1, COUT1, H1, OH1),    # (5, 96, 168)
        "r1":  row_shift_sel(OH1, H1),                # (5, 56, 64)
        "b1":  np.repeat(b1, OH1)[None, :],           # (1, 168)
        "p1r": pool_row_sel(OH1),                     # (2, 28, 56)
        "p1c": pool_col_sel(COUT1, OH1),              # (2, 168, 84)
        "t2":  toeplitz(w2, CIN2, COUT2, H2, OH2),    # (5, 84, 160)
        "r2":  row_shift_sel(OH2, H2),                # (5, 20, 28)
        "b2":  np.repeat(b2, OH2)[None, :],           # (1, 160)
        "p2r": pool_row_sel(OH2),                     # (2, 10, 20)
        "p2c": pool_col_sel(COUT2, OH2),              # (2, 160, 80)
        "ef":  ef,                                    # (5, 2, 10)
        "g1":  g1,                                    # (5, 80, 120)
        "fb1": fc1b[None, :],                         # (1, 120)
        "w2t": fc2w.T.copy(),                         # (120, 84)
        "fb2": fc2b[None, :],                         # (1, 84)
        "w3t": fc3w.T.copy(),                         # (84, 2)
        "fb3": fc3b[None, :],                         # (1, 2)
    }
    return jax.tree_util.tree_map(jnp.asarray, prep)


# ------------------------------- forward wrapper -------------------------------

def net_forward(prep, x_nchw):
    n = x_nchw.shape[0]
    # NCHW -> rows (n, h), channel-major columns (c, w):  X[n*32+h, c*32+w] = x[n,c,h,w]
    x1 = jnp.transpose(x_nchw.astype(jnp.float32), (0, 2, 1, 3)).reshape(n * H1, CIN1 * H1)
    args = (x1, prep["t1"], prep["r1"], prep["b1"], prep["p1r"], prep["p1c"],
            prep["t2"], prep["r2"], prep["b2"], prep["p2r"], prep["p2c"],
            prep["ef"], prep["g1"], prep["fb1"], prep["w2t"], prep["fb2"],
            prep["w3t"], prep["fb3"])
    vmem = pltpu.MemorySpace.VMEM
    return pl.pallas_call(
        _lenet_fused_kernel,
        out_shape=jax.ShapeDtypeStruct((n, FC3_OUT), jnp.float32),
        in_specs=[pl.BlockSpec(memory_space=vmem) for _ in args],
        out_specs=pl.BlockSpec(memory_space=vmem),
    )(*args)


# -------------------------- init + pure-JAX reference --------------------------

def init_params(key):
    ks = jax.random.split(key, 10)

    def u(k, shape, fan_in):
        bound = 1.0 / jnp.sqrt(jnp.float32(fan_in))
        return jax.random.uniform(k, shape, jnp.float32, -bound, bound)

    return {
        "conv1_w": u(ks[0], (6, 3, 5, 5), 3 * 5 * 5),
        "conv1_b": u(ks[1], (6,), 3 * 5 * 5),
        "conv2_w": u(ks[2], (16, 6, 5, 5), 6 * 5 * 5),
        "conv2_b": u(ks[3], (16,), 6 * 5 * 5),
        "fc1_w":   u(ks[4], (120, 400), 400),
        "fc1_b":   u(ks[5], (120,), 400),
        "fc2_w":   u(ks[6], (84, 120), 120),
        "fc2_b":   u(ks[7], (84,), 120),
        "fc3_w":   u(ks[8], (2, 84), 84),
        "fc3_b":   u(ks[9], (2,), 84),
    }


def reference_forward(params, x_nchw):
    hi = lax.Precision.HIGHEST
    x = jnp.transpose(x_nchw, (0, 2, 3, 1)).astype(jnp.float32)   # NHWC

    def conv_relu(x, w, b):
        n, h, wd, c = x.shape
        oh, ow = h - K + 1, wd - K + 1
        cols = [x[:, i:i + oh, j:j + ow, :] for i in range(K) for j in range(K)]
        p = jnp.stack(cols, axis=3).reshape(n * oh * ow, K * K * c)
        wm = jnp.transpose(w, (2, 3, 1, 0)).reshape(K * K * c, w.shape[0])
        y = jnp.maximum(jnp.dot(p, wm, precision=hi) + b[None, :], 0.0)
        return y.reshape(n, oh, ow, w.shape[0])

    def pool(x):
        return jnp.maximum(jnp.maximum(x[:, 0::2, 0::2, :], x[:, 0::2, 1::2, :]),
                           jnp.maximum(x[:, 1::2, 0::2, :], x[:, 1::2, 1::2, :]))

    x = pool(conv_relu(x, params["conv1_w"], params["conv1_b"]))
    x = pool(conv_relu(x, params["conv2_w"], params["conv2_b"]))
    xf = jnp.transpose(x, (0, 3, 1, 2)).reshape(x.shape[0], -1)    # torch .view(-1, 400)
    h = jnp.maximum(jnp.dot(xf, params["fc1_w"].T, precision=hi) + params["fc1_b"], 0.0)
    h = jnp.maximum(jnp.dot(h, params["fc2_w"].T, precision=hi) + params["fc2_b"], 0.0)
    return jnp.dot(h, params["fc3_w"].T, precision=hi) + params["fc3_b"]


if __name__ == "__main__":
    key = jax.random.PRNGKey(0)
    pkey, xkey = jax.random.split(key)
    params = init_params(pkey)
    x = jax.random.normal(xkey, (N_BATCH, CIN1, H1, H1), dtype=jnp.float32)  # NCHW like PyTorch

    prep = prepare_inputs(params, N_BATCH)      # one-time weight rearrangement (no per-forward .T)
    fwd = jax.jit(net_forward)
    out = jax.block_until_ready(fwd(prep, x))
    assert out.shape == (N_BATCH, FC3_OUT) and out.dtype == jnp.float32

    ref = jax.block_until_ready(reference_forward(params, x))
    assert bool(jnp.allclose(out, ref, atol=1e-2, rtol=1e-2)), (out, ref)
    print("KERNEL_OK")
</pallas_src>

<mosaic_0001>
module attributes {stable_mosaic.version = 11 : i64} {
  func.func @_lenet_fused_kernel(%arg0: memref<64x96xf32, #tpu.memory_space<vmem>>, %arg1: memref<5x96x168xf32, #tpu.memory_space<vmem>>, %arg2: memref<5x56x64xf32, #tpu.memory_space<vmem>>, %arg3: memref<1x168xf32, #tpu.memory_space<vmem>>, %arg4: memref<2x28x56xf32, #tpu.memory_space<vmem>>, %arg5: memref<2x168x84xf32, #tpu.memory_space<vmem>>, %arg6: memref<5x84x160xf32, #tpu.memory_space<vmem>>, %arg7: memref<5x20x28xf32, #tpu.memory_space<vmem>>, %arg8: memref<1x160xf32, #tpu.memory_space<vmem>>, %arg9: memref<2x10x20xf32, #tpu.memory_space<vmem>>, %arg10: memref<2x160x80xf32, #tpu.memory_space<vmem>>, %arg11: memref<5x2x10xf32, #tpu.memory_space<vmem>>, %arg12: memref<5x80x120xf32, #tpu.memory_space<vmem>>, %arg13: memref<1x120xf32, #tpu.memory_space<vmem>>, %arg14: memref<120x84xf32, #tpu.memory_space<vmem>>, %arg15: memref<1x84xf32, #tpu.memory_space<vmem>>, %arg16: memref<84x2xf32, #tpu.memory_space<vmem>>, %arg17: memref<1x2xf32, #tpu.memory_space<vmem>>, %arg18: memref<2x2xf32, #tpu.memory_space<vmem>>) attributes {dimension_semantics = [], scalar_prefetch = 0 : i64, scratch_operands = 0 : i64, tpu.core_type = #tpu.core_type<tc>} {
    %c0 = arith.constant 0 : index
    %c0_0 = arith.constant 0 : index
    %0 = vector.load %arg0[%c0, %c0_0] : memref<64x96xf32, #tpu.memory_space<vmem>>, vector<64x96xf32>
    %c0_1 = arith.constant 0 : index
    %c0_2 = arith.constant 0 : index
    %c0_3 = arith.constant 0 : index
    %1 = vector.load %arg2[%c0_1, %c0_2, %c0_3] : memref<5x56x64xf32, #tpu.memory_space<vmem>>, vector<1x56x64xf32>
    %2 = vector.shape_cast %1 : vector<1x56x64xf32> to vector<56x64xf32>
    %cst = arith.constant dense<0.000000e+00> : vector<56x96xf32>
    %3 = tpu.matmul %2, %0, %cst {dimension_numbers = #tpu.dot_dimension_numbers<[1], [0], [0], [1], [0, 0, 1, 1], [], []>} : vector<56x64xf32>, vector<64x96xf32>, vector<56x96xf32> -> vector<56x96xf32>
    %c0_4 = arith.constant 0 : index
    %c0_5 = arith.constant 0 : index
    %c0_6 = arith.constant 0 : index
    %4 = vector.load %arg1[%c0_4, %c0_5, %c0_6] : memref<5x96x168xf32, #tpu.memory_space<vmem>>, vector<1x96x168xf32>
    %5 = vector.shape_cast %4 : vector<1x96x168xf32> to vector<96x168xf32>
    %cst_7 = arith.constant dense<0.000000e+00> : vector<56x168xf32>
    %6 = tpu.matmul %3, %5, %cst_7 {dimension_numbers = #tpu.dot_dimension_numbers<[1], [0], [0], [1], [0, 0, 1, 1], [], []>} : vector<56x96xf32>, vector<96x168xf32>, vector<56x168xf32> -> vector<56x168xf32>
    %c1 = arith.constant 1 : index
    %c0_8 = arith.constant 0 : index
    %c0_9 = arith.constant 0 : index
    %7 = vector.load %arg2[%c1, %c0_8, %c0_9] : memref<5x56x64xf32, #tpu.memory_space<vmem>>, vector<1x56x64xf32>
    %8 = vector.shape_cast %7 : vector<1x56x64xf32> to vector<56x64xf32>
    %cst_10 = arith.constant dense<0.000000e+00> : vector<56x96xf32>
    %9 = tpu.matmul %8, %0, %cst_10 {dimension_numbers = #tpu.dot_dimension_numbers<[1], [0], [0], [1], [0, 0, 1, 1], [], []>} : vector<56x64xf32>, vector<64x96xf32>, vector<56x96xf32> -> vector<56x96xf32>
    %c1_11 = arith.constant 1 : index
    %c0_12 = arith.constant 0 : index
    %c0_13 = arith.constant 0 : index
    %10 = vector.load %arg1[%c1_11, %c0_12, %c0_13] : memref<5x96x168xf32, #tpu.memory_space<vmem>>, vector<1x96x168xf32>
    %11 = vector.shape_cast %10 : vector<1x96x168xf32> to vector<96x168xf32>
    %cst_14 = arith.constant dense<0.000000e+00> : vector<56x168xf32>
    %12 = tpu.matmul %9, %11, %cst_14 {dimension_numbers = #tpu.dot_dimension_numbers<[1], [0], [0], [1], [0, 0, 1, 1], [], []>} : vector<56x96xf32>, vector<96x168xf32>, vector<56x168xf32> -> vector<56x168xf32>
    %13 = arith.addf %6, %12 : vector<56x168xf32>
    %c2 = arith.constant 2 : index
    %c0_15 = arith.constant 0 : index
    %c0_16 = arith.constant 0 : index
    %14 = vector.load %arg2[%c2, %c0_15, %c0_16] : memref<5x56x64xf32, #tpu.memory_space<vmem>>, vector<1x56x64xf32>
    %15 = vector.shape_cast %14 : vector<1x56x64xf32> to vector<56x64xf32>
    %cst_17 = arith.constant dense<0.000000e+00> : vector<56x96xf32>
    %16 = tpu.matmul %15, %0, %cst_17 {dimension_numbers = #tpu.dot_dimension_numbers<[1], [0], [0], [1], [0, 0, 1, 1], [], []>} : vector<56x64xf32>, vector<64x96xf32>, vector<56x96xf32> -> vector<56x96xf32>
    %c2_18 = arith.constant 2 : index
    %c0_19 = arith.constant 0 : index
    %c0_20 = arith.constant 0 : index
    %17 = vector.load %arg1[%c2_18, %c0_19, %c0_20] : memref<5x96x168xf32, #tpu.memory_space<vmem>>, vector<1x96x168xf32>
    %18 = vector.shape_cast %17 : vector<1x96x168xf32> to vector<96x168xf32>
    %cst_21 = arith.constant dense<0.000000e+00> : vector<56x168xf32>
    %19 = tpu.matmul %16, %18, %cst_21 {dimension_numbers = #tpu.dot_dimension_numbers<[1], [0], [0], [1], [0, 0, 1, 1], [], []>} : vector<56x96xf32>, vector<96x168xf32>, vector<56x168xf32> -> vector<56x168xf32>
    %20 = arith.addf %13, %19 : vector<56x168xf32>
    %c3 = arith.constant 3 : index
    %c0_22 = arith.constant 0 : index
    %c0_23 = arith.constant 0 : index
    %21 = vector.load %arg2[%c3, %c0_22, %c0_23] : memref<5x56x64xf32, #tpu.memory_space<vmem>>, vector<1x56x64xf32>
    %22 = vector.shape_cast %21 : vector<1x56x64xf32> to vector<56x64xf32>
    %cst_24 = arith.constant dense<0.000000e+00> : vector<56x96xf32>
    %23 = tpu.matmul %22, %0, %cst_24 {dimension_numbers = #tpu.dot_dimension_numbers<[1], [0], [0], [1], [0, 0, 1, 1], [], []>} : vector<56x64xf32>, vector<64x96xf32>, vector<56x96xf32> -> vector<56x96xf32>
    %c3_25 = arith.constant 3 : index
    %c0_26 = arith.constant 0 : index
    %c0_27 = arith.constant 0 : index
    %24 = vector.load %arg1[%c3_25, %c0_26, %c0_27] : memref<5x96x168xf32, #tpu.memory_space<vmem>>, vector<1x96x168xf32>
    %25 = vector.shape_cast %24 : vector<1x96x168xf32> to vector<96x168xf32>
    %cst_28 = arith.constant dense<0.000000e+00> : vector<56x168xf32>
    %26 = tpu.matmul %23, %25, %cst_28 {dimension_numbers = #tpu.dot_dimension_numbers<[1], [0], [0], [1], [0, 0, 1, 1], [], []>} : vector<56x96xf32>, vector<96x168xf32>, vector<56x168xf32> -> vector<56x168xf32>
    %27 = arith.addf %20, %26 : vector<56x168xf32>
    %c4 = arith.constant 4 : index
    %c0_29 = arith.constant 0 : index
    %c0_30 = arith.constant 0 : index
    %28 = vector.load %arg2[%c4, %c0_29, %c0_30] : memref<5x56x64xf32, #tpu.memory_space<vmem>>, vector<1x56x64xf32>
    %29 = vector.shape_cast %28 : vector<1x56x64xf32> to vector<56x64xf32>
    %cst_31 = arith.constant dense<0.000000e+00> : vector<56x96xf32>
    %30 = tpu.matmul %29, %0, %cst_31 {dimension_numbers = #tpu.dot_dimension_numbers<[1], [0], [0], [1], [0, 0, 1, 1], [], []>} : vector<56x64xf32>, vector<64x96xf32>, vector<56x96xf32> -> vector<56x96xf32>
    %c4_32 = arith.constant 4 : index
    %c0_33 = arith.constant 0 : index
    %c0_34 = arith.constant 0 : index
    %31 = vector.load %arg1[%c4_32, %c0_33, %c0_34] : memref<5x96x168xf32, #tpu.memory_space<vmem>>, vector<1x96x168xf32>
    %32 = vector.shape_cast %31 : vector<1x96x168xf32> to vector<96x168xf32>
    %cst_35 = arith.constant dense<0.000000e+00> : vector<56x168xf32>
    %33 = tpu.matmul %30, %32, %cst_35 {dimension_numbers = #tpu.dot_dimension_numbers<[1], [0], [0], [1], [0, 0, 1, 1], [], []>} : vector<56x96xf32>, vector<96x168xf32>, vector<56x168xf32> -> vector<56x168xf32>
    %34 = arith.addf %27, %33 : vector<56x168xf32>
    %c0_36 = arith.constant 0 : index
    %c0_37 = arith.constant 0 : index
    %35 = vector.load %arg3[%c0_36, %c0_37] : memref<1x168xf32, #tpu.memory_space<vmem>>, vector<1x168xf32>
    %36 = vector.broadcast %35 : vector<1x168xf32> to vector<56x168xf32>
    %37 = arith.addf %34, %36 : vector<56x168xf32>
    %cst_38 = arith.constant 0.000000e+00 : f32
    %38 = vector.broadcast %cst_38 : f32 to vector<56x168xf32>
    %39 = arith.maximumf %37, %38 : vector<56x168xf32>
    %c0_39 = arith.constant 0 : index
    %c0_40 = arith.constant 0 : index
    %c0_41 = arith.constant 0 : index
    %40 = vector.load %arg4[%c0_39, %c0_40, %c0_41] : memref<2x28x56xf32, #tpu.memory_space<vmem>>, vector<1x28x56xf32>
    %41 = vector.shape_cast %40 : vector<1x28x56xf32> to vector<28x56xf32>
    %cst_42 = arith.constant dense<0.000000e+00> : vector<28x168xf32>
    %42 = tpu.matmul %41, %39, %cst_42 {dimension_numbers = #tpu.dot_dimension_numbers<[1], [0], [0], [1], [0, 0, 1, 1], [], []>} : vector<28x56xf32>, vector<56x168xf32>, vector<28x168xf32> -> vector<28x168xf32>
    %c1_43 = arith.constant 1 : index
    %c0_44 = arith.constant 0 : index
    %c0_45 = arith.constant 0 : index
    %43 = vector.load %arg4[%c1_43, %c0_44, %c0_45] : memref<2x28x56xf32, #tpu.memory_space<vmem>>, vector<1x28x56xf32>
    %44 = vector.shape_cast %43 : vector<1x28x56xf32> to vector<28x56xf32>
    %cst_46 = arith.constant dense<0.000000e+00> : vector<28x168xf32>
    %45 = tpu.matmul %44, %39, %cst_46 {dimension_numbers = #tpu.dot_dimension_numbers<[1], [0], [0], [1], [0, 0, 1, 1], [], []>} : vector<28x56xf32>, vector<56x168xf32>, vector<28x168xf32> -> vector<28x168xf32>
    %46 = arith.maximumf %42, %45 : vector<28x168xf32>
    %c0_47 = arith.constant 0 : index
    %c0_48 = arith.constant 0 : index
    %c0_49 = arith.constant 0 : index
    %47 = vector.load %arg5[%c0_47, %c0_48, %c0_49] : memref<2x168x84xf32, #tpu.memory_space<vmem>>, vector<1x168x84xf32>
    %48 = vector.shape_cast %47 : vector<1x168x84xf32> to vector<168x84xf32>
    %cst_50 = arith.constant dense<0.000000e+00> : vector<28x84xf32>
    %49 = tpu.matmul %46, %48, %cst_50 {dimension_numbers = #tpu.dot_dimension_numbers<[1], [0], [0], [1], [0, 0, 1, 1], [], []>} : vector<28x168xf32>, vector<168x84xf32>, vector<28x84xf32> -> vector<28x84xf32>
    %c1_51 = arith.constant 1 : index
    %c0_52 = arith.constant 0 : index
    %c0_53 = arith.constant 0 : index
    %50 = vector.load %arg5[%c1_51, %c0_52, %c0_53] : memref<2x168x84xf32, #tpu.memory_space<vmem>>, vector<1x168x84xf32>
    %51 = vector.shape_cast %50 : vector<1x168x84xf32> to vector<168x84xf32>
    %cst_54 = arith.constant dense<0.000000e+00> : vector<28x84xf32>
    %52 = tpu.matmul %46, %51, %cst_54 {dimension_numbers = #tpu.dot_dimension_numbers<[1], [0], [0], [1], [0, 0, 1, 1], [], []>} : vector<28x168xf32>, vector<168x84xf32>, vector<28x84xf32> -> vector<28x84xf32>
    %53 = arith.maximumf %49, %52 : vector<28x84xf32>
    %c0_55 = arith.constant 0 : index
    %c0_56 = arith.constant 0 : index
    %c0_57 = arith.constant 0 : index
    %54 = vector.load %arg7[%c0_55, %c0_56, %c0_57] : memref<5x20x28xf32, #tpu.memory_space<vmem>>, vector<1x20x28xf32>
    %55 = vector.shape_cast %54 : vector<1x20x28xf32> to vector<20x28xf32>
    %cst_58 = arith.constant dense<0.000000e+00> : vector<20x84xf32>
    %56 = tpu.matmul %55, %53, %cst_58 {dimension_numbers = #tpu.dot_dimension_numbers<[1], [0], [0], [1], [0, 0, 1, 1], [], []>} : vector<20x28xf32>, vector<28x84xf32>, vector<20x84xf32> -> vector<20x84xf32>
    %c0_59 = arith.constant 0 : index
    %c0_60 = arith.constant 0 : index
    %c0_61 = arith.constant 0 : index
    %57 = vector.load %arg6[%c0_59, %c0_60, %c0_61] : memref<5x84x160xf32, #tpu.memory_space<vmem>>, vector<1x84x160xf32>
    %58 = vector.shape_cast %57 : vector<1x84x160xf32> to vector<84x160xf32>
    %cst_62 = arith.constant dense<0.000000e+00> : vector<20x160xf32>
    %59 = tpu.matmul %56, %58, %cst_62 {dimension_numbers = #tpu.dot_dimension_numbers<[1], [0], [0], [1], [0, 0, 1, 1], [], []>} : vector<20x84xf32>, vector<84x160xf32>, vector<20x160xf32> -> vector<20x160xf32>
    %c1_63 = arith.constant 1 : index
    %c0_64 = arith.constant 0 : index
    %c0_65 = arith.constant 0 : index
    %60 = vector.load %arg7[%c1_63, %c0_64, %c0_65] : memref<5x20x28xf32, #tpu.memory_space<vmem>>, vector<1x20x28xf32>
    %61 = vector.shape_cast %60 : vector<1x20x28xf32> to vector<20x28xf32>
    %cst_66 = arith.constant dense<0.000000e+00> : vector<20x84xf32>
    %62 = tpu.matmul %61, %53, %cst_66 {dimension_numbers = #tpu.dot_dimension_numbers<[1], [0], [0], [1], [0, 0, 1, 1], [], []>} : vector<20x28xf32>, vector<28x84xf32>, vector<20x84xf32> -> vector<20x84xf32>
    %c1_67 = arith.constant 1 : index
    %c0_68 = arith.constant 0 : index
    %c0_69 = arith.constant 0 : index
    %63 = vector.load %arg6[%c1_67, %c0_68, %c0_69] : memref<5x84x160xf32, #tpu.memory_space<vmem>>, vector<1x84x160xf32>
    %64 = vector.shape_cast %63 : vector<1x84x160xf32> to vector<84x160xf32>
    %cst_70 = arith.constant dense<0.000000e+00> : vector<20x160xf32>
    %65 = tpu.matmul %62, %64, %cst_70 {dimension_numbers = #tpu.dot_dimension_numbers<[1], [0], [0], [1], [0, 0, 1, 1], [], []>} : vector<20x84xf32>, vector<84x160xf32>, vector<20x160xf32> -> vector<20x160xf32>
    %66 = arith.addf %59, %65 : vector<20x160xf32>
    %c2_71 = arith.constant 2 : index
    %c0_72 = arith.constant 0 : index
    %c0_73 = arith.constant 0 : index
    %67 = vector.load %arg7[%c2_71, %c0_72, %c0_73] : memref<5x20x28xf32, #tpu.memory_space<vmem>>, vector<1x20x28xf32>
    %68 = vector.shape_cast %67 : vector<1x20x28xf32> to vector<20x28xf32>
    %cst_74 = arith.constant dense<0.000000e+00> : vector<20x84xf32>
    %69 = tpu.matmul %68, %53, %cst_74 {dimension_numbers = #tpu.dot_dimension_numbers<[1], [0], [0], [1], [0, 0, 1, 1], [], []>} : vector<20x28xf32>, vector<28x84xf32>, vector<20x84xf32> -> vector<20x84xf32>
    %c2_75 = arith.constant 2 : index
    %c0_76 = arith.constant 0 : index
    %c0_77 = arith.constant 0 : index
    %70 = vector.load %arg6[%c2_75, %c0_76, %c0_77] : memref<5x84x160xf32, #tpu.memory_space<vmem>>, vector<1x84x160xf32>
    %71 = vector.shape_cast %70 : vector<1x84x160xf32> to vector<84x160xf32>
    %cst_78 = arith.constant dense<0.000000e+00> : vector<20x160xf32>
    %72 = tpu.matmul %69, %71, %cst_78 {dimension_numbers = #tpu.dot_dimension_numbers<[1], [0], [0], [1], [0, 0, 1, 1], [], []>} : vector<20x84xf32>, vector<84x160xf32>, vector<20x160xf32> -> vector<20x160xf32>
    %73 = arith.addf %66, %72 : vector<20x160xf32>
    %c3_79 = arith.constant 3 : index
    %c0_80 = arith.constant 0 : index
    %c0_81 = arith.constant 0 : index
    %74 = vector.load %arg7[%c3_79, %c0_80, %c0_81] : memref<5x20x28xf32, #tpu.memory_space<vmem>>, vector<1x20x28xf32>
    %75 = vector.shape_cast %74 : vector<1x20x28xf32> to vector<20x28xf32>
    %cst_82 = arith.constant dense<0.000000e+00> : vector<20x84xf32>
    %76 = tpu.matmul %75, %53, %cst_82 {dimension_numbers = #tpu.dot_dimension_numbers<[1], [0], [0], [1], [0, 0, 1, 1], [], []>} : vector<20x28xf32>, vector<28x84xf32>, vector<20x84xf32> -> vector<20x84xf32>
    %c3_83 = arith.constant 3 : index
    %c0_84 = arith.constant 0 : index
    %c0_85 = arith.constant 0 : index
    %77 = vector.load %arg6[%c3_83, %c0_84, %c0_85] : memref<5x84x160xf32, #tpu.memory_space<vmem>>, vector<1x84x160xf32>
    %78 = vector.shape_cast %77 : vector<1x84x160xf32> to vector<84x160xf32>
    %cst_86 = arith.constant dense<0.000000e+00> : vector<20x160xf32>
    %79 = tpu.matmul %76, %78, %cst_86 {dimension_numbers = #tpu.dot_dimension_numbers<[1], [0], [0], [1], [0, 0, 1, 1], [], []>} : vector<20x84xf32>, vector<84x160xf32>, vector<20x160xf32> -> vector<20x160xf32>
    %80 = arith.addf %73, %79 : vector<20x160xf32>
    %c4_87 = arith.constant 4 : index
    %c0_88 = arith.constant 0 : index
    %c0_89 = arith.constant 0 : index
    %81 = vector.load %arg7[%c4_87, %c0_88, %c0_89] : memref<5x20x28xf32, #tpu.memory_space<vmem>>, vector<1x20x28xf32>
    %82 = vector.shape_cast %81 : vector<1x20x28xf32> to vector<20x28xf32>
    %cst_90 = arith.constant dense<0.000000e+00> : vector<20x84xf32>
    %83 = tpu.matmul %82, %53, %cst_90 {dimension_numbers = #tpu.dot_dimension_numbers<[1], [0], [0], [1], [0, 0, 1, 1], [], []>} : vector<20x28xf32>, vector<28x84xf32>, vector<20x84xf32> -> vector<20x84xf32>
    %c4_91 = arith.constant 4 : index
    %c0_92 = arith.constant 0 : index
    %c0_93 = arith.constant 0 : index
    %84 = vector.load %arg6[%c4_91, %c0_92, %c0_93] : memref<5x84x160xf32, #tpu.memory_space<vmem>>, vector<1x84x160xf32>
    %85 = vector.shape_cast %84 : vector<1x84x160xf32> to vector<84x160xf32>
    %cst_94 = arith.constant dense<0.000000e+00> : vector<20x160xf32>
    %86 = tpu.matmul %83, %85, %cst_94 {dimension_numbers = #tpu.dot_dimension_numbers<[1], [0], [0], [1], [0, 0, 1, 1], [], []>} : vector<20x84xf32>, vector<84x160xf32>, vector<20x160xf32> -> vector<20x160xf32>
    %87 = arith.addf %80, %86 : vector<20x160xf32>
    %c0_95 = arith.constant 0 : index
    %c0_96 = arith.constant 0 : index
    %88 = vector.load %arg8[%c0_95, %c0_96] : memref<1x160xf32, #tpu.memory_space<vmem>>, vector<1x160xf32>
    %89 = vector.broadcast %88 : vector<1x160xf32> to vector<20x160xf32>
    %90 = arith.addf %87, %89 : vector<20x160xf32>
    %cst_97 = arith.constant 0.000000e+00 : f32
    %91 = vector.broadcast %cst_97 : f32 to vector<20x160xf32>
    %92 = arith.maximumf %90, %91 : vector<20x160xf32>
    %c0_98 = arith.constant 0 : index
    %c0_99 = arith.constant 0 : index
    %c0_100 = arith.constant 0 : index
    %93 = vector.load %arg9[%c0_98, %c0_99, %c0_100] : memref<2x10x20xf32, #tpu.memory_space<vmem>>, vector<1x10x20xf32>
    %94 = vector.shape_cast %93 : vector<1x10x20xf32> to vector<10x20xf32>
    %cst_101 = arith.constant dense<0.000000e+00> : vector<10x160xf32>
    %95 = tpu.matmul %94, %92, %cst_101 {dimension_numbers = #tpu.dot_dimension_numbers<[1], [0], [0], [1], [0, 0, 1, 1], [], []>} : vector<10x20xf32>, vector<20x160xf32>, vector<10x160xf32> -> vector<10x160xf32>
    %c1_102 = arith.constant 1 : index
    %c0_103 = arith.constant 0 : index
    %c0_104 = arith.constant 0 : index
    %96 = vector.load %arg9[%c1_102, %c0_103, %c0_104] : memref<2x10x20xf32, #tpu.memory_space<vmem>>, vector<1x10x20xf32>
    %97 = vector.shape_cast %96 : vector<1x10x20xf32> to vector<10x20xf32>
    %cst_105 = arith.constant dense<0.000000e+00> : vector<10x160xf32>
    %98 = tpu.matmul %97, %92, %cst_105 {dimension_numbers = #tpu.dot_dimension_numbers<[1], [0], [0], [1], [0, 0, 1, 1], [], []>} : vector<10x20xf32>, vector<20x160xf32>, vector<10x160xf32> -> vector<10x160xf32>
    %99 = arith.maximumf %95, %98 : vector<10x160xf32>
    %c0_106 = arith.constant 0 : index
    %c0_107 = arith.constant 0 : index
    %c0_108 = arith.constant 0 : index
    %100 = vector.load %arg10[%c0_106, %c0_107, %c0_108] : memref<2x160x80xf32, #tpu.memory_space<vmem>>, vector<1x160x80xf32>
    %101 = vector.shape_cast %100 : vector<1x160x80xf32> to vector<160x80xf32>
    %cst_109 = arith.constant dense<0.000000e+00> : vector<10x80xf32>
    %102 = tpu.matmul %99, %101, %cst_109 {dimension_numbers = #tpu.dot_dimension_numbers<[1], [0], [0], [1], [0, 0, 1, 1], [], []>} : vector<10x160xf32>, vector<160x80xf32>, vector<10x80xf32> -> vector<10x80xf32>
    %c1_110 = arith.constant 1 : index
    %c0_111 = arith.constant 0 : index
    %c0_112 = arith.constant 0 : index
    %103 = vector.load %arg10[%c1_110, %c0_111, %c0_112] : memref<2x160x80xf32, #tpu.memory_space<vmem>>, vector<1x160x80xf32>
    %104 = vector.shape_cast %103 : vector<1x160x80xf32> to vector<160x80xf32>
    %cst_113 = arith.constant dense<0.000000e+00> : vector<10x80xf32>
    %105 = tpu.matmul %99, %104, %cst_113 {dimension_numbers = #tpu.dot_dimension_numbers<[1], [0], [0], [1], [0, 0, 1, 1], [], []>} : vector<10x160xf32>, vector<160x80xf32>, vector<10x80xf32> -> vector<10x80xf32>
    %106 = arith.maximumf %102, %105 : vector<10x80xf32>
    %c0_114 = arith.constant 0 : index
    %c0_115 = arith.constant 0 : index
    %c0_116 = arith.constant 0 : index
    %107 = vector.load %arg11[%c0_114, %c0_115, %c0_116] : memref<5x2x10xf32, #tpu.memory_space<vmem>>, vector<1x2x10xf32>
    %108 = vector.shape_cast %107 : vector<1x2x10xf32> to vector<2x10xf32>
    %cst_117 = arith.constant dense<0.000000e+00> : vector<2x80xf32>
    %109 = tpu.matmul %108, %106, %cst_117 {dimension_numbers = #tpu.dot_dimension_numbers<[1], [0], [0], [1], [0, 0, 1, 1], [], []>} : vector<2x10xf32>, vector<10x80xf32>, vector<2x80xf32> -> vector<2x80xf32>
    %c0_118 = arith.constant 0 : index
    %c0_119 = arith.constant 0 : index
    %c0_120 = arith.constant 0 : index
    %110 = vector.load %arg12[%c0_118, %c0_119, %c0_120] : memref<5x80x120xf32, #tpu.memory_space<vmem>>, vector<1x80x120xf32>
    %111 = vector.shape_cast %110 : vector<1x80x120xf32> to vector<80x120xf32>
    %cst_121 = arith.constant dense<0.000000e+00> : vector<2x120xf32>
    %112 = tpu.matmul %109, %111, %cst_121 {dimension_numbers = #tpu.dot_dimension_numbers<[1], [0], [0], [1], [0, 0, 1, 1], [], []>} : vector<2x80xf32>, vector<80x120xf32>, vector<2x120xf32> -> vector<2x120xf32>
    %c1_122 = arith.constant 1 : index
    %c0_123 = arith.constant 0 : index
    %c0_124 = arith.constant 0 : index
    %113 = vector.load %arg11[%c1_122, %c0_123, %c0_124] : memref<5x2x10xf32, #tpu.memory_space<vmem>>, vector<1x2x10xf32>
    %114 = vector.shape_cast %113 : vector<1x2x10xf32> to vector<2x10xf32>
    %cst_125 = arith.constant dense<0.000000e+00> : vector<2x80xf32>
    %115 = tpu.matmul %114, %106, %cst_125 {dimension_numbers = #tpu.dot_dimension_numbers<[1], [0], [0], [1], [0, 0, 1, 1], [], []>} : vector<2x10xf32>, vector<10x80xf32>, vector<2x80xf32> -> vector<2x80xf32>
    %c1_126 = arith.constant 1 : index
    %c0_127 = arith.constant 0 : index
    %c0_128 = arith.constant 0 : index
    %116 = vector.load %arg12[%c1_126, %c0_127, %c0_128] : memref<5x80x120xf32, #tpu.memory_space<vmem>>, vector<1x80x120xf32>
    %117 = vector.shape_cast %116 : vector<1x80x120xf32> to vector<80x120xf32>
    %cst_129 = arith.constant dense<0.000000e+00> : vector<2x120xf32>
    %118 = tpu.matmul %115, %117, %cst_129 {dimension_numbers = #tpu.dot_dimension_numbers<[1], [0], [0], [1], [0, 0, 1, 1], [], []>} : vector<2x80xf32>, vector<80x120xf32>, vector<2x120xf32> -> vector<2x120xf32>
    %119 = arith.addf %112, %118 : vector<2x120xf32>
    %c2_130 = arith.constant 2 : index
    %c0_131 = arith.constant 0 : index
    %c0_132 = arith.constant 0 : index
    %120 = vector.load %arg11[%c2_130, %c0_131, %c0_132] : memref<5x2x10xf32, #tpu.memory_space<vmem>>, vector<1x2x10xf32>
    %121 = vector.shape_cast %120 : vector<1x2x10xf32> to vector<2x10xf32>
    %cst_133 = arith.constant dense<0.000000e+00> : vector<2x80xf32>
    %122 = tpu.matmul %121, %106, %cst_133 {dimension_numbers = #tpu.dot_dimension_numbers<[1], [0], [0], [1], [0, 0, 1, 1], [], []>} : vector<2x10xf32>, vector<10x80xf32>, vector<2x80xf32> -> vector<2x80xf32>
    %c2_134 = arith.constant 2 : index
    %c0_135 = arith.constant 0 : index
    %c0_136 = arith.constant 0 : index
    %123 = vector.load %arg12[%c2_134, %c0_135, %c0_136] : memref<5x80x120xf32, #tpu.memory_space<vmem>>, vector<1x80x120xf32>
    %124 = vector.shape_cast %123 : vector<1x80x120xf32> to vector<80x120xf32>
    %cst_137 = arith.constant dense<0.000000e+00> : vector<2x120xf32>
    %125 = tpu.matmul %122, %124, %cst_137 {dimension_numbers = #tpu.dot_dimension_numbers<[1], [0], [0], [1], [0, 0, 1, 1], [], []>} : vector<2x80xf32>, vector<80x120xf32>, vector<2x120xf32> -> vector<2x120xf32>
    %126 = arith.addf %119, %125 : vector<2x120xf32>
    %c3_138 = arith.constant 3 : index
    %c0_139 = arith.constant 0 : index
    %c0_140 = arith.constant 0 : index
    %127 = vector.load %arg11[%c3_138, %c0_139, %c0_140] : memref<5x2x10xf32, #tpu.memory_space<vmem>>, vector<1x2x10xf32>
    %128 = vector.shape_cast %127 : vector<1x2x10xf32> to vector<2x10xf32>
    %cst_141 = arith.constant dense<0.000000e+00> : vector<2x80xf32>
    %129 = tpu.matmul %128, %106, %cst_141 {dimension_numbers = #tpu.dot_dimension_numbers<[1], [0], [0], [1], [0, 0, 1, 1], [], []>} : vector<2x10xf32>, vector<10x80xf32>, vector<2x80xf32> -> vector<2x80xf32>
    %c3_142 = arith.constant 3 : index
    %c0_143 = arith.constant 0 : index
    %c0_144 = arith.constant 0 : index
    %130 = vector.load %arg12[%c3_142, %c0_143, %c0_144] : memref<5x80x120xf32, #tpu.memory_space<vmem>>, vector<1x80x120xf32>
    %131 = vector.shape_cast %130 : vector<1x80x120xf32> to vector<80x120xf32>
    %cst_145 = arith.constant dense<0.000000e+00> : vector<2x120xf32>
    %132 = tpu.matmul %129, %131, %cst_145 {dimension_numbers = #tpu.dot_dimension_numbers<[1], [0], [0], [1], [0, 0, 1, 1], [], []>} : vector<2x80xf32>, vector<80x120xf32>, vector<2x120xf32> -> vector<2x120xf32>
    %133 = arith.addf %126, %132 : vector<2x120xf32>
    %c4_146 = arith.constant 4 : index
    %c0_147 = arith.constant 0 : index
    %c0_148 = arith.constant 0 : index
    %134 = vector.load %arg11[%c4_146, %c0_147, %c0_148] : memref<5x2x10xf32, #tpu.memory_space<vmem>>, vector<1x2x10xf32>
    %135 = vector.shape_cast %134 : vector<1x2x10xf32> to vector<2x10xf32>
    %cst_149 = arith.constant dense<0.000000e+00> : vector<2x80xf32>
    %136 = tpu.matmul %135, %106, %cst_149 {dimension_numbers = #tpu.dot_dimension_numbers<[1], [0], [0], [1], [0, 0, 1, 1], [], []>} : vector<2x10xf32>, vector<10x80xf32>, vector<2x80xf32> -> vector<2x80xf32>
    %c4_150 = arith.constant 4 : index
    %c0_151 = arith.constant 0 : index
    %c0_152 = arith.constant 0 : index
    %137 = vector.load %arg12[%c4_150, %c0_151, %c0_152] : memref<5x80x120xf32, #tpu.memory_space<vmem>>, vector<1x80x120xf32>
    %138 = vector.shape_cast %137 : vector<1x80x120xf32> to vector<80x120xf32>
    %cst_153 = arith.constant dense<0.000000e+00> : vector<2x120xf32>
    %139 = tpu.matmul %136, %138, %cst_153 {dimension_numbers = #tpu.dot_dimension_numbers<[1], [0], [0], [1], [0, 0, 1, 1], [], []>} : vector<2x80xf32>, vector<80x120xf32>, vector<2x120xf32> -> vector<2x120xf32>
    %140 = arith.addf %133, %139 : vector<2x120xf32>
    %c0_154 = arith.constant 0 : index
    %c0_155 = arith.constant 0 : index
    %141 = vector.load %arg13[%c0_154, %c0_155] : memref<1x120xf32, #tpu.memory_space<vmem>>, vector<1x120xf32>
    %142 = vector.broadcast %141 : vector<1x120xf32> to vector<2x120xf32>
    %143 = arith.addf %140, %142 : vector<2x120xf32>
    %cst_156 = arith.constant 0.000000e+00 : f32
    %144 = vector.broadcast %cst_156 : f32 to vector<2x120xf32>
    %145 = arith.maximumf %143, %144 : vector<2x120xf32>
    %c0_157 = arith.constant 0 : index
    %c0_158 = arith.constant 0 : index
    %146 = vector.load %arg14[%c0_157, %c0_158] : memref<120x84xf32, #tpu.memory_space<vmem>>, vector<120x84xf32>
    %cst_159 = arith.constant dense<0.000000e+00> : vector<2x84xf32>
    %147 = tpu.matmul %145, %146, %cst_159 {dimension_numbers = #tpu.dot_dimension_numbers<[1], [0], [0], [1], [0, 0, 1, 1], [], []>} : vector<2x120xf32>, vector<120x84xf32>, vector<2x84xf32> -> vector<2x84xf32>
    %c0_160 = arith.constant 0 : index
    %c0_161 = arith.constant 0 : index
    %148 = vector.load %arg15[%c0_160, %c0_161] : memref<1x84xf32, #tpu.memory_space<vmem>>, vector<1x84xf32>
    %149 = vector.broadcast %148 : vector<1x84xf32> to vector<2x84xf32>
    %150 = arith.addf %147, %149 : vector<2x84xf32>
    %cst_162 = arith.constant 0.000000e+00 : f32
    %151 = vector.broadcast %cst_162 : f32 to vector<2x84xf32>
    %152 = arith.maximumf %150, %151 : vector<2x84xf32>
    %c0_163 = arith.constant 0 : index
    %c0_164 = arith.constant 0 : index
    %153 = vector.load %arg16[%c0_163, %c0_164] : memref<84x2xf32, #tpu.memory_space<vmem>>, vector<84x2xf32>
    %cst_165 = arith.constant dense<0.000000e+00> : vector<2x2xf32>
    %154 = tpu.matmul %152, %153, %cst_165 {dimension_numbers = #tpu.dot_dimension_numbers<[1], [0], [0], [1], [0, 0, 1, 1], [], []>} : vector<2x84xf32>, vector<84x2xf32>, vector<2x2xf32> -> vector<2x2xf32>
    %c0_166 = arith.constant 0 : index
    %c0_167 = arith.constant 0 : index
    %155 = vector.load %arg17[%c0_166, %c0_167] : memref<1x2xf32, #tpu.memory_space<vmem>>, vector<1x2xf32>
    %156 = vector.broadcast %155 : vector<1x2xf32> to vector<2x2xf32>
    %157 = arith.addf %154, %156 : vector<2x2xf32>
    %c0_168 = arith.constant 0 : index
    %c0_169 = arith.constant 0 : index
    %158 = vector.load %arg18[%c0_168, %c0_169] : memref<2x2xf32, #tpu.memory_space<vmem>>, vector<2x2xf32>
    tpu.vector_store %arg18[%c0_168, %c0_169], %157 {strides = array<i32>} : memref<2x2xf32, #tpu.memory_space<vmem>>, vector<2x2xf32>,
    return
  }
}

</mosaic_0001>

<bundles_post_ra>
// kernel: net_forward.1
= control target key start
LH: loop header
LB: loop body
LE: loop exit
PB: predicated region body
PF: predicated region fallthrough
CT: control target
= control target key end

     0   :  { %s5327_s0 = inlined_call_operand.vmem [shape: f32[64,96], index: 0, kind: input, shape index: {}]   ;;  %s5328_s1 = inlined_call_operand.vmem [shape: f32[5,96,168], index: 1, kind: input, shape index: {}]   ;;  %s5329_s2 = inlined_call_operand.vmem [shape: f32[5,56,64], index: 2, kind: input, shape index: {}]   ;;  %s5330_s3 = inlined_call_operand.vmem [shape: f32[1,168], index: 3, kind: input, shape index: {}]   ;;  %s5331_s4 = inlined_call_operand.vmem [shape: f32[2,28,56], index: 4, kind: input, shape index: {}]   ;;  %s5332_s5 = inlined_call_operand.vmem [shape: f32[2,168,84], index: 5, kind: input, shape index: {}]   ;;  %s5333_s6 = inlined_call_operand.vmem [shape: f32[5,84,160], index: 6, kind: input, shape index: {}]   ;;  %s5334_s7 = inlined_call_operand.vmem [shape: f32[5,20,28], index: 7, kind: input, shape index: {}]   ;;  %s5335_s8 = inlined_call_operand.vmem [shape: f32[1,160], index: 8, kind: input, shape index: {}]   ;;  %s5336_s9 = inlined_call_operand.vmem [shape: f32[2,10,20], index: 9, kind: input, shape index: {}]   ;;  %s5337_s10 = inlined_call_operand.vmem [shape: f32[2,160,80], index: 10, kind: input, shape index: {}]   ;;  %s5338_s11 = inlined_call_operand.vmem [shape: f32[5,2,10], index: 11, kind: input, shape index: {}]   ;;  %s5339_s12 = inlined_call_operand.vmem [shape: f32[5,80,120], index: 12, kind: input, shape index: {}]   ;;  %s5340_s13 = inlined_call_operand.vmem [shape: f32[1,120], index: 13, kind: input, shape index: {}]   ;;  %s5341_s14 = inlined_call_operand.vmem [shape: f32[120,84], index: 14, kind: input, shape index: {}]   ;;  %s5342_s15 = inlined_call_operand.vmem [shape: f32[1,84], index: 15, kind: input, shape index: {}]   ;;  %s5343_s16 = inlined_call_operand.vmem [shape: f32[84,2], index: 16, kind: input, shape index: {}]   ;;  %s5344_s17 = inlined_call_operand.vmem [shape: f32[1,2], index: 17, kind: input, shape index: {}]   ;;  %s5345_s18 = inlined_call_operand.hbm [shape: f32[2,2], index: 18, kind: output, shape index: {}]  }
   0x1   :  { %5349 = sst [smem:[#allocation17_spill]] %s5327_s0 }
   0x2   :  { %5350 = sst [smem:[#allocation18_spill]] %s5328_s1 }
   0x3   :  { %5351 = sst [smem:[#allocation19_spill]] %s5329_s2 }
   0x4   :  { %s5352_s29 = sld [smem:[#allocation17_spill]] }
   0xa   :  { %v3448_v0 = vld [vmem:[%s5352_s29 + $0x38] sm:$0xff]  ;;  %v3453_v1 = vld [vmem:[%s5352_s29 + $0x30] sm:$0xff]  ;;  %v3460_v2 = vld [vmem:[%s5352_s29 + $0x28] sm:$0xff] }
   0xb   :  { %196 = vmatpush.msra.mxu1 %v3448_v0  ;;  %105 = vmatpush.msra.mxu0 %v3448_v0  ;;  %v3467_v3 = vld [vmem:[%s5352_s29 + $0x20] sm:$0xff]  ;;  %v3474_v4 = vld [vmem:[%s5352_s29 + $0x18] sm:$0xff] }
   0xd   :  { %197 = vmatpush.msra.mxu1 %v3453_v1  ;;  %106 = vmatpush.msra.mxu0 %v3453_v1 }
   0xf   :  { %198 = vmatpush.msra.mxu1 %v3460_v2  ;;  %107 = vmatpush.msra.mxu0 %v3460_v2 }
  0x10   :  { %23 = vsyncpa [#allocation3], 0  ;;  %v3481_v5 = vld [vmem:[%s5352_s29 + $0x10] sm:$0xff]  ;;  %v3488_v6 = vld [vmem:[%s5352_s29 + $0x8] sm:$0xff]  ;;  %vm75_vm0 = vcmask 523264   ;;  %s5353_s19 = sld [smem:[#allocation19_spill]] }
  0x11   :  { %199 = vmatpush.msra.mxu1 %v3467_v3  ;;  %108 = vmatpush.msra.mxu0 %v3467_v3  ;;  %v3495_v7 = vld [vmem:[%s5352_s29] sm:$0xff]  ;;  %s5354_s30 = sld [smem:[#allocation18_spill]]  ;;  %vm251_vm1 = vcmask 785408   ;;  %vm1093_vm2 = vcmask 457728   ;;  %vm1268_vm3 = vcmask 326656   ;;  %vm1436_vm4 = vcmask 1043456  }
  0x12   :  { %vm1426_vm5 = vcmask 228352   ;;  %vm1550_vm6 = vcmask 687104   ;;  %vm2110_vm7 = vcmask 162816   ;;  %vm2248_vm8 = vcmask 261120  }
  0x13   :  { %200 = vmatpush.msra.mxu1 %v3474_v4  ;;  %109 = vmatpush.msra.mxu0 %v3474_v4  ;;  %vm2375_vm9 = vcmask 1041408   ;;  %vm2371_vm10 = vcmask 80896   ;;  %vm2445_vm11 = vcmask 654336   ;;  %vm2697_vm12 = vcmask 982016  }
  0x14   :  { %vm2763_vm13 = vcmask 9216  }
  0x15   :  { %201 = vmatpush.msra.mxu1 %v3481_v5  ;;  %110 = vmatpush.msra.mxu0 %v3481_v5 }
  0x16   :  { %v2788_v8 = vld [vmem:[%s5353_s19 + $0x38] sm:$0xff]  ;;  %v68_v9 = vld [vmem:[%s5353_s19] sm:$0xff]  ;;  %v69_v11 = vld [vmem:[%s5353_s19 + $0x8] sm:$0xff] }
  0x17   :  { %202 = vmatpush.msra.mxu1 %v3488_v6  ;;  %111 = vmatpush.msra.mxu0 %v3488_v6  ;;  %v2789_v10 = vld [vmem:[%s5353_s19 + $0x40] sm:$0xff]  ;;  %v2790_v12 = vld [vmem:[%s5353_s19 + $0x48] sm:$0xff]  ;;  %v70_v13 = vld [vmem:[%s5353_s19 + $0x10] sm:$0xff] }
  0x18   :  { %v2824_v14 = vld [vmem:[%s5354_s30 + $0x170] sm:$0xff]  ;;  %v2825_v15 = vld [vmem:[%s5354_s30 + $0x178] sm:$0xff]  ;;  %v2822_v16 = vld [vmem:[%s5354_s30 + $0x160] sm:$0xff] }
  0x19   :  { %203 = vmatpush.msra.mxu1 %v3495_v7  ;;  %112 = vmatpush.msra.mxu0 %v3495_v7  ;;  %v2823_v17 = vld [vmem:[%s5354_s30 + $0x168] sm:$0xff]  ;;  %v2820_v18 = vld [vmem:[%s5354_s30 + $0x150] sm:$0xff]  ;;  %v2821_v19 = vld [vmem:[%s5354_s30 + $0x158] sm:$0xff] }
  0x1a   :  { %2795 = vmatmul.msk.f32.vlgmr.msra.gmra.mxu1 %vm75_vm0, %v2788_v8  ;;  %2781 = vmatmul.msk.f32.vlgmr.msra.gmra.mxu0 %vm75_vm0, %v68_v9  ;;  %v2818_v20 = vld [vmem:[%s5354_s30 + $0x140] sm:$0xff]  ;;  %v157_v21 = vld [vmem:[%s5354_s30 + $0xb0] sm:$0xff]  ;;  %v158_v22 = vld [vmem:[%s5354_s30 + $0xb8] sm:$0xff] }
  0x1b   :  { %277 = vmatpush.msra.mxu2 %v2824_v14  ;;  %315 = vmatpush.msra.mxu3 %v2825_v15  ;;  %v2819_v23 = vld [vmem:[%s5354_s30 + $0x148] sm:$0xff]  ;;  %v155_v24 = vld [vmem:[%s5354_s30 + $0xa0] sm:$0xff]  ;;  %v2791_v26 = vld [vmem:[%s5353_s19 + $0x50] sm:$0xff] }
  0x1c   :  { %374 = vmatpush.msrb.mxu0 %v157_v21  ;;  %412 = vmatpush.msrb.mxu1 %v158_v22  ;;  %v156_v25 = vld [vmem:[%s5354_s30 + $0xa8] sm:$0xff]  ;;  %v71_v27 = vld [vmem:[%s5353_s19 + $0x18] sm:$0xff]  ;;  %v2816_v28 = vld [vmem:[%s5354_s30 + $0x130] sm:$0xff] }
  0x1d   :  { %278 = vmatpush.msra.mxu2 %v2822_v16  ;;  %316 = vmatpush.msra.mxu3 %v2823_v17  ;;  %v2817_v29 = vld [vmem:[%s5354_s30 + $0x138] sm:$0xff]  ;;  %v153_v30 = vld [vmem:[%s5354_s30 + $0x90] sm:$0xff]  ;;  %v2814_v32 = vld [vmem:[%s5354_s30 + $0x120] sm:$0xff] }
  0x1e   :  { %375 = vmatpush.msrb.mxu0 %v155_v24  ;;  %413 = vmatpush.msrb.mxu1 %v156_v25  ;;  %v154_v31 = vld [vmem:[%s5354_s30 + $0x98] sm:$0xff]  ;;  %v2815_v33 = vld [vmem:[%s5354_s30 + $0x128] sm:$0xff]  ;;  %v151_v34 = vld [vmem:[%s5354_s30 + $0x80] sm:$0xff] }
  0x1f   :  { %279 = vmatpush.msra.mxu2 %v2820_v18  ;;  %317 = vmatpush.msra.mxu3 %v2821_v19  ;;  %v152_v35 = vld [vmem:[%s5354_s30 + $0x88] sm:$0xff]  ;;  %v2812_v36 = vld [vmem:[%s5354_s30 + $0x110] sm:$0xff]  ;;  %v2813_v37 = vld [vmem:[%s5354_s30 + $0x118] sm:$0xff] }
  0x20   :  { %376 = vmatpush.msrb.mxu0 %v153_v30  ;;  %414 = vmatpush.msrb.mxu1 %v154_v31  ;;  %v149_v38 = vld [vmem:[%s5354_s30 + $0x70] sm:$0xff]  ;;  %v150_v39 = vld [vmem:[%s5354_s30 + $0x78] sm:$0xff]  ;;  %v2810_v40 = vld [vmem:[%s5354_s30 + $0x100] sm:$0xff] }
  0x21   :  { %280 = vmatpush.msra.mxu2 %v2818_v20  ;;  %318 = vmatpush.msra.mxu3 %v2819_v23  ;;  %v2811_v41 = vld [vmem:[%s5354_s30 + $0x108] sm:$0xff]  ;;  %v2792_v42 = vld [vmem:[%s5353_s19 + $0x58] sm:$0xff]  ;;  %v72_v43 = vld [vmem:[%s5353_s19 + $0x20] sm:$0xff] }
  0x22   :  { %2796 = vmatmul.msk.f32.gmra.mxu1 %vm75_vm0, %v2789_v10  ;;  %2782 = vmatmul.msk.f32.gmra.mxu0 %vm75_vm0, %v69_v11  ;;  %v2808_v44 = vld [vmem:[%s5354_s30 + $0xf0] sm:$0xff]  ;;  %v2809_v45 = vld [vmem:[%s5354_s30 + $0xf8] sm:$0xff]  ;;  %v147_v46 = vld [vmem:[%s5354_s30 + $0x60] sm:$0xff] }
  0x23   :  { %281 = vmatpush.msra.mxu2 %v2816_v28  ;;  %319 = vmatpush.msra.mxu3 %v2817_v29  ;;  %v148_v47 = vld [vmem:[%s5354_s30 + $0x68] sm:$0xff]  ;;  %v2806_v48 = vld [vmem:[%s5354_s30 + $0xe0] sm:$0xff]  ;;  %v145_v50 = vld [vmem:[%s5354_s30 + $0x50] sm:$0xff] }
  0x24   :  { %377 = vmatpush.msrb.mxu0 %v151_v34  ;;  %415 = vmatpush.msrb.mxu1 %v152_v35  ;;  %v2807_v49 = vld [vmem:[%s5354_s30 + $0xe8] sm:$0xff]  ;;  %v146_v51 = vld [vmem:[%s5354_s30 + $0x58] sm:$0xff]  ;;  %v2804_v52 = vld [vmem:[%s5354_s30 + $0xd0] sm:$0xff] }
  0x25   :  { %282 = vmatpush.msra.mxu2 %v2814_v32  ;;  %320 = vmatpush.msra.mxu3 %v2815_v33  ;;  %v2805_v53 = vld [vmem:[%s5354_s30 + $0xd8] sm:$0xff]  ;;  %v143_v54 = vld [vmem:[%s5354_s30 + $0x40] sm:$0xff]  ;;  %v144_v55 = vld [vmem:[%s5354_s30 + $0x48] sm:$0xff] }
  0x26   :  { %378 = vmatpush.msrb.mxu0 %v149_v38  ;;  %416 = vmatpush.msrb.mxu1 %v150_v39  ;;  %v2793_v56 = vld [vmem:[%s5353_s19 + $0x60] sm:$0xff]  ;;  %v73_v57 = vld [vmem:[%s5353_s19 + $0x28] sm:$0xff]  ;;  %v74_v59 = vld [vmem:[%s5353_s19 + $0x30] sm:$0xff] }
  0x27   :  { %283 = vmatpush.msra.mxu2 %v2812_v36  ;;  %321 = vmatpush.msra.mxu3 %v2813_v37  ;;  %v2794_v58 = vld [vmem:[%s5353_s19 + $0x68] sm:$0xff]  ;;  %v2802_v60 = vld [vmem:[%s5354_s30 + $0xc0] sm:$0xff]  ;;  %v141_v62 = vld [vmem:[%s5354_s30 + $0x30] sm:$0xff] }
  0x28   :  { %379 = vmatpush.msrb.mxu0 %v147_v46  ;;  %417 = vmatpush.msrb.mxu1 %v148_v47  ;;  %v2803_v61 = vld [vmem:[%s5354_s30 + $0xc8] sm:$0xff]  ;;  %v142_v63 = vld [vmem:[%s5354_s30 + $0x38] sm:$0xff]  ;;  %v139_v8 = vld [vmem:[%s5354_s30 + $0x20] sm:$0xff] }
  0x29   :  { %284 = vmatpush.msra.mxu2 %v2810_v40  ;;  %322 = vmatpush.msra.mxu3 %v2811_v41  ;;  %v140_v9 = vld [vmem:[%s5354_s30 + $0x28] sm:$0xff]  ;;  %v137_v10 = vld [vmem:[%s5354_s30 + $0x10] sm:$0xff]  ;;  %v138_v11 = vld [vmem:[%s5354_s30 + $0x18] sm:$0xff] }
  0x2a   :  { %2797 = vmatmul.msk.f32.gmra.mxu1 %vm75_vm0, %v2790_v12  ;;  %2783 = vmatmul.msk.f32.gmra.mxu0 %vm75_vm0, %v70_v13  ;;  %v135_v12 = vld [vmem:[%s5354_s30] sm:$0xff]  ;;  %v136_v13 = vld [vmem:[%s5354_s30 + $0x8] sm:$0xff]  ;;  %v2854_v28 = vld [vmem:[%s5353_s19 + $0x70] sm:$0xff] }
  0x2b   :  { %285 = vmatpush.msra.mxu2 %v2808_v44  ;;  %323 = vmatpush.msra.mxu3 %v2809_v45  ;;  %v2906_v29 = vld [vmem:[%s5353_s19 + $0xa8] sm:$0xff]  ;;  %v2855_v30 = vld [vmem:[%s5353_s19 + $0x78] sm:$0xff]  ;;  %v2907_v31 = vld [vmem:[%s5353_s19 + $0xb0] sm:$0xff] }
  0x2c   :  { %380 = vmatpush.msrb.mxu0 %v145_v50  ;;  %418 = vmatpush.msrb.mxu1 %v146_v51  ;;  %v2856_v32 = vld [vmem:[%s5353_s19 + $0x80] sm:$0xff]  ;;  %v2908_v33 = vld [vmem:[%s5353_s19 + $0xb8] sm:$0xff]  ;;  %v2857_v34 = vld [vmem:[%s5353_s19 + $0x88] sm:$0xff] }
  0x2d   :  { %286 = vmatpush.msra.mxu2 %v2806_v48  ;;  %324 = vmatpush.msra.mxu3 %v2807_v49  ;;  %v2909_v35 = vld [vmem:[%s5353_s19 + $0xc0] sm:$0xff]  ;;  %v2858_v36 = vld [vmem:[%s5353_s19 + $0x90] sm:$0xff]  ;;  %v2910_v37 = vld [vmem:[%s5353_s19 + $0xc8] sm:$0xff] }
  0x2e   :  { %381 = vmatpush.msrb.mxu0 %v143_v54  ;;  %419 = vmatpush.msrb.mxu1 %v144_v55  ;;  %v2859_v38 = vld [vmem:[%s5353_s19 + $0x98] sm:$0xff]  ;;  %v2911_v39 = vld [vmem:[%s5353_s19 + $0xd0] sm:$0xff]  ;;  %v2860_v40 = vld [vmem:[%s5353_s19 + $0xa0] sm:$0xff] }
  0x2f   :  { %287 = vmatpush.msra.mxu2 %v2804_v52  ;;  %325 = vmatpush.msra.mxu3 %v2805_v53  ;;  %v2912_v41 = vld [vmem:[%s5353_s19 + $0xd8] sm:$0xff]  ;;  %v2890_v44 = vld [vmem:[%s5354_s30 + $0x230] sm:$0xff]  ;;  %v2888_v46 = vld [vmem:[%s5354_s30 + $0x220] sm:$0xff] }
  0x30   :  { %382 = vmatpush.msrb.mxu0 %v141_v62  ;;  %420 = vmatpush.msrb.mxu1 %v142_v63  ;;  %v2891_v45 = vld [vmem:[%s5354_s30 + $0x238] sm:$0xff]  ;;  %v2889_v47 = vld [vmem:[%s5354_s30 + $0x228] sm:$0xff]  ;;  %v2942_v48 = vld [vmem:[%s5354_s30 + $0x2f0] sm:$0xff] }
  0x31   :  { %288 = vmatpush.msra.mxu2 %v2802_v60  ;;  %326 = vmatpush.msra.mxu3 %v2803_v61  ;;  %v2886_v50 = vld [vmem:[%s5354_s30 + $0x210] sm:$0xff]  ;;  %v2887_v51 = vld [vmem:[%s5354_s30 + $0x218] sm:$0xff]  ;;  %v2940_v52 = vld [vmem:[%s5354_s30 + $0x2e0] sm:$0xff] }
  0x32   :  { %2798 = vmatmul.msk.f32.gmra.mxu1 %vm75_vm0, %v2791_v26  ;;  %2784 = vmatmul.msk.f32.gmra.mxu0 %vm75_vm0, %v71_v27  ;;  %v2884_v53 = vld [vmem:[%s5354_s30 + $0x200] sm:$0xff]  ;;  %v2885_v54 = vld [vmem:[%s5354_s30 + $0x208] sm:$0xff]  ;;  %v2938_v55 = vld [vmem:[%s5354_s30 + $0x2d0] sm:$0xff] }
  0x33   :  { %483 = vmatpush.msrb.mxu2 %v3448_v0  ;;  %383 = vmatpush.msrb.mxu0 %v139_v8  ;;  %v2880_v60 = vld [vmem:[%s5354_s30 + $0x1e0] sm:$0xff]  ;;  %v2881_v61 = vld [vmem:[%s5354_s30 + $0x1e8] sm:$0xff]  ;;  %v2934_v62 = vld [vmem:[%s5354_s30 + $0x2b0] sm:$0xff] }
  0x34   :  { %421 = vmatpush.msrb.mxu1 %v140_v9  ;;  %563 = vmatpush.msrb.mxu3 %v2890_v44  ;;  %v2878_v8 = vld [vmem:[%s5354_s30 + $0x1d0] sm:$0xff]  ;;  %v2879_v9 = vld [vmem:[%s5354_s30 + $0x1d8] sm:$0xff] }
  0x35   :  { %484 = vmatpush.msrb.mxu2 %v3453_v1  ;;  %384 = vmatpush.msrb.mxu0 %v137_v10  ;;  %v2932_v10 = vld [vmem:[%s5354_s30 + $0x2a0] sm:$0xff]  ;;  %v2927_v44 = vld [vmem:[%s5354_s30 + $0x278] sm:$0xff] }
  0x36   :  { %422 = vmatpush.msrb.mxu1 %v138_v11  ;;  %564 = vmatpush.msrb.mxu3 %v2888_v46  ;;  %v2876_v11 = vld [vmem:[%s5354_s30 + $0x1c0] sm:$0xff] }
  0x37   :  { %485 = vmatpush.msrb.mxu2 %v3460_v2  ;;  %385 = vmatpush.msrb.mxu0 %v135_v12  ;;  %v2877_v12 = vld [vmem:[%s5354_s30 + $0x1c8] sm:$0xff] }
  0x38   :  { %423 = vmatpush.msrb.mxu1 %v136_v13  ;;  %565 = vmatpush.msrb.mxu3 %v2886_v50  ;;  %v2930_v13 = vld [vmem:[%s5354_s30 + $0x290] sm:$0xff] }
  0x39   :  { %486 = vmatpush.msrb.mxu2 %v3467_v3  ;;  %601 = vmatpush.msra.mxu0 %v2891_v45  ;;  %v2925_v45 = vld [vmem:[%s5354_s30 + $0x268] sm:$0xff] }
  0x3a   :  { %2799 = vmatmul.msk.f32.gmra.mxu1 %vm75_vm0, %v2792_v42  ;;  %2785 = vmatmul.msk.f32.gmra.mxu0 %vm75_vm0, %v72_v43 }
  0x3b   :  { %686 = vmatpush.msra.mxu1 %v3448_v0  ;;  %487 = vmatpush.msrb.mxu2 %v3474_v4 }
  0x3c   :  { %602 = vmatpush.msra.mxu0 %v2889_v47  ;;  %566 = vmatpush.msrb.mxu3 %v2884_v53  ;;  %v2923_v47 = vld [vmem:[%s5354_s30 + $0x258] sm:$0xff] }
  0x3d   :  { %687 = vmatpush.msra.mxu1 %v3453_v1  ;;  %488 = vmatpush.msrb.mxu2 %v3481_v5 }
  0x3e   :  { %603 = vmatpush.msra.mxu0 %v2887_v51 }
  0x3f   :  { %688 = vmatpush.msra.mxu1 %v3460_v2  ;;  %489 = vmatpush.msrb.mxu2 %v3488_v6 }
  0x40   :  { %604 = vmatpush.msra.mxu0 %v2885_v54 }
  0x41   :  { %689 = vmatpush.msra.mxu1 %v3467_v3  ;;  %490 = vmatpush.msrb.mxu2 %v3495_v7 }
  0x42   :  { %2800 = vmatmul.msk.f32.gmra.mxu1 %vm75_vm0, %v2793_v56  ;;  %2786 = vmatmul.msk.f32.gmra.mxu0 %vm75_vm0, %v73_v57  ;;  %v2882_v57 = vld [vmem:[%s5354_s30 + $0x1f0] sm:$0xff] }
  0x43   :  { %690 = vmatpush.msra.mxu1 %v3474_v4  ;;  %567 = vmatpush.msrb.mxu3 %v2882_v57 }
  0x45   :  { %691 = vmatpush.msra.mxu1 %v3481_v5  ;;  %568 = vmatpush.msrb.mxu3 %v2880_v60  ;;  %v2959_v60 = vld [vmem:[%s5353_s19 + $0xe8] sm:$0xff] }
  0x47   :  { %692 = vmatpush.msra.mxu1 %v3488_v6  ;;  %569 = vmatpush.msrb.mxu3 %v2878_v8 }
  0x49   :  { %693 = vmatpush.msra.mxu1 %v3495_v7  ;;  %570 = vmatpush.msrb.mxu3 %v2876_v11 }
  0x4a   :  { %2801 = vmatmul.msk.f32.gmra.mxu1 %vm75_vm0, %v2794_v58  ;;  %2787 = vmatmul.msk.f32.gmra.mxu0 %vm75_vm0, %v74_v59  ;;  %v2883_v58 = vld [vmem:[%s5354_s30 + $0x1f8] sm:$0xff]  ;;  %v2936_v59 = vld [vmem:[%s5354_s30 + $0x2c0] sm:$0xff] }
  0x4b   :  { %605 = vmatpush.msra.mxu0 %v2883_v58  ;;  %v2958_v58 = vld [vmem:[%s5353_s19 + $0xe0] sm:$0xff] }
  0x4d   :  { %606 = vmatpush.msra.mxu0 %v2881_v61 }
  0x4f   :  { %607 = vmatpush.msra.mxu0 %v2879_v9  ;;  %v2961_v9 = vld [vmem:[%s5353_s19 + $0xf8] sm:$0xff] }
  0x51   :  { %608 = vmatpush.msra.mxu0 %v2877_v12  ;;  %v2963_v12 = vld [vmem:[%s5353_s19 + $0x108] sm:$0xff] }
  0x97   :  { %v205_v14 = vpop.f32.mrf.mxu1  ;;  %v114_v15 = vpop.f32.mrf.mxu0 }
  0x98   :  { %2826 = vmatmul.msk.f32.vlgmr.msra.gmra.mxu2 %vm251_vm1, %v205_v14  ;;  %2833 = vmatmul.msk.f32.vlgmr.msra.gmra.mxu3 %vm251_vm1, %v205_v14 }
  0x99   :  { %2840 = vmatmul.msk.f32.vlgmr.msrb.gmra.mxu0 %vm251_vm1, %v114_v15  ;;  %2847 = vmatmul.msk.f32.vlgmr.msrb.gmra.mxu1 %vm251_vm1, %v114_v15  ;;  %v2874_v15 = vld [vmem:[%s5354_s30 + $0x1b0] sm:$0xff] }
  0x9a   :  { %766 = vmatpush.msra.mxu2 %v2942_v48  ;;  %571 = vmatpush.msrb.mxu3 %v2874_v15  ;;  %v2921_v48 = vld [vmem:[%s5354_s30 + $0x248] sm:$0xff]  ;;  %v2964_v15 = vld [vmem:[%s5353_s19 + $0x110] sm:$0xff] }
  0x9c   :  { %767 = vmatpush.msra.mxu2 %v2940_v52 }
  0x9e   :  { %768 = vmatpush.msra.mxu2 %v2938_v55 }
  0x9f   :  { %v208_v16 = vpop.f32.mrf.mxu1  ;;  %v117_v17 = vpop.f32.mrf.mxu0 }
  0xa0   :  { %2827 = vmatmul.msk.f32.gmra.mxu2 %vm251_vm1, %v208_v16  ;;  %2834 = vmatmul.msk.f32.gmra.mxu3 %vm251_vm1, %v208_v16  ;;  %v2875_v16 = vld [vmem:[%s5354_s30 + $0x1b8] sm:$0xff] }
  0xa1   :  { %2841 = vmatmul.msk.f32.gmra.mxu0 %vm251_vm1, %v117_v17  ;;  %2848 = vmatmul.msk.f32.gmra.mxu1 %vm251_vm1, %v117_v17  ;;  %v2928_v17 = vld [vmem:[%s5354_s30 + $0x280] sm:$0xff] }
  0xa2   :  { %769 = vmatpush.msra.mxu2 %v2936_v59  ;;  %609 = vmatpush.msra.mxu0 %v2875_v16 }
  0xa4   :  { %770 = vmatpush.msra.mxu2 %v2934_v62  ;;  %v2960_v62 = vld [vmem:[%s5353_s19 + $0xf0] sm:$0xff] }
  0xa6   :  { %771 = vmatpush.msra.mxu2 %v2932_v10  ;;  %v2962_v10 = vld [vmem:[%s5353_s19 + $0x100] sm:$0xff] }
  0xa7   :  { %v211_v18 = vpop.f32.mrf.mxu1  ;;  %v120_v19 = vpop.f32.mrf.mxu0 }
  0xa8   :  { %2828 = vmatmul.msk.f32.gmra.mxu2 %vm251_vm1, %v211_v18  ;;  %2835 = vmatmul.msk.f32.gmra.mxu3 %vm251_vm1, %v211_v18  ;;  %v2872_v18 = vld [vmem:[%s5354_s30 + $0x1a0] sm:$0xff] }
  0xa9   :  { %2842 = vmatmul.msk.f32.gmra.mxu0 %vm251_vm1, %v120_v19  ;;  %2849 = vmatmul.msk.f32.gmra.mxu1 %vm251_vm1, %v120_v19  ;;  %v2873_v19 = vld [vmem:[%s5354_s30 + $0x1a8] sm:$0xff] }
  0xaa   :  { %772 = vmatpush.msra.mxu2 %v2930_v13  ;;  %572 = vmatpush.msrb.mxu3 %v2872_v18 }
  0xab   :  { %610 = vmatpush.msra.mxu0 %v2873_v19  ;;  %v2994_v19 = vld [vmem:[%s5354_s30 + $0x3b0] sm:$0xff] }
  0xac   :  { %773 = vmatpush.msra.mxu2 %v2928_v17  ;;  %969 = vmatpush.msrb.mxu1 %v2994_v19 }
  0xaf   :  { %v214_v20 = vpop.f32.mrf.mxu1  ;;  %v123_v21 = vpop.f32.mrf.mxu0 }
  0xb0   :  { %2829 = vmatmul.msk.f32.gmra.mxu2 %vm251_vm1, %v214_v20  ;;  %2836 = vmatmul.msk.f32.gmra.mxu3 %vm251_vm1, %v214_v20  ;;  %v2926_v20 = vld [vmem:[%s5354_s30 + $0x270] sm:$0xff] }
  0xb1   :  { %2843 = vmatmul.msk.f32.gmra.mxu0 %vm251_vm1, %v123_v21  ;;  %2850 = vmatmul.msk.f32.gmra.mxu1 %vm251_vm1, %v123_v21 }
  0xb2   :  { %774 = vmatpush.msra.mxu2 %v2926_v20  ;;  %v2995_v20 = vld [vmem:[%s5354_s30 + $0x3b8] sm:$0xff] }
  0xb7   :  { %v217_v22 = vpop.f32.mrf.mxu1  ;;  %v126_v23 = vpop.f32.mrf.mxu0 }
  0xb8   :  { %2830 = vmatmul.msk.f32.gmra.mxu2 %vm251_vm1, %v217_v22  ;;  %2837 = vmatmul.msk.f32.gmra.mxu3 %vm251_vm1, %v217_v22  ;;  %v2870_v22 = vld [vmem:[%s5354_s30 + $0x190] sm:$0xff] }
  0xb9   :  { %2844 = vmatmul.msk.f32.gmra.mxu0 %vm251_vm1, %v126_v23  ;;  %2851 = vmatmul.msk.f32.gmra.mxu1 %vm251_vm1, %v126_v23  ;;  %v2871_v23 = vld [vmem:[%s5354_s30 + $0x198] sm:$0xff] }
  0xba   :  { %573 = vmatpush.msrb.mxu3 %v2870_v22  ;;  %611 = vmatpush.msra.mxu0 %v2871_v23  ;;  %v2992_v22 = vld [vmem:[%s5354_s30 + $0x3a0] sm:$0xff]  ;;  %v2993_v23 = vld [vmem:[%s5354_s30 + $0x3a8] sm:$0xff] }
  0xbb   :  { %970 = vmatpush.msrb.mxu1 %v2992_v22 }
  0xbf   :  { %v220_v24 = vpop.f32.mrf.mxu1  ;;  %v129_v25 = vpop.f32.mrf.mxu0 }
  0xc0   :  { %2831 = vmatmul.msk.f32.gmra.mxu2 %vm251_vm1, %v220_v24  ;;  %2838 = vmatmul.msk.f32.gmra.mxu3 %vm251_vm1, %v220_v24  ;;  %v2924_v24 = vld [vmem:[%s5354_s30 + $0x260] sm:$0xff] }
  0xc1   :  { %2845 = vmatmul.msk.f32.gmra.mxu0 %vm251_vm1, %v129_v25  ;;  %2852 = vmatmul.msk.f32.gmra.mxu1 %vm251_vm1, %v129_v25  ;;  %v2868_v25 = vld [vmem:[%s5354_s30 + $0x180] sm:$0xff] }
  0xc2   :  { %775 = vmatpush.msra.mxu2 %v2924_v24  ;;  %574 = vmatpush.msrb.mxu3 %v2868_v25  ;;  %v2990_v24 = vld [vmem:[%s5354_s30 + $0x390] sm:$0xff]  ;;  %v2991_v25 = vld [vmem:[%s5354_s30 + $0x398] sm:$0xff] }
  0xc3   :  { %971 = vmatpush.msrb.mxu1 %v2990_v24 }
  0xc7   :  { %v223_v26 = vpop.f32.mrf.mxu1  ;;  %v132_v27 = vpop.f32.mrf.mxu0 }
  0xc8   :  { %2832 = vmatmul.msk.f32.gmra.mxu2 %vm251_vm1, %v223_v26  ;;  %2839 = vmatmul.msk.f32.gmra.mxu3 %vm251_vm1, %v223_v26  ;;  %v2869_v26 = vld [vmem:[%s5354_s30 + $0x188] sm:$0xff] }
  0xc9   :  { %2846 = vmatmul.msk.f32.gmra.mxu0 %vm251_vm1, %v132_v27  ;;  %2853 = vmatmul.msk.f32.gmra.mxu1 %vm251_vm1, %v132_v27  ;;  %v2922_v27 = vld [vmem:[%s5354_s30 + $0x250] sm:$0xff] }
  0xca   :  { %612 = vmatpush.msra.mxu0 %v2869_v26  ;;  %776 = vmatpush.msra.mxu2 %v2922_v27  ;;  %v2988_v26 = vld [vmem:[%s5354_s30 + $0x380] sm:$0xff]  ;;  %v2989_v27 = vld [vmem:[%s5354_s30 + $0x388] sm:$0xff] }
  0xcb   :  { %972 = vmatpush.msrb.mxu1 %v2988_v26 }
  0xcc   :  { %889 = vmatpush.msrb.mxu0 %v3448_v0 }
  0xce   :  { %890 = vmatpush.msrb.mxu0 %v3453_v1 }
  0xd0   :  { %2861 = vmatmul.msk.f32.vlgmr.msrb.gmra.mxu2 %vm75_vm0, %v2854_v28  ;;  %891 = vmatpush.msrb.mxu0 %v3460_v2 }
  0xd1   :  { %2913 = vmatmul.msk.f32.vlgmr.msra.gmra.mxu1 %vm75_vm0, %v2906_v29  ;;  %v2920_v29 = vld [vmem:[%s5354_s30 + $0x240] sm:$0xff] }
  0xd2   :  { %777 = vmatpush.msra.mxu2 %v2920_v29  ;;  %892 = vmatpush.msrb.mxu0 %v3467_v3 }
  0xd4   :  { %893 = vmatpush.msrb.mxu0 %v3474_v4  ;;  %v2943_v4 = vld [vmem:[%s5354_s30 + $0x2f8] sm:$0xff]  ;;  %1007 = vmatpush.msrb.mxu2 %v2995_v20 }
  0xd5   :  { %804 = vmatpush.msra.mxu3 %v2943_v4  ;;  %v2984_v4 = vld [vmem:[%s5354_s30 + $0x360] sm:$0xff] }
  0xd6   :  { %894 = vmatpush.msrb.mxu0 %v3481_v5  ;;  %v2941_v5 = vld [vmem:[%s5354_s30 + $0x2e8] sm:$0xff]  ;;  %1008 = vmatpush.msrb.mxu2 %v2993_v23 }
  0xd7   :  { %805 = vmatpush.msra.mxu3 %v2941_v5  ;;  %v2985_v5 = vld [vmem:[%s5354_s30 + $0x368] sm:$0xff] }
  0xd8   :  { %2862 = vmatmul.msk.f32.gmra.mxu2 %vm75_vm0, %v2855_v30  ;;  %895 = vmatpush.msrb.mxu0 %v3488_v6 }
  0xd9   :  { %2914 = vmatmul.msk.f32.gmra.mxu1 %vm75_vm0, %v2907_v31  ;;  %1009 = vmatpush.msrb.mxu2 %v2991_v25 }
  0xda   :  { %896 = vmatpush.msrb.mxu0 %v3495_v7  ;;  %v2939_v7 = vld [vmem:[%s5354_s30 + $0x2d8] sm:$0xff] }
  0xdb   :  { %806 = vmatpush.msra.mxu3 %v2939_v7  ;;  %1010 = vmatpush.msrb.mxu2 %v2989_v27  ;;  %v2983_v7 = vld [vmem:[%s5354_s30 + $0x358] sm:$0xff] }
  0xe0   :  { %2863 = vmatmul.msk.f32.gmra.mxu2 %vm75_vm0, %v2856_v32 }
  0xe1   :  { %2915 = vmatmul.msk.f32.gmra.mxu1 %vm75_vm0, %v2908_v33 }
  0xe8   :  { %2864 = vmatmul.msk.f32.gmra.mxu2 %vm75_vm0, %v2857_v34  ;;  %v2937_v34 = vld [vmem:[%s5354_s30 + $0x2c8] sm:$0xff] }
  0xe9   :  { %2916 = vmatmul.msk.f32.gmra.mxu1 %vm75_vm0, %v2909_v35  ;;  %807 = vmatpush.msra.mxu3 %v2937_v34  ;;  %v2980_v34 = vld [vmem:[%s5354_s30 + $0x340] sm:$0xff] }
  0xf0   :  { %2865 = vmatmul.msk.f32.gmra.mxu2 %vm75_vm0, %v2858_v36  ;;  %v2935_v36 = vld [vmem:[%s5354_s30 + $0x2b8] sm:$0xff] }
  0xf1   :  { %2917 = vmatmul.msk.f32.gmra.mxu1 %vm75_vm0, %v2910_v37  ;;  %v2933_v37 = vld [vmem:[%s5354_s30 + $0x2a8] sm:$0xff]  ;;  %808 = vmatpush.msra.mxu3 %v2935_v36 }
  0xf3   :  { %809 = vmatpush.msra.mxu3 %v2933_v37  ;;  %v2978_v37 = vld [vmem:[%s5354_s30 + $0x330] sm:$0xff] }
  0xf8   :  { %2866 = vmatmul.msk.f32.gmra.mxu2 %vm75_vm0, %v2859_v38 }
  0xf9   :  { %2918 = vmatmul.msk.f32.gmra.mxu1 %vm75_vm0, %v2911_v39  ;;  %v2931_v39 = vld [vmem:[%s5354_s30 + $0x298] sm:$0xff] }
  0xfa   :  { %810 = vmatpush.msra.mxu3 %v2931_v39  ;;  %v2976_v39 = vld [vmem:[%s5354_s30 + $0x320] sm:$0xff] }
 0x100   :  { %2867 = vmatmul.msk.f32.gmra.mxu2 %vm75_vm0, %v2860_v40  ;;  %v2929_v40 = vld [vmem:[%s5354_s30 + $0x288] sm:$0xff] }
 0x101   :  { %2919 = vmatmul.msk.f32.gmra.mxu1 %vm75_vm0, %v2912_v41  ;;  %811 = vmatpush.msra.mxu3 %v2929_v40  ;;  %v2977_v40 = vld [vmem:[%s5354_s30 + $0x328] sm:$0xff] }
 0x103   :  { %812 = vmatpush.msra.mxu3 %v2927_v44  ;;  %v2975_v44 = vld [vmem:[%s5354_s30 + $0x318] sm:$0xff] }
 0x105   :  { %813 = vmatpush.msra.mxu3 %v2925_v45  ;;  %v2972_v45 = vld [vmem:[%s5354_s30 + $0x300] sm:$0xff] }
 0x107   :  { %814 = vmatpush.msra.mxu3 %v2923_v47 }
 0x109   :  { %815 = vmatpush.msra.mxu3 %v2921_v48 }
 0x116   :  { %v3801_v42 = vpop.f32.mrf.mxu1  ;;  %v4007_v59 = vpop.f32.mrf.mxu0 }
 0x11b   :  { %v3803_v43 = vpop.f32.mrf.mxu2 }
 0x11e   :  { %v3820_v49 = vpop.f32.mrf.mxu1  ;;  %v4014_v61 = vpop.f32.mrf.mxu0 }
 0x123   :  { %v3840_v56 = vpop.f32.mrf.mxu2 }
 0x126   :  { %v3860_v63 = vpop.f32.mrf.mxu1  ;;  %v4021_v8 = vpop.f32.mrf.mxu0 }
 0x12b   :  { %v3880_v14 = vpop.f32.mrf.mxu2 }
 0x12e   :  { %v3900_v21 = vpop.f32.mrf.mxu1  ;;  %v4031_v11 = vpop.f32.mrf.mxu0 }
 0x133   :  { %v3920_v28 = vpop.f32.mrf.mxu2 }
 0x136   :  { %v3926_v30 = vpop.f32.mrf.mxu1  ;;  %v4040_v13 = vpop.f32.mrf.mxu0 }
 0x13b   :  { %v3931_v31 = vpop.f32.mrf.mxu2 }
 0x13e   :  { %v3934_v32 = vpop.f32.mrf.mxu1  ;;  %v4047_v16 = vpop.f32.mrf.mxu0 }
 0x143   :  { %v3939_v0 = vpop.f32.mrf.mxu2 }
 0x146   :  { %v3941_v33 = vpop.f32.mrf.mxu1  ;;  %v4049_v17 = vpop.f32.mrf.mxu0 }
 0x14b   :  { %v3943_v1 = vpop.f32.mrf.mxu2 }
 0x14e   :  { %v695_v2 = vpop.f32.mrf.mxu1 }
 0x14f   :  { %2944 = vmatmul.msk.f32.vlgmr.msra.gmra.mxu2 %vm251_vm1, %v695_v2 }
 0x153   :  { %v492_v3 = vpop.f32.mrf.mxu2 }
 0x154   :  { %2892 = vmatmul.msk.f32.vlgmr.msrb.gmra.mxu3 %vm251_vm1, %v492_v3  ;;  %2899 = vmatmul.msk.f32.vlgmr.msra.gmra.mxu0 %vm251_vm1, %v492_v3  ;;  %v2987_v3 = vld [vmem:[%s5354_s30 + $0x378] sm:$0xff] }
 0x155   :  { %1011 = vmatpush.msrb.mxu2 %v2987_v3 }
 0x156   :  { %v698_v6 = vpop.f32.mrf.mxu1 }
 0x157   :  { %2945 = vmatmul.msk.f32.gmra.mxu2 %vm251_vm1, %v698_v6 }
 0x158   :  { %1012 = vmatpush.msrb.mxu2 %v2985_v5 }
 0x15a   :  { %1013 = vmatpush.msrb.mxu2 %v2983_v7 }
 0x15b   :  { %v495_v35 = vpop.f32.mrf.mxu2 }
 0x15c   :  { %2893 = vmatmul.msk.f32.gmra.mxu3 %vm251_vm1, %v495_v35  ;;  %2900 = vmatmul.msk.f32.gmra.mxu0 %vm251_vm1, %v495_v35  ;;  %v2981_v35 = vld [vmem:[%s5354_s30 + $0x348] sm:$0xff] }
 0x15d   :  { %1014 = vmatpush.msrb.mxu2 %v2981_v35 }
 0x15e   :  { %v701_v38 = vpop.f32.mrf.mxu1 }
 0x15f   :  { %2946 = vmatmul.msk.f32.gmra.mxu2 %vm251_vm1, %v701_v38 }
 0x163   :  { %v498_v41 = vpop.f32.mrf.mxu2 }
 0x164   :  { %2894 = vmatmul.msk.f32.gmra.mxu3 %vm251_vm1, %v498_v41  ;;  %2901 = vmatmul.msk.f32.gmra.mxu0 %vm251_vm1, %v498_v41  ;;  %v2974_v41 = vld [vmem:[%s5354_s30 + $0x310] sm:$0xff] }
 0x166   :  { %v704_v46 = vpop.f32.mrf.mxu1 }
 0x167   :  { %2947 = vmatmul.msk.f32.gmra.mxu2 %vm251_vm1, %v704_v46 }
 0x16b   :  { %v501_v50 = vpop.f32.mrf.mxu2 }
 0x16c   :  { %2895 = vmatmul.msk.f32.gmra.mxu3 %vm251_vm1, %v501_v50  ;;  %2902 = vmatmul.msk.f32.gmra.mxu0 %vm251_vm1, %v501_v50  ;;  %v4133_v50 = vpop.f32.mrf.mxu3 }
 0x16e   :  { %v707_v51 = vpop.f32.mrf.mxu1 }
 0x16f   :  { %2948 = vmatmul.msk.f32.gmra.mxu2 %vm251_vm1, %v707_v51 }
 0x173   :  { %v504_v52 = vpop.f32.mrf.mxu2 }
 0x174   :  { %2896 = vmatmul.msk.f32.gmra.mxu3 %vm251_vm1, %v504_v52  ;;  %2903 = vmatmul.msk.f32.gmra.mxu0 %vm251_vm1, %v504_v52  ;;  %v4137_v52 = vpop.f32.mrf.mxu3 }
 0x176   :  { %v710_v53 = vpop.f32.mrf.mxu1 }
 0x177   :  { %2949 = vmatmul.msk.f32.gmra.mxu2 %vm251_vm1, %v710_v53 }
 0x17b   :  { %v507_v54 = vpop.f32.mrf.mxu2 }
 0x17c   :  { %2897 = vmatmul.msk.f32.gmra.mxu3 %vm251_vm1, %v507_v54  ;;  %2904 = vmatmul.msk.f32.gmra.mxu0 %vm251_vm1, %v507_v54  ;;  %v4141_v54 = vpop.f32.mrf.mxu3 }
 0x17e   :  { %v713_v55 = vpop.f32.mrf.mxu1 }
 0x17f   :  { %2950 = vmatmul.msk.f32.gmra.mxu2 %vm251_vm1, %v713_v55 }
 0x183   :  { %v510_v57 = vpop.f32.mrf.mxu2 }
 0x184   :  { %2898 = vmatmul.msk.f32.gmra.mxu3 %vm251_vm1, %v510_v57  ;;  %2905 = vmatmul.msk.f32.gmra.mxu0 %vm251_vm1, %v510_v57  ;;  %v4145_v57 = vpop.f32.mrf.mxu3 }
 0x18c   :  { %2951 = vmatmul.msk.f32.vlgmr.msra.gmra.mxu3 %vm251_vm1, %v695_v2  ;;  %2965 = vmatmul.msk.f32.vlgmr.msrb.gmra.mxu0 %vm75_vm0, %v2958_v58  ;;  %v2986_v2 = vld [vmem:[%s5354_s30 + $0x370] sm:$0xff] }
 0x18d   :  { %973 = vmatpush.msrb.mxu1 %v2986_v2 }
 0x18f   :  { %974 = vmatpush.msrb.mxu1 %v2984_v4 }
 0x194   :  { %2952 = vmatmul.msk.f32.gmra.mxu3 %vm251_vm1, %v698_v6  ;;  %2966 = vmatmul.msk.f32.gmra.mxu0 %vm75_vm0, %v2959_v60  ;;  %v2982_v6 = vld [vmem:[%s5354_s30 + $0x350] sm:$0xff] }
 0x195   :  { %975 = vmatpush.msrb.mxu1 %v2982_v6 }
 0x197   :  { %976 = vmatpush.msrb.mxu1 %v2980_v34 }
 0x199   :  { %977 = vmatpush.msrb.mxu1 %v2978_v37 }
 0x19b   :  { %978 = vmatpush.msrb.mxu1 %v2976_v39 }
 0x19c   :  { %2953 = vmatmul.msk.f32.gmra.mxu3 %vm251_vm1, %v701_v38  ;;  %2967 = vmatmul.msk.f32.gmra.mxu0 %vm75_vm0, %v2960_v62  ;;  %v2979_v38 = vld [vmem:[%s5354_s30 + $0x338] sm:$0xff]  ;;  %v4151_v62 = vpop.f32.mrf.mxu3 }
 0x19d   :  { %1015 = vmatpush.msrb.mxu2 %v2979_v38  ;;  %979 = vmatpush.msrb.mxu1 %v2974_v41 }
 0x19f   :  { %1016 = vmatpush.msrb.mxu2 %v2977_v40  ;;  %980 = vmatpush.msrb.mxu1 %v2972_v45 }
 0x1a1   :  { %1017 = vmatpush.msrb.mxu2 %v2975_v44 }
 0x1a4   :  { %2954 = vmatmul.msk.f32.gmra.mxu3 %vm251_vm1, %v704_v46  ;;  %2968 = vmatmul.msk.f32.gmra.mxu0 %vm75_vm0, %v2961_v9  ;;  %v2973_v46 = vld [vmem:[%s5354_s30 + $0x308] sm:$0xff] }
 0x1a5   :  { %1018 = vmatpush.msrb.mxu2 %v2973_v46 }
 0x1ac   :  { %2955 = vmatmul.msk.f32.gmra.mxu3 %vm251_vm1, %v707_v51  ;;  %2969 = vmatmul.msk.f32.gmra.mxu0 %vm75_vm0, %v2962_v10  ;;  %v343_v10 = vpop.f32.mrf.mxu3 }
 0x1b4   :  { %2956 = vmatmul.msk.f32.gmra.mxu3 %vm251_vm1, %v710_v53  ;;  %2970 = vmatmul.msk.f32.gmra.mxu0 %vm75_vm0, %v2963_v12 }
 0x1bc   :  { %2957 = vmatmul.msk.f32.gmra.mxu3 %vm251_vm1, %v713_v55  ;;  %2971 = vmatmul.msk.f32.gmra.mxu0 %vm75_vm0, %v2964_v15  ;;  %v346_v15 = vpop.f32.mrf.mxu3 }
 0x1d1   :  { %v4051_v18 = vpop.f32.mrf.mxu0 }
 0x1d2   :  { %5355 = vst [vmem:[#allocation5_spill] sm:$0xff] %v4051_v18  ;;  %v4161_v24 = vpop.f32.mrf.mxu2  ;;  %v406_v18 = vadd.f32 %v4049_v17, %v3943_v1  ;;  %v391_v1 = vadd.f32 %v4014_v61, %v3840_v56 }
 0x1d7   :  { %v576_v20 = vpop.f32.mrf.mxu3 }
 0x1d9   :  { %v4077_v29 = vpop.f32.mrf.mxu0 }
 0x1da   :  { %5356 = vst [vmem:[#allocation6_spill] sm:$0xff] %v4077_v29  ;;  %v4163_v26 = vpop.f32.mrf.mxu2 }
 0x1df   :  { %v579_v23 = vpop.f32.mrf.mxu3 }
 0x1e1   :  { %v4103_v36 = vpop.f32.mrf.mxu0 }
 0x1e2   :  { %v785_v2 = vpop.f32.mrf.mxu2 }
 0x1e7   :  { %v582_v25 = vpop.f32.mrf.mxu3 }
 0x1e9   :  { %v4129_v47 = vpop.f32.mrf.mxu0 }
 0x1ea   :  { %v788_v4 = vpop.f32.mrf.mxu2 }
 0x1ef   :  { %v585_v27 = vpop.f32.mrf.mxu3 }
 0x1f1   :  { %v4131_v48 = vpop.f32.mrf.mxu0 }
 0x1f2   :  { %v791_v6 = vpop.f32.mrf.mxu2 }
 0x1f7   :  { %v588_v3 = vpop.f32.mrf.mxu3 }
 0x1f9   :  { %v4135_v51 = vpop.f32.mrf.mxu0 }
 0x1fa   :  { %v794_v34 = vpop.f32.mrf.mxu2 }
 0x1ff   :  { %v591_v5 = vpop.f32.mrf.mxu3 }
 0x201   :  { %v4139_v53 = vpop.f32.mrf.mxu0 }
 0x202   :  { %v797_v37 = vpop.f32.mrf.mxu2 }
 0x207   :  { %v594_v7 = vpop.f32.mrf.mxu3 }
 0x209   :  { %v898_v55 = vpop.f32.mrf.mxu0 }
 0x20a   :  { %2996 = vmatmul.msk.f32.vlgmr.msrb.gmra.mxu1 %vm251_vm1, %v898_v55  ;;  %3003 = vmatmul.msk.f32.vlgmr.msrb.gmra.mxu2 %vm251_vm1, %v898_v55 }
 0x20f   :  { %v4165_v35 = vpop.f32.mrf.mxu3 }
 0x210   :  { %5357 = vst [vmem:[#allocation7_spill] sm:$0xff] %v4165_v35 }
 0x211   :  { %v901_v58 = vpop.f32.mrf.mxu0 }
 0x212   :  { %2997 = vmatmul.msk.f32.gmra.mxu1 %vm251_vm1, %v901_v58  ;;  %3004 = vmatmul.msk.f32.gmra.mxu2 %vm251_vm1, %v901_v58 }
 0x217   :  { %v4167_v38 = vpop.f32.mrf.mxu3 }
 0x218   :  { %5358 = vst [vmem:[#allocation8_spill] sm:$0xff] %v4167_v38 }
 0x219   :  { %v904_v60 = vpop.f32.mrf.mxu0 }
 0x21a   :  { %2998 = vmatmul.msk.f32.gmra.mxu1 %vm251_vm1, %v904_v60  ;;  %3005 = vmatmul.msk.f32.gmra.mxu2 %vm251_vm1, %v904_v60 }
 0x21f   :  { %v4175_v44 = vpop.f32.mrf.mxu3 }
 0x220   :  { %5361 = vst [vmem:[#allocation11_spill] sm:$0xff] %v4175_v44 }
 0x221   :  { %v907_v9 = vpop.f32.mrf.mxu0 }
 0x222   :  { %2999 = vmatmul.msk.f32.gmra.mxu1 %vm251_vm1, %v907_v9  ;;  %3006 = vmatmul.msk.f32.gmra.mxu2 %vm251_vm1, %v907_v9 }
 0x227   :  { %v4179_v55 = vpop.f32.mrf.mxu3 }
 0x228   :  { %5363 = vst [vmem:[#allocation13_spill] sm:$0xff] %v4179_v55 }
 0x229   :  { %v910_v12 = vpop.f32.mrf.mxu0 }
 0x22a   :  { %3000 = vmatmul.msk.f32.gmra.mxu1 %vm251_vm1, %v910_v12  ;;  %3007 = vmatmul.msk.f32.gmra.mxu2 %vm251_vm1, %v910_v12 }
 0x22f   :  { %v829_v9 = vpop.f32.mrf.mxu3 }
 0x231   :  { %v913_v19 = vpop.f32.mrf.mxu0 }
 0x232   :  { %3001 = vmatmul.msk.f32.gmra.mxu1 %vm251_vm1, %v913_v19  ;;  %3008 = vmatmul.msk.f32.gmra.mxu2 %vm251_vm1, %v913_v19 }
 0x237   :  { %v832_v35 = vpop.f32.mrf.mxu3 }
 0x239   :  { %v916_v22 = vpop.f32.mrf.mxu0 }
 0x23a   :  { %3002 = vmatmul.msk.f32.gmra.mxu1 %vm251_vm1, %v916_v22  ;;  %3009 = vmatmul.msk.f32.gmra.mxu2 %vm251_vm1, %v916_v22 }
 0x287   :  { %v4169_v39 = vpop.f32.mrf.mxu1 }
 0x288   :  { %5359 = vst [vmem:[#allocation9_spill] sm:$0xff] %v4169_v39  ;;  %v394_v39 = vadd.f32 %v4021_v8, %v3880_v14  ;;  %v432_v14 = vadd.f32 %v3860_v63, %v4141_v54  ;;  %v438_v63 = vadd.f32 %v3926_v30, %v4151_v62 }
 0x28d   :  { %v4171_v40 = vpop.f32.mrf.mxu2 }
 0x28e   :  { %5360 = vst [vmem:[#allocation10_spill] sm:$0xff] %v4171_v40  ;;  %v403_v40 = vadd.f32 %v4047_v16, %v3939_v0  ;;  %v388_v0 = vadd.f32 %v4007_v59, %v3803_v43  ;;  %v441_v43 = vadd.f32 %v3934_v32, %v343_v10 }
 0x28f   :  { %v4173_v41 = vpop.f32.mrf.mxu1 }
 0x290   :  { %v645_v44 = vadd.f32 %v591_v5, %v403_v40  ;;  %v635_v59 = vadd.f32 %v576_v20, %v388_v0  ;;  %v646_v54 = vadd.f32 %v4135_v51, %v441_v43  ;;  %v835_v5 = vpop.f32.mrf.mxu3 }
 0x292   :  { %v848_v55 = vadd.f32 %v794_v34, %v645_v44  ;;  %v838_v20 = vadd.f32 %v4161_v24, %v635_v59  ;;  %v5376_v59 = vld [vmem:[#allocation7_spill] sm:$0xff] }
 0x295   :  { %v4177_v45 = vpop.f32.mrf.mxu2 }
 0x296   :  { %5362 = vst [vmem:[#allocation12_spill] sm:$0xff] %v4177_v45  ;;  %v400_v45 = vadd.f32 %v4040_v13, %v3931_v31  ;;  %v4201_v31 = vadd.f32 %v3801_v42, %v4133_v50  ;;  %v639_v13 = vadd.f32 %v582_v25, %v394_v39  ;;  %v444_v42 = vadd.f32 %v3941_v33, %v346_v15 }
 0x297   :  { %v988_v46 = vpop.f32.mrf.mxu1 }
 0x298   :  { %v643_v29 = vadd.f32 %v588_v3, %v400_v45  ;;  %v435_v3 = vadd.f32 %v3900_v21, %v4145_v57  ;;  %v648_v32 = vadd.f32 %v4139_v53, %v444_v42  ;;  %v5369_v45 = vld [vmem:[#allocation9_spill] sm:$0xff] }
 0x29a   :  { %v846_v8 = vadd.f32 %v791_v6, %v643_v29  ;;  %v842_v29 = vadd.f32 %v785_v2, %v639_v13  ;;  %v849_v6 = vadd.f32 %v832_v35, %v646_v54  ;;  %v851_v21 = vadd.f32 %v835_v5, %v648_v32  ;;  %v5367_v35 = vld [vmem:[#allocation13_spill] sm:$0xff] }
 0x29b   :  { %v642_v62 = vadd.f32 %v4129_v47, %v435_v3  ;;  %v5373_v13 = vld [vmem:[#allocation5_spill] sm:$0xff] }
 0x29c   :  { %v1045_v57 = vadd.f32 %v988_v46, %v842_v29  ;;  %v1041_v46 = vadd.f32 %v5369_v45, %v838_v20  ;;  %v1089_v5 = vld [vmem:[%s5331_s4] sm:$0xff] }
 0x29d   :  { %v4181_v58 = vpop.f32.mrf.mxu2  ;;  %v845_v40 = vadd.f32 %v5367_v35, %v642_v62  ;;  %v3021_v62 = vld [vmem:[%s5331_s4 + $0x38] sm:$0xf]  ;;  %v1257_v35 = vld [vmem:[%s5332_s5 + $0x50] sm:$0xff]  ;;  %v1255_v45 = vld [vmem:[%s5332_s5 + $0x40] sm:$0xff] }
 0x29e   :  { %5364 = vst [vmem:[#allocation14_spill] sm:$0xff] %v4181_v58  ;;  %v397_v58 = vadd.f32 %v4031_v11, %v3920_v28  ;;  %v1055_v28 = vld [vmem:[%s5330_s3] sm:$0x3] }
 0x29f   :  { %v991_v60 = vpop.f32.mrf.mxu1  ;;  %v1057_v61 = vperm.slane %v1055_v28, 0  ;;  %v1058_v2 = vperm.slane %v1055_v28, 1  ;;  %v636_v28 = vadd.f32 %v5373_v13, %v4201_v31  ;;  %v5378_v31 = vld [vmem:[#allocation10_spill] sm:$0xff] }
 0x2a0   :  { %v3035_v13 = vld [vmem:[%s5332_s5 + $0xb0] sm:$0xff] }
 0x2a1   :  { %v1061_v43 = vadd.f32 %v1057_v61, %v1041_v46  ;;  %v3042_v46 = vld [vmem:[%s5332_s5 + $0xe8] sm:$0xff] }
 0x2a5   :  { %v4183_v12 = vpop.f32.mrf.mxu2 }
 0x2a6   :  { %5365 = vst [vmem:[#allocation15_spill] sm:$0xff] %v4183_v12  ;;  %v647_v12 = vadd.f32 %v594_v7, %v406_v18  ;;  %v637_v18 = vadd.f32 %v579_v23, %v391_v1 }
 0x2a7   :  { %v994_v19 = vpop.f32.mrf.mxu1 }
 0x2a8   :  { %v850_v16 = vadd.f32 %v797_v37, %v647_v12  ;;  %v1049_v25 = vadd.f32 %v994_v19, %v846_v8  ;;  %v840_v23 = vadd.f32 %v4163_v26, %v637_v18  ;;  %v640_v26 = vadd.f32 %v4103_v36, %v432_v14  ;;  %v5371_v12 = vld [vmem:[#allocation11_spill] sm:$0xff]  ;;  %v5375_v8 = vld [vmem:[#allocation14_spill] sm:$0xff] }
 0x2a9   :  { %v839_v18 = vadd.f32 %v5376_v59, %v636_v28  ;;  %v1247_v28 = vld [vmem:[%s5332_s5] sm:$0xff] }
 0x2aa   :  { %v1069_v7 = vadd.f32 %v1057_v61, %v1049_v25  ;;  %v1043_v37 = vadd.f32 %v4173_v41, %v840_v23  ;;  %v843_v19 = vadd.f32 %v5371_v12, %v640_v26  ;;  %v3045_v26 = vld [vmem:[%s5332_s5 + $0x100] sm:$0xff]  ;;  %v3039_v12 = vld [vmem:[%s5332_s5 + $0xd0] sm:$0xff] }
 0x2ac   :  { %v1083_v41 = vmax.f32 %v1069_v7, 0.0  ;;  %v3020_v7 = vld [vmem:[%s5331_s4 + $0x30] sm:$0xff] }
 0x2ad   :  { %v4185_v22 = vpop.f32.mrf.mxu2 }
 0x2ae   :  { %5366 = vst [vmem:[#allocation16_spill] sm:$0xff] %v4185_v22  ;;  %v641_v22 = vadd.f32 %v585_v27, %v397_v58 }
 0x2af   :  { %v997_v38 = vpop.f32.mrf.mxu1 }
 0x2b0   :  { %v1051_v17 = vadd.f32 %v997_v38, %v848_v55  ;;  %v844_v56 = vadd.f32 %v788_v4, %v641_v22  ;;  %v644_v4 = vadd.f32 %v4131_v48, %v438_v63  ;;  %v429_v48 = vadd.f32 %v3820_v49, %v4137_v52  ;;  %v5372_v22 = vld [vmem:[#allocation15_spill] sm:$0xff] }
 0x2b1   :  { %v1065_v55 = vadd.f32 %v1057_v61, %v1045_v57  ;;  %v1048_v0 = vadd.f32 %v5372_v22, %v845_v40  ;;  %v1063_v52 = vadd.f32 %v1057_v61, %v1043_v37  ;;  %v1042_v63 = vadd.f32 %v5378_v31, %v839_v18  ;;  %v1091_v57 = vld [vmem:[%s5331_s4 + $0x10] sm:$0xff]  ;;  %v1260_v37 = vld [vmem:[%s5332_s5 + $0x68] sm:$0xff]  ;;  %v3044_v40 = vld [vmem:[%s5332_s5 + $0xf8] sm:$0xff] }
 0x2b2   :  { %v1047_v33 = vadd.f32 %v991_v60, %v844_v56  ;;  %v1071_v10 = vadd.f32 %v1057_v61, %v1051_v17  ;;  %v847_v51 = vadd.f32 %v829_v9, %v644_v4  ;;  %v5370_v60 = vld [vmem:[#allocation6_spill] sm:$0xff] }
 0x2b3   :  { %v638_v9 = vadd.f32 %v5370_v60, %v429_v48  ;;  %v1079_v42 = vmax.f32 %v1065_v55, 0.0  ;;  %v1068_v25 = vadd.f32 %v1058_v2, %v1048_v0  ;;  %v1077_v3 = vmax.f32 %v1063_v52, 0.0  ;;  %v1258_v48 = vld [vmem:[%s5332_s5 + $0x58] sm:$0xff]  ;;  %v3038_v22 = vld [vmem:[%s5332_s5 + $0xc8] sm:$0xff]  ;;  %v1249_v52 = vld [vmem:[%s5332_s5 + $0x10] sm:$0xff] }
 0x2b4   :  { %v1067_v38 = vadd.f32 %v1057_v61, %v1047_v33  ;;  %v1085_v24 = vmax.f32 %v1071_v10, 0.0  ;;  %v3018_v10 = vld [vmem:[%s5331_s4 + $0x20] sm:$0xff]  ;;  %v1254_v55 = vld [vmem:[%s5332_s5 + $0x38] sm:$0xff] }
 0x2b5   :  { %v1035_v11 = vpop.f32.mrf.mxu2  ;;  %v5368_v44 = vld [vmem:[#allocation16_spill] sm:$0xff]  ;;  %v1082_v33 = vmax.f32 %v1068_v25, 0.0 }
 0x2b6   :  { %v1052_v34 = vadd.f32 %v1035_v11, %v849_v6  ;;  %v1050_v47 = vadd.f32 %v5368_v44, %v847_v51  ;;  %v1081_v1 = vmax.f32 %v1067_v38, 0.0  ;;  %v5374_v11 = vld [vmem:[#allocation8_spill] sm:$0xff]  ;;  %v1090_v6 = vld [vmem:[%s5331_s4 + $0x8] sm:$0xff]  ;;  %v3047_v38 = vld [vmem:[%s5332_s5 + $0x110] sm:$0xff] }
 0x2b7   :  { %v1000_v50 = vpop.f32.mrf.mxu1  ;;  %v841_v14 = vadd.f32 %v5374_v11, %v638_v9  ;;  %v1262_v51 = vld [vmem:[%s5332_s5 + $0x78] sm:$0xff]  ;;  %v1256_v44 = vld [vmem:[%s5332_s5 + $0x48] sm:$0xff] }
 0x2b8   :  { %v1053_v27 = vadd.f32 %v1000_v50, %v850_v16  ;;  %v1072_v49 = vadd.f32 %v1058_v2, %v1052_v34  ;;  %v1046_v16 = vadd.f32 %v5375_v8, %v843_v19  ;;  %v1070_v17 = vadd.f32 %v1058_v2, %v1050_v47  ;;  %v5377_v50 = vld [vmem:[#allocation12_spill] sm:$0xff]  ;;  %v1261_v34 = vld [vmem:[%s5332_s5 + $0x70] sm:$0xff]  ;;  %1281 = vmatpush.msra.mxu2 %v1262_v51  ;;  %v1252_v9 = vld [vmem:[%s5332_s5 + $0x28] sm:$0xff] }
 0x2b9   :  { %v1044_v56 = vadd.f32 %v5377_v50, %v841_v14  ;;  %v3043_v47 = vld [vmem:[%s5332_s5 + $0xf0] sm:$0xff]  ;;  %v3040_v60 = vld [vmem:[%s5332_s5 + $0xd8] sm:$0xff]  ;;  %v1251_v19 = vld [vmem:[%s5332_s5 + $0x20] sm:$0xff] }
 0x2ba   :  { %v1073_v15 = vadd.f32 %v1057_v61, %v1053_v27  ;;  %v1086_v27 = vmax.f32 %v1072_v49, 0.0  ;;  %v1066_v29 = vadd.f32 %v1058_v2, %v1046_v16  ;;  %v1084_v54 = vmax.f32 %v1070_v17, 0.0  ;;  %1282 = vmatpush.msra.mxu2 %v1261_v34  ;;  %v1250_v0 = vld [vmem:[%s5332_s5 + $0x18] sm:$0xff]  ;;  %v3037_v49 = vld [vmem:[%s5332_s5 + $0xc0] sm:$0xff]  ;;  %v3034_v11 = vld [vmem:[%s5332_s5 + $0xa8] sm:$0xff] }
 0x2bb   :  { %v1075_v61 = vmax.f32 %v1061_v43, 0.0  ;;  %v1064_v32 = vadd.f32 %v1058_v2, %v1044_v56  ;;  %v1267_v14 = vld [vmem:[%s5332_s5 + $0xa0] sm:$0xff]  ;;  %v3054_v8 = vld [vmem:[%s5332_s5 + $0x148] sm:$0xff]  ;;  %v1266_v16 = vld [vmem:[%s5332_s5 + $0x98] sm:$0xff] }
 0x2bc   :  { %v1087_v30 = vmax.f32 %v1073_v15, 0.0  ;;  %v1062_v15 = vadd.f32 %v1058_v2, %v1042_v63  ;;  %v1080_v20 = vmax.f32 %v1066_v29, 0.0  ;;  %1283 = vmatpush.msra.mxu2 %v1260_v37  ;;  %v3053_v17 = vld [vmem:[%s5332_s5 + $0x140] sm:$0xff]  ;;  %v1265_v43 = vld [vmem:[%s5332_s5 + $0x90] sm:$0xff]  ;;  %v1264_v50 = vld [vmem:[%s5332_s5 + $0x88] sm:$0xff] }
 0x2bd   :  { %v1038_v53 = vpop.f32.mrf.mxu2  ;;  %v1078_v23 = vmax.f32 %v1064_v32, 0.0  ;;  %v3051_v56 = vld [vmem:[%s5332_s5 + $0x130] sm:$0xff] }
 0x2be   :  { %v1054_v39 = vadd.f32 %v1038_v53, %v851_v21  ;;  %1115 = vmatpush.msrb.mxu3 %v1087_v30  ;;  %1190 = vmatpush.msra.mxu0 %v1087_v30  ;;  %v1076_v4 = vmax.f32 %v1062_v15, 0.0  ;;  %v3019_v21 = vld [vmem:[%s5331_s4 + $0x28] sm:$0xff]  ;;  %v1092_v30 = vld [vmem:[%s5331_s4 + $0x18] sm:$0xf]  ;;  %v3090_v34 = vld [vmem:[%s5333_s6 + $0x150] sm:$0xf] }
 0x2bf   :  { %v3048_v53 = vld [vmem:[%s5332_s5 + $0x118] sm:$0xff]  ;;  %v3086_v37 = vld [vmem:[%s5333_s6 + $0x130] sm:$0xff] }
 0x2c0   :  { %v1074_v58 = vadd.f32 %v1058_v2, %v1054_v39  ;;  %1116 = vmatpush.msrb.mxu3 %v1085_v24  ;;  %1191 = vmatpush.msra.mxu0 %v1085_v24  ;;  %v3049_v2 = vld [vmem:[%s5332_s5 + $0x120] sm:$0xff]  ;;  %v3046_v24 = vld [vmem:[%s5332_s5 + $0x108] sm:$0xff] }
 0x2c1   :  { %v1259_v39 = vld [vmem:[%s5332_s5 + $0x60] sm:$0xff] }
 0x2c2   :  { %v1088_v36 = vmax.f32 %v1074_v58, 0.0  ;;  %1117 = vmatpush.msrb.mxu3 %v1083_v41  ;;  %1192 = vmatpush.msra.mxu0 %v1083_v41  ;;  %v3041_v58 = vld [vmem:[%s5332_s5 + $0xe0] sm:$0xff]  ;;  %v1253_v41 = vld [vmem:[%s5332_s5 + $0x30] sm:$0xff] }
 0x2c3   :  { %1284 = vmatpush.msra.mxu2 %v1259_v39  ;;  %v3082_v39 = vld [vmem:[%s5333_s6 + $0x110] sm:$0xff] }
 0x2c4   :  { %1118 = vmatpush.msrb.mxu3 %v1081_v1  ;;  %1193 = vmatpush.msra.mxu0 %v1081_v1  ;;  %v1248_v1 = vld [vmem:[%s5332_s5 + $0x8] sm:$0xff] }
 0x2c5   :  { %1219 = vmatpush.msra.mxu1 %v1088_v36  ;;  %1285 = vmatpush.msra.mxu2 %v1258_v48  ;;  %v3078_v48 = vld [vmem:[%s5333_s6 + $0xf0] sm:$0xff] }
 0x2c6   :  { %1119 = vmatpush.msrb.mxu3 %v1079_v42  ;;  %1194 = vmatpush.msra.mxu0 %v1079_v42  ;;  %v3052_v42 = vld [vmem:[%s5332_s5 + $0x138] sm:$0xff] }
 0x2c7   :  { %1220 = vmatpush.msra.mxu1 %v1086_v27  ;;  %1286 = vmatpush.msra.mxu2 %v1257_v35  ;;  %v3074_v35 = vld [vmem:[%s5333_s6 + $0xd0] sm:$0xff] }
 0x2c8   :  { %1120 = vmatpush.msrb.mxu3 %v1077_v3  ;;  %1195 = vmatpush.msra.mxu0 %v1077_v3  ;;  %v3050_v3 = vld [vmem:[%s5332_s5 + $0x128] sm:$0xff] }
 0x2c9   :  { %1221 = vmatpush.msra.mxu1 %v1084_v54  ;;  %1287 = vmatpush.msra.mxu2 %v1256_v44 }
 0x2ca   :  { %1121 = vmatpush.msrb.mxu3 %v1075_v61  ;;  %1196 = vmatpush.msra.mxu0 %v1075_v61 }
 0x2cb   :  { %1222 = vmatpush.msra.mxu1 %v1082_v33  ;;  %3010 = vmatmul.msk.f32.vlgmr.msrb.gmra.mxu3 %vm1093_vm2, %v1089_v5 }
 0x2cc   :  { %1144 = vmatpush.msra.mxu3 %v1088_v36  ;;  %3022 = vmatmul.msk.f32.vlgmr.msra.gmra.mxu0 %vm1093_vm2, %v3018_v10  ;;  %v3036_v36 = vld [vmem:[%s5332_s5 + $0xb8] sm:$0xff] }
 0x2cd   :  { %1223 = vmatpush.msra.mxu1 %v1080_v20  ;;  %1361 = vmatpush.msrb.mxu0 %v3049_v2 }
 0x2ce   :  { %1145 = vmatpush.msra.mxu3 %v1086_v27  ;;  %1288 = vmatpush.msra.mxu2 %v1255_v45  ;;  %v1263_v27 = vld [vmem:[%s5332_s5 + $0x80] sm:$0xff] }
 0x2cf   :  { %1224 = vmatpush.msra.mxu1 %v1078_v23  ;;  %1362 = vmatpush.msrb.mxu0 %v3048_v53  ;;  %v3088_v53 = vld [vmem:[%s5333_s6 + $0x140] sm:$0xff] }
 0x2d0   :  { %1146 = vmatpush.msra.mxu3 %v1084_v54  ;;  %1289 = vmatpush.msra.mxu2 %v1254_v55  ;;  %v3072_v45 = vld [vmem:[%s5333_s6 + $0xc0] sm:$0xff] }
 0x2d1   :  { %1225 = vmatpush.msra.mxu1 %v1076_v4  ;;  %1363 = vmatpush.msrb.mxu0 %v3047_v38  ;;  %v3084_v38 = vld [vmem:[%s5333_s6 + $0x120] sm:$0xff] }
 0x2d2   :  { %1147 = vmatpush.msra.mxu3 %v1082_v33  ;;  %3026 = vmatmul.msk.f32.vlgmr.msra.gmra.mxu1 %vm1093_vm2, %v3018_v10 }
 0x2d3   :  { %3011 = vmatmul.msk.f32.gmra.mxu3 %vm1093_vm2, %v1090_v6  ;;  %1364 = vmatpush.msrb.mxu0 %v3046_v24  ;;  %v3080_v24 = vld [vmem:[%s5333_s6 + $0x100] sm:$0xff] }
 0x2d4   :  { %1148 = vmatpush.msra.mxu3 %v1080_v20  ;;  %3023 = vmatmul.msk.f32.gmra.mxu0 %vm1093_vm2, %v3019_v21 }
 0x2d5   :  { %1365 = vmatpush.msrb.mxu0 %v3045_v26  ;;  %1290 = vmatpush.msra.mxu2 %v1253_v41  ;;  %v3076_v26 = vld [vmem:[%s5333_s6 + $0xe0] sm:$0xff] }
 0x2d6   :  { %1149 = vmatpush.msra.mxu3 %v1078_v23  ;;  %1401 = vmatpush.msrb.mxu1 %v3054_v8 }
 0x2d7   :  { %1366 = vmatpush.msrb.mxu0 %v3044_v40  ;;  %1291 = vmatpush.msra.mxu2 %v1252_v9 }
 0x2d8   :  { %1150 = vmatpush.msra.mxu3 %v1076_v4  ;;  %1402 = vmatpush.msrb.mxu1 %v3053_v17 }
 0x2d9   :  { %1367 = vmatpush.msrb.mxu0 %v3043_v47  ;;  %1292 = vmatpush.msra.mxu2 %v1251_v19 }
 0x2da   :  { %3027 = vmatmul.msk.f32.gmra.mxu1 %vm1093_vm2, %v3019_v21  ;;  %1321 = vmatpush.msrb.mxu3 %v1267_v14 }
 0x2db   :  { %3012 = vmatmul.msk.f32.gmra.mxu3 %vm1093_vm2, %v1091_v57  ;;  %1368 = vmatpush.msrb.mxu0 %v3042_v46  ;;  %v3070_v46 = vld [vmem:[%s5333_s6 + $0xb0] sm:$0xff] }
 0x2dc   :  { %3024 = vmatmul.msk.f32.gmra.mxu0 %vm1093_vm2, %v3020_v7  ;;  %1293 = vmatpush.msra.mxu2 %v1250_v0 }
 0x2dd   :  { %1369 = vmatpush.msrb.mxu0 %v3041_v58  ;;  %1322 = vmatpush.msrb.mxu3 %v1266_v16 }
 0x2de   :  { %1294 = vmatpush.msra.mxu2 %v1249_v52  ;;  %1403 = vmatpush.msrb.mxu1 %v3052_v42 }
 0x2df   :  { %1370 = vmatpush.msrb.mxu0 %v3040_v60  ;;  %1323 = vmatpush.msrb.mxu3 %v1265_v43 }
 0x2e0   :  { %1295 = vmatpush.msra.mxu2 %v1248_v1  ;;  %1404 = vmatpush.msrb.mxu1 %v3051_v56  ;;  %v1423_v56 = vld [vmem:[%s5334_s7] sm:$0xff] }
 0x2e1   :  { %1371 = vmatpush.msrb.mxu0 %v3039_v12  ;;  %1324 = vmatpush.msrb.mxu3 %v1264_v50 }
 0x2e2   :  { %3028 = vmatmul.msk.f32.gmra.mxu1 %vm1093_vm2, %v3020_v7  ;;  %1296 = vmatpush.msra.mxu2 %v1247_v28 }
 0x2e3   :  { %3013 = vmatmul.msk.f32.gmra.mxu3 %vm1093_vm2, %v1092_v30  ;;  %1372 = vmatpush.msrb.mxu0 %v3038_v22 }
 0x2e4   :  { %3025 = vmatmul.msk.f32.gmra.mxu0 %vm1093_vm2, %v3021_v62  ;;  %1325 = vmatpush.msrb.mxu3 %v1263_v27  ;;  %v1486_v27 = vld [vmem:[%s5333_s6 + $0xa0] sm:$0xf] }
 0x2e5   :  { %1373 = vmatpush.msrb.mxu0 %v3037_v49  ;;  %1405 = vmatpush.msrb.mxu1 %v3050_v3  ;;  %v1487_v3 = vld [vmem:[%s5333_s6 + $0xa8] sm:$0xf] }
 0x2e7   :  { %1374 = vmatpush.msrb.mxu0 %v3036_v36 }
 0x2e9   :  { %1375 = vmatpush.msrb.mxu0 %v3035_v13 }
 0x2ea   :  { %3029 = vmatmul.msk.f32.gmra.mxu1 %vm1093_vm2, %v3021_v62 }
 0x2eb   :  { %3014 = vmatmul.msk.f32.vlgmr.msra.gmra.mxu3 %vm1093_vm2, %v1089_v5  ;;  %1376 = vmatpush.msrb.mxu0 %v3034_v11 }
 0x2ed   :  { %3092 = vmatpush.msk.msra.mxu0 %vm1436_vm4, %v3090_v34  ;;  %v1469_v34 = vld [vmem:[%s5333_s6 + $0x18] sm:$0xff] }
 0x2ef   :  { %1572 = vmatpush.msra.mxu0 %v3088_v53  ;;  %v1466_v53 = vld [vmem:[%s5333_s6] sm:$0xff] }
 0x2f1   :  { %1573 = vmatpush.msra.mxu0 %v3086_v37  ;;  %v1467_v37 = vld [vmem:[%s5333_s6 + $0x8] sm:$0xff] }
 0x2f3   :  { %3015 = vmatmul.msk.f32.gmra.mxu3 %vm1093_vm2, %v1090_v6  ;;  %1574 = vmatpush.msra.mxu0 %v3084_v38  ;;  %v3136_v38 = vld [vmem:[%s5333_s6 + $0x208] sm:$0xf] }
 0x2f5   :  { %1575 = vmatpush.msra.mxu0 %v3082_v39  ;;  %v3134_v39 = vld [vmem:[%s5333_s6 + $0x1f8] sm:$0xff] }
 0x2f7   :  { %1576 = vmatpush.msra.mxu0 %v3080_v24  ;;  %v3132_v24 = vld [vmem:[%s5333_s6 + $0x1e8] sm:$0xff] }
 0x2f9   :  { %1577 = vmatpush.msra.mxu0 %v3078_v48  ;;  %v3130_v48 = vld [vmem:[%s5333_s6 + $0x1d8] sm:$0xff] }
 0x2fb   :  { %3016 = vmatmul.msk.f32.gmra.mxu3 %vm1093_vm2, %v1091_v57  ;;  %1578 = vmatpush.msra.mxu0 %v3076_v26  ;;  %v3128_v26 = vld [vmem:[%s5333_s6 + $0x1c8] sm:$0xff] }
 0x2fd   :  { %1579 = vmatpush.msra.mxu0 %v3074_v35  ;;  %v3126_v35 = vld [vmem:[%s5333_s6 + $0x1b8] sm:$0xff] }
 0x2ff   :  { %1580 = vmatpush.msra.mxu0 %v3072_v45  ;;  %v3118_v45 = vld [vmem:[%s5333_s6 + $0x178] sm:$0xff] }
 0x301   :  { %1581 = vmatpush.msra.mxu0 %v3070_v46  ;;  %v3091_v46 = vld [vmem:[%s5333_s6 + $0x158] sm:$0xf] }
 0x302   :  { %3096 = vmatpush.msk.msra.mxu1 %vm1436_vm4, %v3091_v46  ;;  %v3155_v46 = vld [vmem:[%s5333_s6 + $0x228] sm:$0xff] }
 0x303   :  { %3017 = vmatmul.msk.f32.gmra.mxu3 %vm1093_vm2, %v1092_v30 }
 0x349   :  { %v1198_v59 = vpop.f32.mrf.mxu0 }
 0x34e   :  { %v1123_v18 = vpop.f32.mrf.mxu3 }
 0x34f   :  { %v1239_v25 = vmax.f32 %v1123_v18, %v1198_v59  ;;  %v1227_v10 = vpop.f32.mrf.mxu1 }
 0x351   :  { %1297 = vmatmul.f32.vlgmr.msra.gmra.mxu2 %v1239_v25  ;;  %1377 = vmatmul.f32.vlgmr.msrb.gmra.mxu0 %v1239_v25  ;;  %v1201_v31 = vpop.f32.mrf.mxu0  ;;  %v3063_v25 = vld [vmem:[%s5334_s7 + $0x18] sm:$0xff] }
 0x356   :  { %v1126_v63 = vpop.f32.mrf.mxu3 }
 0x357   :  { %v1241_v29 = vmax.f32 %v1126_v63, %v1201_v31  ;;  %v1230_v4 = vpop.f32.mrf.mxu1  ;;  %v1484_v31 = vld [vmem:[%s5333_s6 + $0x90] sm:$0xff]  ;;  %v1485_v63 = vld [vmem:[%s5333_s6 + $0x98] sm:$0xff] }
 0x359   :  { %1300 = vmatmul.f32.gmra.mxu2 %v1241_v29  ;;  %1380 = vmatmul.f32.gmra.mxu0 %v1241_v29  ;;  %v1204_v54 = vpop.f32.mrf.mxu0  ;;  %v1482_v29 = vld [vmem:[%s5333_s6 + $0x80] sm:$0xff] }
 0x35e   :  { %v1129_v61 = vpop.f32.mrf.mxu3 }
 0x35f   :  { %v1243_v5 = vmax.f32 %v1129_v61, %v1204_v54  ;;  %v1233_v57 = vpop.f32.mrf.mxu1  ;;  %v1483_v54 = vld [vmem:[%s5333_s6 + $0x88] sm:$0xff]  ;;  %v1480_v61 = vld [vmem:[%s5333_s6 + $0x70] sm:$0xff] }
 0x361   :  { %1303 = vmatmul.f32.gmra.mxu2 %v1243_v5  ;;  %1383 = vmatmul.f32.gmra.mxu0 %v1243_v5  ;;  %v1207_v32 = vpop.f32.mrf.mxu0  ;;  %v1481_v5 = vld [vmem:[%s5333_s6 + $0x78] sm:$0xff] }
 0x366   :  { %v1132_v33 = vpop.f32.mrf.mxu3 }
 0x367   :  { %v1245_v15 = vmax.f32 %v1132_v33, %v1207_v32  ;;  %v1236_v62 = vpop.f32.mrf.mxu1  ;;  %v1424_v32 = vld [vmem:[%s5334_s7 + $0x8] sm:$0xff]  ;;  %v3064_v33 = vld [vmem:[%s5334_s7 + $0x20] sm:$0xff] }
 0x369   :  { %1306 = vmatmul.f32.gmra.mxu2 %v1245_v15  ;;  %1386 = vmatmul.f32.gmra.mxu0 %v1245_v15  ;;  %v1479_v15 = vld [vmem:[%s5333_s6 + $0x68] sm:$0xff] }
 0x36e   :  { %v1152_v20 = vpop.f32.mrf.mxu3 }
 0x36f   :  { %v1240_v23 = vmax.f32 %v1152_v20, %v1227_v10  ;;  %v1478_v10 = vld [vmem:[%s5333_s6 + $0x60] sm:$0xff]  ;;  %v1476_v20 = vld [vmem:[%s5333_s6 + $0x50] sm:$0xff] }
 0x371   :  { %3030 = vmatmul.msk.f32.vlgmr.msrb.gmra.mxu3 %vm1268_vm3, %v1240_v23  ;;  %3055 = vmatmul.msk.f32.vlgmr.msrb.gmra.mxu1 %vm1268_vm3, %v1240_v23  ;;  %v1477_v23 = vld [vmem:[%s5333_s6 + $0x58] sm:$0xff] }
 0x376   :  { %v1155_v6 = vpop.f32.mrf.mxu3 }
 0x377   :  { %v1242_v21 = vmax.f32 %v1155_v6, %v1230_v4  ;;  %v1474_v4 = vld [vmem:[%s5333_s6 + $0x40] sm:$0xff]  ;;  %v1475_v6 = vld [vmem:[%s5333_s6 + $0x48] sm:$0xff] }
 0x379   :  { %3031 = vmatmul.msk.f32.gmra.mxu3 %vm1268_vm3, %v1242_v21  ;;  %3056 = vmatmul.msk.f32.gmra.mxu1 %vm1268_vm3, %v1242_v21  ;;  %v1472_v21 = vld [vmem:[%s5333_s6 + $0x30] sm:$0xff] }
 0x37e   :  { %v1158_v7 = vpop.f32.mrf.mxu3 }
 0x37f   :  { %v1244_v30 = vmax.f32 %v1158_v7, %v1233_v57  ;;  %v1473_v57 = vld [vmem:[%s5333_s6 + $0x38] sm:$0xff]  ;;  %v1425_v7 = vld [vmem:[%s5334_s7 + $0x10] sm:$0xf] }
 0x381   :  { %3032 = vmatmul.msk.f32.gmra.mxu3 %vm1268_vm3, %v1244_v30  ;;  %3057 = vmatmul.msk.f32.gmra.mxu1 %vm1268_vm3, %v1244_v30  ;;  %v3065_v30 = vld [vmem:[%s5334_s7 + $0x28] sm:$0xf] }
 0x386   :  { %v1161_v51 = vpop.f32.mrf.mxu3 }
 0x387   :  { %v1246_v2 = vmax.f32 %v1161_v51, %v1236_v62  ;;  %v1470_v62 = vld [vmem:[%s5333_s6 + $0x20] sm:$0xff]  ;;  %v1471_v51 = vld [vmem:[%s5333_s6 + $0x28] sm:$0xff] }
 0x389   :  { %3033 = vmatmul.msk.f32.gmra.mxu3 %vm1268_vm3, %v1246_v2  ;;  %3058 = vmatmul.msk.f32.gmra.mxu1 %vm1268_vm3, %v1246_v2  ;;  %v1468_v2 = vld [vmem:[%s5333_s6 + $0x10] sm:$0xff] }
 0x3ce   :  { %v1378_v40 = vpop.f32.mrf.mxu0 }
 0x3d4   :  { %v1298_v44 = vpop.f32.mrf.mxu2 }
 0x3d6   :  { %v1381_v41 = vpop.f32.mrf.mxu0 }
 0x3dc   :  { %v1301_v60 = vpop.f32.mrf.mxu2 }
 0x3de   :  { %v1384_v19 = vpop.f32.mrf.mxu0 }
 0x3e4   :  { %v1304_v22 = vpop.f32.mrf.mxu2 }
 0x3e6   :  { %v1387_v52 = vpop.f32.mrf.mxu0 }
 0x3ec   :  { %v1307_v36 = vpop.f32.mrf.mxu2 }
 0x3ee   :  { %v1407_v47 = vpop.f32.mrf.mxu1 }
 0x3ef   :  { %v1408_v59 = vadd.f32 %v1407_v47, %v1378_v40  ;;  %v3124_v40 = vld [vmem:[%s5333_s6 + $0x1a8] sm:$0xff] }
 0x3f0   :  { %v3120_v47 = vld [vmem:[%s5333_s6 + $0x188] sm:$0xff] }
 0x3f4   :  { %v1327_v55 = vpop.f32.mrf.mxu3 }
 0x3f5   :  { %v1328_v17 = vadd.f32 %v1327_v55, %v1298_v44  ;;  %v3122_v44 = vld [vmem:[%s5333_s6 + $0x198] sm:$0xff]  ;;  %v3089_v55 = vld [vmem:[%s5333_s6 + $0x148] sm:$0xff] }
 0x3f6   :  { %v1410_v58 = vpop.f32.mrf.mxu1  ;;  %1598 = vmatpush.msra.mxu1 %v3089_v55 }
 0x3f7   :  { %v1411_v43 = vadd.f32 %v1410_v58, %v1381_v41  ;;  %v4462_v50 = vmax.f32 %v1328_v17, %v1408_v59  ;;  %v3087_v58 = vld [vmem:[%s5333_s6 + $0x138] sm:$0xff]  ;;  %v3085_v41 = vld [vmem:[%s5333_s6 + $0x128] sm:$0xff]  ;;  %v3146_v17 = vld [vmem:[%s5334_s7 + $0x50] sm:$0xff] }
 0x3f8   :  { %1599 = vmatpush.msra.mxu1 %v3087_v58  ;;  %v3110_v59 = vld [vmem:[%s5334_s7 + $0x40] sm:$0xf]  ;;  %v3153_v58 = vld [vmem:[%s5333_s6 + $0x218] sm:$0xff] }
 0x3fa   :  { %1600 = vmatpush.msra.mxu1 %v3085_v41 }
 0x3fc   :  { %v1330_v9 = vpop.f32.mrf.mxu3 }
 0x3fd   :  { %v1331_v14 = vadd.f32 %v1330_v9, %v1301_v60  ;;  %v3083_v60 = vld [vmem:[%s5333_s6 + $0x118] sm:$0xff]  ;;  %v3081_v9 = vld [vmem:[%s5333_s6 + $0x108] sm:$0xff] }
 0x3fe   :  { %v1413_v12 = vpop.f32.mrf.mxu1  ;;  %1601 = vmatpush.msra.mxu1 %v3083_v60 }
 0x3ff   :  { %v1414_v8 = vadd.f32 %v1413_v12, %v1384_v19  ;;  %v4457_v18 = vmax.f32 %v1331_v14, %v1411_v43  ;;  %v3079_v12 = vld [vmem:[%s5333_s6 + $0xf8] sm:$0xff]  ;;  %v3077_v19 = vld [vmem:[%s5333_s6 + $0xe8] sm:$0xff] }
 0x400   :  { %1602 = vmatpush.msra.mxu1 %v3081_v9  ;;  %v3109_v43 = vld [vmem:[%s5334_s7 + $0x38] sm:$0xff] }
 0x402   :  { %1603 = vmatpush.msra.mxu1 %v3079_v12 }
 0x404   :  { %v1333_v0 = vpop.f32.mrf.mxu3  ;;  %1604 = vmatpush.msra.mxu1 %v3077_v19 }
 0x405   :  { %v1334_v13 = vadd.f32 %v1333_v0, %v1304_v22  ;;  %v3075_v22 = vld [vmem:[%s5333_s6 + $0xd8] sm:$0xff]  ;;  %v3073_v0 = vld [vmem:[%s5333_s6 + $0xc8] sm:$0xff] }
 0x406   :  { %v1416_v49 = vpop.f32.mrf.mxu1  ;;  %1605 = vmatpush.msra.mxu1 %v3075_v22 }
 0x407   :  { %v1417_v28 = vadd.f32 %v1416_v49, %v1387_v52  ;;  %v4449_v42 = vmax.f32 %v1334_v13, %v1414_v8  ;;  %v3116_v49 = vld [vmem:[%s5333_s6 + $0x168] sm:$0xff]  ;;  %v3071_v52 = vld [vmem:[%s5333_s6 + $0xb8] sm:$0xff] }
 0x408   :  { %1606 = vmatpush.msra.mxu1 %v3073_v0  ;;  %v3145_v8 = vld [vmem:[%s5334_s7 + $0x48] sm:$0xff] }
 0x40a   :  { %1607 = vmatpush.msra.mxu1 %v3071_v52  ;;  %v3182_v52 = vld [vmem:[%s5334_s7 + $0x60] sm:$0xff] }
 0x40c   :  { %v1336_v1 = vpop.f32.mrf.mxu3 }
 0x40d   :  { %v1337_v11 = vadd.f32 %v1336_v1, %v1307_v36 }
 0x40f   :  { %v4447_v16 = vmax.f32 %v1337_v11, %v1417_v28 }
 0x411   :  { %3059 = vmatpush.msk.msrb.mxu2 %vm1436_vm4, %v4447_v16  ;;  %3066 = vmatpush.msk.msra.mxu3 %vm1436_vm4, %v4447_v16 }
 0x412   :  { %3111 = vmatpush.msk.msrb.mxu0 %vm1436_vm4, %v4447_v16 }
 0x413   :  { %1453 = vmatpush.msrb.mxu2 %v4449_v42  ;;  %1514 = vmatpush.msra.mxu3 %v4449_v42 }
 0x414   :  { %1711 = vmatpush.msrb.mxu0 %v4449_v42 }
 0x415   :  { %1454 = vmatpush.msrb.mxu2 %v4457_v18  ;;  %1515 = vmatpush.msra.mxu3 %v4457_v18 }
 0x416   :  { %1712 = vmatpush.msrb.mxu0 %v4457_v18 }
 0x417   :  { %1455 = vmatpush.msrb.mxu2 %v4462_v50  ;;  %1516 = vmatpush.msra.mxu3 %v4462_v50 }
 0x418   :  { %1713 = vmatpush.msrb.mxu0 %v4462_v50  ;;  %3060 = vmatmul.msk.f32.vlgmr.msrb.gmra.mxu2 %vm1426_vm5, %v1423_v56  ;;  %v3131_v56 = vld [vmem:[%s5333_s6 + $0x1e0] sm:$0xff] }
 0x419   :  { %3067 = vmatmul.msk.f32.vlgmr.msra.gmra.mxu3 %vm1426_vm5, %v3063_v25  ;;  %3100 = vmatpush.msk.msra.mxu2 %vm1436_vm4, %v1486_v27  ;;  %v3129_v25 = vld [vmem:[%s5333_s6 + $0x1d0] sm:$0xff] }
 0x41a   :  { %3104 = vmatpush.msk.msrb.mxu3 %vm1436_vm4, %v1487_v3  ;;  %v3172_v27 = vld [vmem:[%s5333_s6 + $0x2b0] sm:$0xf]  ;;  %v3170_v3 = vld [vmem:[%s5333_s6 + $0x2a0] sm:$0xff] }
 0x41b   :  { %1639 = vmatpush.msra.mxu2 %v1484_v31  ;;  %v3127_v31 = vld [vmem:[%s5333_s6 + $0x1c0] sm:$0xff] }
 0x41c   :  { %1665 = vmatpush.msrb.mxu3 %v1485_v63  ;;  %v3125_v63 = vld [vmem:[%s5333_s6 + $0x1b0] sm:$0xff] }
 0x41d   :  { %1640 = vmatpush.msra.mxu2 %v1482_v29  ;;  %v3168_v29 = vld [vmem:[%s5333_s6 + $0x290] sm:$0xff] }
 0x41e   :  { %1666 = vmatpush.msrb.mxu3 %v1483_v54  ;;  %v3123_v54 = vld [vmem:[%s5333_s6 + $0x1a0] sm:$0xff] }
 0x41f   :  { %1641 = vmatpush.msra.mxu2 %v1480_v61  ;;  %v3166_v61 = vld [vmem:[%s5333_s6 + $0x280] sm:$0xff] }
 0x420   :  { %1667 = vmatpush.msrb.mxu3 %v1481_v5  ;;  %3061 = vmatmul.msk.f32.gmra.mxu2 %vm1426_vm5, %v1424_v32  ;;  %v3121_v5 = vld [vmem:[%s5333_s6 + $0x190] sm:$0xff] }
 0x421   :  { %3068 = vmatmul.msk.f32.gmra.mxu3 %vm1426_vm5, %v3064_v33  ;;  %1642 = vmatpush.msra.mxu2 %v1478_v10  ;;  %v3164_v32 = vld [vmem:[%s5333_s6 + $0x270] sm:$0xff]  ;;  %v3119_v33 = vld [vmem:[%s5333_s6 + $0x180] sm:$0xff] }
 0x422   :  { %1668 = vmatpush.msrb.mxu3 %v1479_v15  ;;  %v3162_v10 = vld [vmem:[%s5333_s6 + $0x260] sm:$0xff]  ;;  %v3117_v15 = vld [vmem:[%s5333_s6 + $0x170] sm:$0xff] }
 0x423   :  { %1643 = vmatpush.msra.mxu2 %v1476_v20  ;;  %v3160_v20 = vld [vmem:[%s5333_s6 + $0x250] sm:$0xff] }
 0x424   :  { %1669 = vmatpush.msrb.mxu3 %v1477_v23  ;;  %v3115_v23 = vld [vmem:[%s5333_s6 + $0x160] sm:$0xff] }
 0x425   :  { %1644 = vmatpush.msra.mxu2 %v1474_v4  ;;  %v3158_v4 = vld [vmem:[%s5333_s6 + $0x240] sm:$0xff] }
 0x426   :  { %1670 = vmatpush.msrb.mxu3 %v1475_v6  ;;  %v3156_v6 = vld [vmem:[%s5333_s6 + $0x230] sm:$0xff] }
 0x427   :  { %1645 = vmatpush.msra.mxu2 %v1472_v21  ;;  %v3173_v21 = vld [vmem:[%s5333_s6 + $0x2b8] sm:$0xf] }
 0x428   :  { %1671 = vmatpush.msrb.mxu3 %v1473_v57  ;;  %3062 = vmatmul.msk.f32.gmra.mxu2 %vm1426_vm5, %v1425_v7  ;;  %v3154_v57 = vld [vmem:[%s5333_s6 + $0x220] sm:$0xff]  ;;  %v3152_v7 = vld [vmem:[%s5333_s6 + $0x210] sm:$0xff] }
 0x429   :  { %3069 = vmatmul.msk.f32.gmra.mxu3 %vm1426_vm5, %v3065_v30  ;;  %1646 = vmatpush.msra.mxu2 %v1470_v62  ;;  %v3171_v30 = vld [vmem:[%s5333_s6 + $0x2a8] sm:$0xff] }
 0x42a   :  { %1672 = vmatpush.msrb.mxu3 %v1471_v51  ;;  %v3169_v51 = vld [vmem:[%s5333_s6 + $0x298] sm:$0xff] }
 0x42b   :  { %1647 = vmatpush.msra.mxu2 %v1468_v2  ;;  %v3167_v2 = vld [vmem:[%s5333_s6 + $0x288] sm:$0xff] }
 0x42c   :  { %1673 = vmatpush.msrb.mxu3 %v1469_v34  ;;  %v3165_v34 = vld [vmem:[%s5333_s6 + $0x278] sm:$0xff] }
 0x42d   :  { %1648 = vmatpush.msra.mxu2 %v1466_v53 }
 0x42e   :  { %1674 = vmatpush.msrb.mxu3 %v1467_v37 }
 0x42f   :  { %3141 = vmatpush.msk.msrb.mxu2 %vm1436_vm4, %v3136_v38 }
 0x430   :  { %3148 = vmatpush.msk.msra.mxu3 %vm1436_vm4, %v4447_v16 }
 0x431   :  { %1794 = vmatpush.msrb.mxu2 %v3134_v39  ;;  %v3163_v39 = vld [vmem:[%s5333_s6 + $0x268] sm:$0xff] }
 0x432   :  { %1846 = vmatpush.msra.mxu3 %v4449_v42 }
 0x433   :  { %1795 = vmatpush.msrb.mxu2 %v3132_v24 }
 0x434   :  { %1847 = vmatpush.msra.mxu3 %v4457_v18 }
 0x435   :  { %1796 = vmatpush.msrb.mxu2 %v3130_v48 }
 0x436   :  { %1848 = vmatpush.msra.mxu3 %v4462_v50 }
 0x437   :  { %1797 = vmatpush.msrb.mxu2 %v3128_v26 }
 0x439   :  { %1798 = vmatpush.msrb.mxu2 %v3126_v35  ;;  %v3161_v35 = vld [vmem:[%s5333_s6 + $0x258] sm:$0xff] }
 0x43b   :  { %1799 = vmatpush.msrb.mxu2 %v3124_v40  ;;  %v3159_v40 = vld [vmem:[%s5333_s6 + $0x248] sm:$0xff] }
 0x43d   :  { %1800 = vmatpush.msrb.mxu2 %v3122_v44  ;;  %v3157_v44 = vld [vmem:[%s5333_s6 + $0x238] sm:$0xff] }
 0x43f   :  { %1801 = vmatpush.msrb.mxu2 %v3120_v47 }
 0x441   :  { %1802 = vmatpush.msrb.mxu2 %v3118_v45 }
 0x443   :  { %1803 = vmatpush.msrb.mxu2 %v3116_v49 }
 0x49b   :  { %v1457_v36 = vpop.f32.mrf.mxu2 }
 0x49c   :  { %v1518_v1 = vpop.f32.mrf.mxu3  ;;  %3101 = vmatmul.msk.f32.vlgmr.msra.gmra.mxu2 %vm1550_vm6, %v1457_v36  ;;  %3105 = vmatmul.msk.f32.vlgmr.msrb.gmra.mxu3 %vm1550_vm6, %v1457_v36  ;;  %v3183_v36 = vld [vmem:[%s5334_s7 + $0x68] sm:$0xff] }
 0x49d   :  { %3093 = vmatmul.msk.f32.vlgmr.msra.gmra.mxu0 %vm1550_vm6, %v1518_v1  ;;  %3185 = vmatpush.msk.msra.mxu2 %vm1436_vm4, %v4447_v16  ;;  %v3108_v16 = vld [vmem:[%s5334_s7 + $0x30] sm:$0xff] }
 0x49e   :  { %3097 = vmatmul.msk.f32.vlgmr.msra.gmra.mxu1 %vm1550_vm6, %v1518_v1  ;;  %3174 = vmatpush.msk.msra.mxu0 %vm1436_vm4, %v3172_v27  ;;  %v3184_v1 = vld [vmem:[%s5334_s7 + $0x70] sm:$0xf] }
 0x49f   :  { %1981 = vmatpush.msra.mxu2 %v4449_v42  ;;  %v3147_v42 = vld [vmem:[%s5334_s7 + $0x58] sm:$0xf]  ;;  %v3195_v27 = vld [vmem:[%s5333_s6 + $0x2f0] sm:$0xff] }
 0x4a0   :  { %1903 = vmatpush.msra.mxu0 %v3170_v3  ;;  %v3196_v3 = vld [vmem:[%s5333_s6 + $0x2f8] sm:$0xff] }
 0x4a1   :  { %1982 = vmatpush.msra.mxu2 %v4457_v18  ;;  %v3135_v18 = vld [vmem:[%s5333_s6 + $0x200] sm:$0xf] }
 0x4a2   :  { %3137 = vmatpush.msk.msrb.mxu1 %vm1436_vm4, %v3135_v18  ;;  %1904 = vmatpush.msra.mxu0 %v3168_v29  ;;  %v3199_v18 = vld [vmem:[%s5333_s6 + $0x310] sm:$0xff] }
 0x4a3   :  { %1983 = vmatpush.msra.mxu2 %v4462_v50  ;;  %v1460_v13 = vpop.f32.mrf.mxu2  ;;  %v3133_v50 = vld [vmem:[%s5333_s6 + $0x1f0] sm:$0xff] }
 0x4a4   :  { %v1521_v28 = vpop.f32.mrf.mxu3  ;;  %3106 = vmatmul.msk.f32.gmra.mxu3 %vm1550_vm6, %v1460_v13  ;;  %3102 = vmatmul.msk.f32.gmra.mxu2 %vm1550_vm6, %v1460_v13  ;;  %v3209_v13 = vld [vmem:[%s5333_s6 + $0x360] sm:$0xf]  ;;  %v3191_v29 = vld [vmem:[%s5333_s6 + $0x2d0] sm:$0xff] }
 0x4a5   :  { %3094 = vmatmul.msk.f32.gmra.mxu0 %vm1550_vm6, %v1521_v28  ;;  %1768 = vmatpush.msrb.mxu1 %v3133_v50  ;;  %v3200_v50 = vld [vmem:[%s5333_s6 + $0x318] sm:$0xff] }
 0x4a6   :  { %3098 = vmatmul.msk.f32.gmra.mxu1 %vm1550_vm6, %v1521_v28  ;;  %1905 = vmatpush.msra.mxu0 %v3166_v61  ;;  %v3210_v28 = vld [vmem:[%s5333_s6 + $0x368] sm:$0xf] }
 0x4a7   :  { %1769 = vmatpush.msrb.mxu1 %v3131_v56  ;;  %3211 = vmatpush.msk.msrb.mxu3 %vm1436_vm4, %v3209_v13  ;;  %v3197_v56 = vld [vmem:[%s5333_s6 + $0x300] sm:$0xff] }
 0x4a8   :  { %1906 = vmatpush.msra.mxu0 %v3164_v32  ;;  %v3190_v32 = vld [vmem:[%s5333_s6 + $0x2c8] sm:$0xff] }
 0x4a9   :  { %1770 = vmatpush.msrb.mxu1 %v3129_v25  ;;  %v3198_v25 = vld [vmem:[%s5333_s6 + $0x308] sm:$0xff] }
 0x4aa   :  { %1907 = vmatpush.msra.mxu0 %v3162_v10 }
 0x4ab   :  { %v1463_v11 = vpop.f32.mrf.mxu2  ;;  %1771 = vmatpush.msrb.mxu1 %v3127_v31  ;;  %v3193_v31 = vld [vmem:[%s5333_s6 + $0x2e0] sm:$0xff] }
 0x4ac   :  { %v1524_v14 = vpop.f32.mrf.mxu3  ;;  %3107 = vmatmul.msk.f32.gmra.mxu3 %vm1550_vm6, %v1463_v11  ;;  %3103 = vmatmul.msk.f32.gmra.mxu2 %vm1550_vm6, %v1463_v11  ;;  %v3207_v11 = vld [vmem:[%s5333_s6 + $0x350] sm:$0xff] }
 0x4ad   :  { %3095 = vmatmul.msk.f32.gmra.mxu0 %vm1550_vm6, %v1524_v14  ;;  %1772 = vmatpush.msrb.mxu1 %v3125_v63  ;;  %v3194_v63 = vld [vmem:[%s5333_s6 + $0x2e8] sm:$0xff] }
 0x4ae   :  { %3099 = vmatmul.msk.f32.gmra.mxu1 %vm1550_vm6, %v1524_v14  ;;  %1908 = vmatpush.msra.mxu0 %v3160_v20  ;;  %v3208_v14 = vld [vmem:[%s5333_s6 + $0x358] sm:$0xff] }
 0x4af   :  { %1773 = vmatpush.msrb.mxu1 %v3123_v54  ;;  %2038 = vmatpush.msrb.mxu3 %v3207_v11  ;;  %v3192_v54 = vld [vmem:[%s5333_s6 + $0x2d8] sm:$0xff] }
 0x4b0   :  { %1909 = vmatpush.msra.mxu0 %v3158_v4 }
 0x4b1   :  { %1774 = vmatpush.msrb.mxu1 %v3121_v5  ;;  %v3189_v5 = vld [vmem:[%s5333_s6 + $0x2c0] sm:$0xff] }
 0x4b2   :  { %1910 = vmatpush.msra.mxu0 %v3156_v6 }
 0x4b3   :  { %1775 = vmatpush.msrb.mxu1 %v3119_v33 }
 0x4b4   :  { %3149 = vmatmul.msk.f32.vlgmr.msra.gmra.mxu3 %vm1426_vm5, %v3145_v8  ;;  %1911 = vmatpush.msra.mxu0 %v3154_v57  ;;  %v3205_v8 = vld [vmem:[%s5333_s6 + $0x340] sm:$0xff] }
 0x4b5   :  { %3112 = vmatmul.msk.f32.vlgmr.msrb.gmra.mxu0 %vm1426_vm5, %v3108_v16  ;;  %1776 = vmatpush.msrb.mxu1 %v3117_v15  ;;  %v3206_v16 = vld [vmem:[%s5333_s6 + $0x348] sm:$0xff] }
 0x4b6   :  { %1912 = vmatpush.msra.mxu0 %v3152_v7  ;;  %2039 = vmatpush.msrb.mxu3 %v3205_v8 }
 0x4b7   :  { %1777 = vmatpush.msrb.mxu1 %v3115_v23 }
 0x4b8   :  { %3215 = vmatpush.msk.msrb.mxu0 %vm1436_vm4, %v3210_v28 }
 0x4b9   :  { %3178 = vmatpush.msk.msra.mxu1 %vm1436_vm4, %v3173_v21 }
 0x4ba   :  { %2064 = vmatpush.msrb.mxu0 %v3208_v14 }
 0x4bb   :  { %1929 = vmatpush.msra.mxu1 %v3171_v30 }
 0x4bc   :  { %3150 = vmatmul.msk.f32.gmra.mxu3 %vm1426_vm5, %v3146_v17  ;;  %2065 = vmatpush.msrb.mxu0 %v3206_v16  ;;  %v3203_v17 = vld [vmem:[%s5333_s6 + $0x330] sm:$0xff] }
 0x4bd   :  { %3113 = vmatmul.msk.f32.gmra.mxu0 %vm1426_vm5, %v3109_v43  ;;  %1930 = vmatpush.msra.mxu1 %v3169_v51  ;;  %v3204_v43 = vld [vmem:[%s5333_s6 + $0x338] sm:$0xff] }
 0x4be   :  { %2040 = vmatpush.msrb.mxu3 %v3203_v17  ;;  %2066 = vmatpush.msrb.mxu0 %v3204_v43 }
 0x4bf   :  { %1931 = vmatpush.msra.mxu1 %v3167_v2 }
 0x4c1   :  { %1932 = vmatpush.msra.mxu1 %v3165_v34 }
 0x4c3   :  { %1933 = vmatpush.msra.mxu1 %v3163_v39 }
 0x4c4   :  { %3151 = vmatmul.msk.f32.gmra.mxu3 %vm1426_vm5, %v3147_v42  ;;  %v3201_v42 = vld [vmem:[%s5333_s6 + $0x320] sm:$0xff] }
 0x4c5   :  { %3114 = vmatmul.msk.f32.gmra.mxu0 %vm1426_vm5, %v3110_v59  ;;  %1934 = vmatpush.msra.mxu1 %v3161_v35  ;;  %v3202_v59 = vld [vmem:[%s5333_s6 + $0x328] sm:$0xff] }
 0x4c6   :  { %2041 = vmatpush.msrb.mxu3 %v3201_v42  ;;  %2067 = vmatpush.msrb.mxu0 %v3202_v59 }
 0x4c7   :  { %1935 = vmatpush.msra.mxu1 %v3159_v40 }
 0x4c8   :  { %2042 = vmatpush.msrb.mxu3 %v3199_v18  ;;  %2068 = vmatpush.msrb.mxu0 %v3200_v50 }
 0x4c9   :  { %1936 = vmatpush.msra.mxu1 %v3157_v44 }
 0x4ca   :  { %2043 = vmatpush.msrb.mxu3 %v3197_v56  ;;  %2069 = vmatpush.msrb.mxu0 %v3198_v25 }
 0x4cb   :  { %1937 = vmatpush.msra.mxu1 %v3155_v46  ;;  %v2090_v46 = vld [vmem:[%s5335_s8] sm:$0x3] }
 0x4cc   :  { %2044 = vmatpush.msrb.mxu3 %v3195_v27  ;;  %2070 = vmatpush.msrb.mxu0 %v3196_v3 }
 0x4cd   :  { %1938 = vmatpush.msra.mxu1 %v3153_v58 }
 0x4ce   :  { %2045 = vmatpush.msrb.mxu3 %v3193_v31  ;;  %2071 = vmatpush.msrb.mxu0 %v3194_v63  ;;  %v2108_v31 = vld [vmem:[%s5336_s9] sm:$0xff]  ;;  %v2243_v63 = vld [vmem:[%s5337_s10 + $0x78] sm:$0xff] }
 0x4d0   :  { %2046 = vmatpush.msrb.mxu3 %v3191_v29  ;;  %2072 = vmatpush.msrb.mxu0 %v3192_v54  ;;  %v2242_v29 = vld [vmem:[%s5337_s10 + $0x70] sm:$0xff] }
 0x4d2   :  { %2047 = vmatpush.msrb.mxu3 %v3189_v5  ;;  %2073 = vmatpush.msrb.mxu0 %v3190_v32  ;;  %v3225_v32 = vld [vmem:[%s5336_s9 + $0x10] sm:$0xff] }
 0x51a   :  { %v1583_v62 = vpop.f32.mrf.mxu0 }
 0x51b   :  { %v1609_v53 = vpop.f32.mrf.mxu1 }
 0x51f   :  { %v1676_v37 = vpop.f32.mrf.mxu3  ;;  %v1650_v38 = vpop.f32.mrf.mxu2 }
 0x520   :  { %v4763_v24 = vadd.f32 %v1676_v37, %v1609_v53  ;;  %v4765_v48 = vadd.f32 %v1650_v38, %v1583_v62 }
 0x522   :  { %v1586_v26 = vpop.f32.mrf.mxu0 }
 0x523   :  { %v1612_v15 = vpop.f32.mrf.mxu1 }
 0x527   :  { %v4776_v47 = vpop.f32.mrf.mxu3  ;;  %v1653_v45 = vpop.f32.mrf.mxu2 }
 0x528   :  { %v4781_v55 = vadd.f32 %v1653_v45, %v1586_v26  ;;  %v1680_v20 = vadd.f32 %v4776_v47, %v1612_v15  ;;  %v2109_v15 = vld [vmem:[%s5336_s9 + $0x8] sm:$0x3] }
 0x52a   :  { %v4786_v41 = vpop.f32.mrf.mxu0 }
 0x52b   :  { %v1615_v6 = vpop.f32.mrf.mxu1 }
 0x52f   :  { %v4788_v60 = vpop.f32.mrf.mxu3  ;;  %v1656_v61 = vpop.f32.mrf.mxu2 }
 0x530   :  { %v1683_v21 = vadd.f32 %v4788_v60, %v1615_v6  ;;  %v3246_v6 = vld [vmem:[%s5337_s10 + $0xf8] sm:$0xff] }
 0x532   :  { %v1715_v9 = vpop.f32.mrf.mxu0 }
 0x533   :  { %3138 = vmatmul.msk.f32.vlgmr.msrb.gmra.mxu1 %vm1550_vm6, %v1715_v9  ;;  %3142 = vmatmul.msk.f32.vlgmr.msrb.gmra.mxu2 %vm1550_vm6, %v1715_v9 }
 0x537   :  { %v1850_v12 = vpop.f32.mrf.mxu3 }
 0x538   :  { %3175 = vmatmul.msk.f32.vlgmr.msra.gmra.mxu0 %vm1550_vm6, %v1850_v12 }
 0x539   :  { %2255 = vmatpush.msra.mxu0 %v2243_v63 }
 0x53a   :  { %v1718_v19 = vpop.f32.mrf.mxu0 }
 0x53b   :  { %3139 = vmatmul.msk.f32.gmra.mxu1 %vm1550_vm6, %v1718_v19  ;;  %3143 = vmatmul.msk.f32.gmra.mxu2 %vm1550_vm6, %v1718_v19  ;;  %v1657_v19 = vadd.f32 %v1656_v61, %v4786_v41  ;;  %v2092_v41 = vperm.slane %v2090_v46, 0  ;;  %v2241_v61 = vld [vmem:[%s5337_s10 + $0x68] sm:$0xff] }
 0x53c   :  { %2256 = vmatpush.msra.mxu0 %v2242_v29  ;;  %v3271_v29 = vld [vmem:[%s5339_s12 + $0x98] sm:$0xff] }
 0x53e   :  { %2257 = vmatpush.msra.mxu0 %v2241_v61 }
 0x53f   :  { %v1853_v22 = vpop.f32.mrf.mxu3 }
 0x540   :  { %3176 = vmatmul.msk.f32.gmra.mxu0 %vm1550_vm6, %v1853_v22 }
 0x542   :  { %v1721_v0 = vpop.f32.mrf.mxu0 }
 0x543   :  { %3140 = vmatmul.msk.f32.gmra.mxu1 %vm1550_vm6, %v1721_v0  ;;  %3144 = vmatmul.msk.f32.gmra.mxu2 %vm1550_vm6, %v1721_v0 }
 0x547   :  { %v1856_v49 = vpop.f32.mrf.mxu3 }
 0x548   :  { %3177 = vmatmul.msk.f32.gmra.mxu0 %vm1550_vm6, %v1856_v49 }
 0x54b   :  { %3179 = vmatmul.msk.f32.vlgmr.msra.gmra.mxu1 %vm1550_vm6, %v1850_v12  ;;  %3186 = vmatmul.msk.f32.vlgmr.msra.gmra.mxu2 %vm1426_vm5, %v3182_v52  ;;  %v2093_v52 = vperm.slane %v2090_v46, 1  ;;  %v2230_v46 = vld [vmem:[%s5337_s10 + $0x10] sm:$0xff] }
 0x553   :  { %3180 = vmatmul.msk.f32.gmra.mxu1 %vm1550_vm6, %v1853_v22  ;;  %3187 = vmatmul.msk.f32.gmra.mxu2 %vm1426_vm5, %v3183_v36 }
 0x55b   :  { %3181 = vmatmul.msk.f32.gmra.mxu1 %vm1550_vm6, %v1856_v49  ;;  %3188 = vmatmul.msk.f32.gmra.mxu2 %vm1426_vm5, %v3184_v1 }
 0x5b0   :  { %v1779_v2 = vpop.f32.mrf.mxu1 }
 0x5b1   :  { %v1814_v1 = vadd.f32 %v1779_v2, %v4765_v48  ;;  %v3243_v2 = vld [vmem:[%s5337_s10 + $0xe0] sm:$0xff] }
 0x5b5   :  { %v1914_v34 = vpop.f32.mrf.mxu0 }
 0x5b6   :  { %v1805_v33 = vpop.f32.mrf.mxu2  ;;  %v1949_v8 = vadd.f32 %v1914_v34, %v1814_v1  ;;  %v2236_v34 = vld [vmem:[%s5337_s10 + $0x40] sm:$0xff] }
 0x5b7   :  { %v1815_v10 = vadd.f32 %v1805_v33, %v4763_v24  ;;  %v3250_v33 = vld [vmem:[%s5337_s10 + $0x118] sm:$0xff]  ;;  %v2244_v1 = vld [vmem:[%s5337_s10 + $0x80] sm:$0xff] }
 0x5b8   :  { %v1782_v53 = vpop.f32.mrf.mxu1 }
 0x5b9   :  { %v1816_v0 = vadd.f32 %v1782_v53, %v4781_v55  ;;  %v3242_v53 = vld [vmem:[%s5337_s10 + $0xd8] sm:$0xff] }
 0x5bd   :  { %v1917_v37 = vpop.f32.mrf.mxu0 }
 0x5be   :  { %v1808_v23 = vpop.f32.mrf.mxu2  ;;  %v1951_v13 = vadd.f32 %v1917_v37, %v1816_v0  ;;  %v2235_v37 = vld [vmem:[%s5337_s10 + $0x38] sm:$0xff] }
 0x5bf   :  { %v1817_v4 = vadd.f32 %v1808_v23, %v1680_v20  ;;  %v3248_v20 = vld [vmem:[%s5337_s10 + $0x108] sm:$0xff]  ;;  %v3247_v23 = vld [vmem:[%s5337_s10 + $0x100] sm:$0xff]  ;;  %v3254_v0 = vld [vmem:[%s5337_s10 + $0x138] sm:$0xff] }
 0x5c0   :  { %v1785_v38 = vpop.f32.mrf.mxu1 }
 0x5c1   :  { %v1818_v28 = vadd.f32 %v1785_v38, %v1657_v19  ;;  %v3241_v38 = vld [vmem:[%s5337_s10 + $0xd0] sm:$0xff]  ;;  %v3235_v19 = vld [vmem:[%s5337_s10 + $0xa0] sm:$0xff] }
 0x5c5   :  { %v1920_v39 = vpop.f32.mrf.mxu0 }
 0x5c6   :  { %v1811_v57 = vpop.f32.mrf.mxu2  ;;  %v1953_v16 = vadd.f32 %v1920_v39, %v1818_v28  ;;  %v2234_v39 = vld [vmem:[%s5337_s10 + $0x30] sm:$0xff] }
 0x5c7   :  { %v1819_v7 = vadd.f32 %v1811_v57, %v1683_v21  ;;  %v3245_v21 = vld [vmem:[%s5337_s10 + $0xf0] sm:$0xff]  ;;  %v2240_v57 = vld [vmem:[%s5337_s10 + $0x60] sm:$0xff] }
 0x5c8   :  { %v1940_v24 = vpop.f32.mrf.mxu1  ;;  %2258 = vmatpush.msra.mxu0 %v2240_v57  ;;  %v3265_v57 = vld [vmem:[%s5339_s12 + $0x68] sm:$0xff] }
 0x5c9   :  { %v1950_v60 = vadd.f32 %v1940_v24, %v1815_v10  ;;  %v3249_v10 = vld [vmem:[%s5337_s10 + $0x110] sm:$0xff]  ;;  %v3240_v24 = vld [vmem:[%s5337_s10 + $0xc8] sm:$0xff] }
 0x5ce   :  { %v1985_v30 = vpop.f32.mrf.mxu2 }
 0x5cf   :  { %3212 = vmatmul.msk.f32.vlgmr.msrb.gmra.mxu3 %vm1550_vm6, %v1985_v30  ;;  %3216 = vmatmul.msk.f32.vlgmr.msrb.gmra.mxu0 %vm1550_vm6, %v1985_v30  ;;  %v2238_v30 = vld [vmem:[%s5337_s10 + $0x50] sm:$0xff] }
 0x5d0   :  { %v1943_v35 = vpop.f32.mrf.mxu1 }
 0x5d1   :  { %v1952_v45 = vadd.f32 %v1943_v35, %v1817_v4  ;;  %v3226_v4 = vld [vmem:[%s5336_s9 + $0x18] sm:$0x3]  ;;  %v3239_v35 = vld [vmem:[%s5337_s10 + $0xc0] sm:$0xff] }
 0x5d6   :  { %v1988_v62 = vpop.f32.mrf.mxu2 }
 0x5d7   :  { %3213 = vmatmul.msk.f32.gmra.mxu3 %vm1550_vm6, %v1988_v62  ;;  %3217 = vmatmul.msk.f32.gmra.mxu0 %vm1550_vm6, %v1988_v62  ;;  %v3244_v62 = vld [vmem:[%s5337_s10 + $0xe8] sm:$0xff] }
 0x5d8   :  { %v1946_v47 = vpop.f32.mrf.mxu1 }
 0x5d9   :  { %v1954_v9 = vadd.f32 %v1946_v47, %v1819_v7  ;;  %v2239_v7 = vld [vmem:[%s5337_s10 + $0x58] sm:$0xff] }
 0x5da   :  { %2259 = vmatpush.msra.mxu0 %v2239_v7  ;;  %v2231_v47 = vld [vmem:[%s5337_s10 + $0x18] sm:$0xff]  ;;  %v3264_v7 = vld [vmem:[%s5339_s12 + $0x60] sm:$0xff] }
 0x5dc   :  { %2260 = vmatpush.msra.mxu0 %v2238_v30  ;;  %v3259_v30 = vld [vmem:[%s5338_s11 + $0x2] sm:$0x3] }
 0x5de   :  { %v1991_v51 = vpop.f32.mrf.mxu2 }
 0x5df   :  { %3214 = vmatmul.msk.f32.gmra.mxu3 %vm1550_vm6, %v1991_v51  ;;  %3218 = vmatmul.msk.f32.gmra.mxu0 %vm1550_vm6, %v1991_v51  ;;  %v2237_v51 = vld [vmem:[%s5337_s10 + $0x48] sm:$0xff] }
 0x5e0   :  { %2261 = vmatpush.msra.mxu0 %v2237_v51  ;;  %v3262_v51 = vld [vmem:[%s5339_s12 + $0x50] sm:$0xff] }
 0x5e2   :  { %2262 = vmatpush.msra.mxu0 %v2236_v34  ;;  %v3299_v34 = vld [vmem:[%s5339_s12 + $0x130] sm:$0xff] }
 0x5e4   :  { %2263 = vmatpush.msra.mxu0 %v2235_v37  ;;  %v3298_v37 = vld [vmem:[%s5339_s12 + $0x128] sm:$0xff] }
 0x5e6   :  { %2264 = vmatpush.msra.mxu0 %v2234_v39  ;;  %v3296_v39 = vld [vmem:[%s5339_s12 + $0x118] sm:$0xff] }
 0x64c   :  { %v2075_v26 = vpop.f32.mrf.mxu0 }
 0x64d   :  { %v2085_v49 = vadd.f32 %v2075_v26, %v1950_v60  ;;  %v2233_v26 = vld [vmem:[%s5337_s10 + $0x28] sm:$0xff] }
 0x64e   :  { %2265 = vmatpush.msra.mxu0 %v2233_v26  ;;  %v2229_v60 = vld [vmem:[%s5337_s10 + $0x8] sm:$0xff] }
 0x64f   :  { %v2097_v17 = vadd.f32 %v2093_v52, %v2085_v49  ;;  %v3253_v49 = vld [vmem:[%s5337_s10 + $0x130] sm:$0xff]  ;;  %v2408_v26 = vld [vmem:[%s5339_s12 + $0x48] sm:$0xff] }
 0x651   :  { %v2103_v55 = vmax.f32 %v2097_v17, 0.0 }
 0x652   :  { %v2049_v40 = vpop.f32.mrf.mxu3 }
 0x653   :  { %v2084_v18 = vadd.f32 %v2049_v40, %v1949_v8  ;;  %v2232_v40 = vld [vmem:[%s5337_s10 + $0x20] sm:$0xff] }
 0x654   :  { %v2078_v44 = vpop.f32.mrf.mxu0  ;;  %2266 = vmatpush.msra.mxu0 %v2232_v40  ;;  %v2406_v40 = vld [vmem:[%s5339_s12 + $0x38] sm:$0xff] }
 0x655   :  { %v2087_v12 = vadd.f32 %v2078_v44, %v1952_v45  ;;  %v2096_v48 = vadd.f32 %v2092_v41, %v2084_v18  ;;  %v3238_v44 = vld [vmem:[%s5337_s10 + $0xb8] sm:$0xff]  ;;  %v3237_v45 = vld [vmem:[%s5337_s10 + $0xb0] sm:$0xff] }
 0x656   :  { %2267 = vmatpush.msra.mxu0 %v2231_v47  ;;  %v2404_v47 = vld [vmem:[%s5339_s12 + $0x28] sm:$0xff] }
 0x657   :  { %v2099_v11 = vadd.f32 %v2093_v52, %v2087_v12  ;;  %v2102_v5 = vmax.f32 %v2096_v48, 0.0  ;;  %v2246_v12 = vld [vmem:[%s5337_s10 + $0x90] sm:$0xff] }
 0x658   :  { %2268 = vmatpush.msra.mxu0 %v2230_v46  ;;  %v2402_v46 = vld [vmem:[%s5339_s12 + $0x18] sm:$0xff] }
 0x659   :  { %v2105_v50 = vmax.f32 %v2099_v11, 0.0 }
 0x65a   :  { %v2052_v58 = vpop.f32.mrf.mxu3  ;;  %2269 = vmatpush.msra.mxu0 %v2229_v60  ;;  %v3286_v60 = vld [vmem:[%s5339_s12 + $0xe8] sm:$0xff] }
 0x65b   :  { %v2086_v43 = vadd.f32 %v2052_v58, %v1951_v13  ;;  %v3236_v58 = vld [vmem:[%s5337_s10 + $0xa8] sm:$0xff]  ;;  %v3251_v13 = vld [vmem:[%s5337_s10 + $0x120] sm:$0xff] }
 0x65c   :  { %v2081_v22 = vpop.f32.mrf.mxu0 }
 0x65d   :  { %v2089_v36 = vadd.f32 %v2081_v22, %v1954_v9  ;;  %v2098_v25 = vadd.f32 %v2092_v41, %v2086_v43  ;;  %v2247_v9 = vld [vmem:[%s5337_s10 + $0x98] sm:$0xff]  ;;  %v2228_v22 = vld [vmem:[%s5337_s10] sm:$0xff] }
 0x65e   :  { %2270 = vmatpush.msra.mxu0 %v2228_v22  ;;  %v3285_v22 = vld [vmem:[%s5339_s12 + $0xe0] sm:$0xff] }
 0x65f   :  { %v2101_v14 = vadd.f32 %v2093_v52, %v2089_v36  ;;  %v2104_v54 = vmax.f32 %v2098_v25, 0.0  ;;  %v2245_v52 = vld [vmem:[%s5337_s10 + $0x88] sm:$0xff] }
 0x660   :  { %v3252_v36 = vld [vmem:[%s5337_s10 + $0x128] sm:$0xff]  ;;  %2455 = vmatpush.msrb.mxu0 %v3271_v29  ;;  %v3305_v29 = vld [vmem:[%s5339_s12 + $0x140] sm:$0xff]  ;;  %s3349_s10 = smov [#allocation2]  }
 0x661   :  { %v2107_v42 = vmax.f32 %v2101_v14, 0.0  ;;  %s2770_s21 = sshll.u32 %s3349_s10, 4  ;;  %s2771_s21 = int_to_ptr.vmem [resolvable:$true] %s2770_s21 }
 0x662   :  { %v2055_v59 = vpop.f32.mrf.mxu3 }
 0x663   :  { %v2088_v56 = vadd.f32 %v2055_v59, %v1953_v16  ;;  %3222 = vmatpush.msk.msrb.mxu2 %vm1436_vm4, %v2107_v42 }
 0x665   :  { %v2100_v27 = vadd.f32 %v2092_v41, %v2088_v56  ;;  %2160 = vmatpush.msrb.mxu2 %v2105_v50 }
 0x667   :  { %v2106_v3 = vmax.f32 %v2100_v27, 0.0  ;;  %2161 = vmatpush.msrb.mxu2 %v2103_v55 }
 0x668   :  { %3223 = vmatmul.msk.f32.vlgmr.msrb.gmra.mxu2 %vm2110_vm7, %v2108_v31 }
 0x669   :  { %3219 = vmatpush.msk.msrb.mxu1 %vm1436_vm4, %v2106_v3  ;;  %3227 = vmatpush.msk.msra.mxu3 %vm1436_vm4, %v2106_v3 }
 0x66a   :  { %2290 = vmatpush.msra.mxu2 %v2247_v9  ;;  %v2400_v9 = vld [vmem:[%s5339_s12 + $0x8] sm:$0xff] }
 0x66b   :  { %2137 = vmatpush.msrb.mxu1 %v2104_v54  ;;  %2192 = vmatpush.msra.mxu3 %v2104_v54  ;;  %v3270_v54 = vld [vmem:[%s5339_s12 + $0x90] sm:$0xff] }
 0x66c   :  { %2291 = vmatpush.msra.mxu2 %v2246_v12  ;;  %2456 = vmatpush.msrb.mxu0 %v3270_v54  ;;  %v3295_v12 = vld [vmem:[%s5339_s12 + $0x110] sm:$0xff] }
 0x66d   :  { %2138 = vmatpush.msrb.mxu1 %v2102_v5  ;;  %2193 = vmatpush.msra.mxu3 %v2102_v5  ;;  %v2692_v54 = vld [vmem:[%s5341_s14 + $0x70] sm:$0xff] }
 0x66e   :  { %3220 = vmatmul.msk.f32.vlgmr.msrb.gmra.mxu1 %vm2110_vm7, %v2108_v31  ;;  %3228 = vmatmul.msk.f32.vlgmr.msra.gmra.mxu3 %vm2110_vm7, %v3225_v32 }
 0x66f   :  { %3230 = vmatpush.msk.msra.mxu1 %vm1436_vm4, %v2107_v42  ;;  %2322 = vmatpush.msrb.mxu3 %v3250_v33  ;;  %v3269_v33 = vld [vmem:[%s5339_s12 + $0x88] sm:$0xff] }
 0x670   :  { %3224 = vmatmul.msk.f32.gmra.mxu2 %vm2110_vm7, %v2109_v15  ;;  %2457 = vmatpush.msrb.mxu0 %v3269_v33  ;;  %v2688_v33 = vld [vmem:[%s5341_s14 + $0x50] sm:$0xff] }
 0x671   :  { %2215 = vmatpush.msra.mxu1 %v2105_v50  ;;  %2323 = vmatpush.msrb.mxu3 %v3249_v10 }
 0x672   :  { %2292 = vmatpush.msra.mxu2 %v2245_v52  ;;  %v3284_v52 = vld [vmem:[%s5339_s12 + $0xd8] sm:$0xff] }
 0x673   :  { %2216 = vmatpush.msra.mxu1 %v2103_v55  ;;  %2324 = vmatpush.msrb.mxu3 %v3248_v20  ;;  %v3268_v20 = vld [vmem:[%s5339_s12 + $0x80] sm:$0xff] }
 0x674   :  { %2293 = vmatpush.msra.mxu2 %v2244_v1  ;;  %2458 = vmatpush.msrb.mxu0 %v3268_v20  ;;  %v3283_v1 = vld [vmem:[%s5339_s12 + $0xd0] sm:$0xff]  ;;  %v2685_v20 = vld [vmem:[%s5341_s14 + $0x38] sm:$0xff] }
 0x675   :  { %2325 = vmatpush.msrb.mxu3 %v3247_v23  ;;  %2357 = vmatpush.msrb.mxu1 %v3254_v0  ;;  %v2399_v0 = vld [vmem:[%s5339_s12] sm:$0xff] }
 0x676   :  { %3221 = vmatmul.msk.f32.gmra.mxu1 %vm2110_vm7, %v2109_v15  ;;  %3229 = vmatmul.msk.f32.gmra.mxu3 %vm2110_vm7, %v3226_v4 }
 0x677   :  { %2326 = vmatpush.msrb.mxu3 %v3246_v6  ;;  %2358 = vmatpush.msrb.mxu1 %v3253_v49  ;;  %v3267_v6 = vld [vmem:[%s5339_s12 + $0x78] sm:$0xff]  ;;  %v3293_v49 = vld [vmem:[%s5339_s12 + $0x100] sm:$0xff] }
 0x678   :  { %2459 = vmatpush.msrb.mxu0 %v3267_v6  ;;  %v2683_v6 = vld [vmem:[%s5341_s14 + $0x28] sm:$0xff] }
 0x679   :  { %2327 = vmatpush.msrb.mxu3 %v3245_v21  ;;  %2359 = vmatpush.msrb.mxu1 %v3252_v36  ;;  %v3266_v21 = vld [vmem:[%s5339_s12 + $0x70] sm:$0xff]  ;;  %v3292_v36 = vld [vmem:[%s5339_s12 + $0xf8] sm:$0xff] }
 0x67a   :  { %2460 = vmatpush.msrb.mxu0 %v3266_v21  ;;  %v2682_v21 = vld [vmem:[%s5341_s14 + $0x20] sm:$0xff] }
 0x67b   :  { %2328 = vmatpush.msrb.mxu3 %v3244_v62  ;;  %2360 = vmatpush.msrb.mxu1 %v3251_v13  ;;  %v3263_v62 = vld [vmem:[%s5339_s12 + $0x58] sm:$0xff]  ;;  %v3282_v13 = vld [vmem:[%s5339_s12 + $0xc8] sm:$0xff] }
 0x67c   :  { %2461 = vmatpush.msrb.mxu0 %v3265_v57 }
 0x67d   :  { %2329 = vmatpush.msrb.mxu3 %v3243_v2  ;;  %v3300_v2 = vld [vmem:[%s5339_s12 + $0x138] sm:$0xff] }
 0x67e   :  { %3231 = vmatmul.msk.f32.vlgmr.msra.gmra.mxu1 %vm2110_vm7, %v3225_v32  ;;  %2462 = vmatpush.msrb.mxu0 %v3264_v7 }
 0x67f   :  { %2330 = vmatpush.msrb.mxu3 %v3242_v53  ;;  %v3274_v53 = vld [vmem:[%s5338_s11 + $0x4] sm:$0x3]  ;;  %2478 = vmatpush.msra.mxu1 %v2408_v26  ;;  %v2731_v26 = vld [vmem:[%s5343_s16 + $0x48] sm:$0xff] }
 0x680   :  { %2463 = vmatpush.msrb.mxu0 %v3263_v62 }
 0x681   :  { %2331 = vmatpush.msrb.mxu3 %v3241_v38  ;;  %v3297_v38 = vld [vmem:[%s5339_s12 + $0x120] sm:$0xff] }
 0x682   :  { %2464 = vmatpush.msrb.mxu0 %v3262_v51 }
 0x683   :  { %2332 = vmatpush.msrb.mxu3 %v3240_v24  ;;  %v3288_v24 = vld [vmem:[%s5338_s11 + $0x6] sm:$0x3] }
 0x685   :  { %2333 = vmatpush.msrb.mxu3 %v3239_v35  ;;  %v2407_v35 = vld [vmem:[%s5339_s12 + $0x40] sm:$0xff] }
 0x686   :  { %3232 = vmatmul.msk.f32.gmra.mxu1 %vm2110_vm7, %v3226_v4  ;;  %v2370_v4 = vld [vmem:[%s5338_s11] sm:$0x3] }
 0x687   :  { %2334 = vmatpush.msrb.mxu3 %v3238_v44  ;;  %2479 = vmatpush.msra.mxu1 %v2407_v35  ;;  %v2405_v44 = vld [vmem:[%s5339_s12 + $0x30] sm:$0xff]  ;;  %v2730_v35 = vld [vmem:[%s5343_s16 + $0x40] sm:$0xff] }
 0x689   :  { %2335 = vmatpush.msrb.mxu3 %v3237_v45  ;;  %2480 = vmatpush.msra.mxu1 %v2406_v40  ;;  %v2403_v45 = vld [vmem:[%s5339_s12 + $0x20] sm:$0xff]  ;;  %v2729_v40 = vld [vmem:[%s5343_s16 + $0x38] sm:$0xff] }
 0x68b   :  { %2336 = vmatpush.msrb.mxu3 %v3236_v58  ;;  %2481 = vmatpush.msra.mxu1 %v2405_v44  ;;  %v2401_v58 = vld [vmem:[%s5339_s12 + $0x10] sm:$0xff] }
 0x68c   :  { %v2728_v44 = vld [vmem:[%s5343_s16 + $0x30] sm:$0xff] }
 0x68d   :  { %2337 = vmatpush.msrb.mxu3 %v3235_v19  ;;  %2482 = vmatpush.msra.mxu1 %v2404_v47  ;;  %v3294_v19 = vld [vmem:[%s5339_s12 + $0x108] sm:$0xff] }
 0x68e   :  { %v2727_v47 = vld [vmem:[%s5343_s16 + $0x28] sm:$0xff] }
 0x68f   :  { %2483 = vmatpush.msra.mxu1 %v2403_v45  ;;  %2537 = vmatpush.msra.mxu3 %v3286_v60  ;;  %v2726_v45 = vld [vmem:[%s5343_s16 + $0x20] sm:$0xff] }
 0x691   :  { %2484 = vmatpush.msra.mxu1 %v2402_v46  ;;  %2538 = vmatpush.msra.mxu3 %v3285_v22  ;;  %v2725_v46 = vld [vmem:[%s5343_s16 + $0x18] sm:$0xff]  ;;  %v2724_v22 = vld [vmem:[%s5343_s16 + $0x10] sm:$0xff] }
 0x693   :  { %2485 = vmatpush.msra.mxu1 %v2401_v58  ;;  %2539 = vmatpush.msra.mxu3 %v3284_v52  ;;  %v3320_v58 = vld [vmem:[%s5340_s13] ss:$0 sm:$0xff] }
 0x694   :  { %v3321_v52 = vld [vmem:[%s5342_s15] ss:$0 sm:$0xff] }
 0x695   :  { %2486 = vmatpush.msra.mxu1 %v2400_v9  ;;  %2540 = vmatpush.msra.mxu3 %v3283_v1 }
 0x697   :  { %2487 = vmatpush.msra.mxu1 %v2399_v0  ;;  %2541 = vmatpush.msra.mxu3 %v3282_v13  ;;  %v2723_v0 = vld [vmem:[%s5343_s16 + $0x8] sm:$0xff] }
 0x6eb   :  { %v2140_v28 = vpop.f32.mrf.mxu1  ;;  %v2163_v16 = vpop.f32.mrf.mxu2 }
 0x6f1   :  { %v2195_v11 = vpop.f32.mrf.mxu3 }
 0x6f2   :  { %v2224_v14 = vmax.f32 %v2140_v28, %v2195_v11  ;;  %v3291_v28 = vld [vmem:[%s5339_s12 + $0xf0] sm:$0xff]  ;;  %v3281_v11 = vld [vmem:[%s5339_s12 + $0xc0] sm:$0xff] }
 0x6f3   :  { %v2143_v8 = vpop.f32.mrf.mxu1  ;;  %v2166_v18 = vpop.f32.mrf.mxu2  ;;  %2542 = vmatpush.msra.mxu3 %v3281_v11 }
 0x6f4   :  { %2338 = vmatmul.f32.vlgmr.msrb.gmra.mxu3 %v2224_v14  ;;  %2271 = vmatmul.f32.vlgmr.msra.gmra.mxu0 %v2224_v14  ;;  %v3280_v14 = vld [vmem:[%s5339_s12 + $0xb8] sm:$0xff] }
 0x6f5   :  { %2597 = vmatpush.msra.mxu0 %v3300_v2  ;;  %2543 = vmatpush.msra.mxu3 %v3280_v14 }
 0x6f7   :  { %2598 = vmatpush.msra.mxu0 %v3299_v34 }
 0x6f9   :  { %v2198_v17 = vpop.f32.mrf.mxu3  ;;  %2599 = vmatpush.msra.mxu0 %v3298_v37  ;;  %v2680_v37 = vld [vmem:[%s5341_s14 + $0x10] sm:$0xff] }
 0x6fa   :  { %v2226_v43 = vmax.f32 %v2143_v8, %v2198_v17  ;;  %v3279_v8 = vld [vmem:[%s5339_s12 + $0xb0] sm:$0xff]  ;;  %v3277_v17 = vld [vmem:[%s5339_s12 + $0xa0] sm:$0xff] }
 0x6fb   :  { %v2218_v42 = vpop.f32.mrf.mxu1  ;;  %2600 = vmatpush.msra.mxu0 %v3297_v38  ;;  %2544 = vmatpush.msra.mxu3 %v3279_v8  ;;  %v2679_v38 = vld [vmem:[%s5341_s14 + $0x8] sm:$0xff] }
 0x6fc   :  { %v2225_v59 = vmax.f32 %v2163_v16, %v2218_v42  ;;  %2341 = vmatmul.f32.gmra.mxu3 %v2226_v43  ;;  %2274 = vmatmul.f32.gmra.mxu0 %v2226_v43  ;;  %v3278_v16 = vld [vmem:[%s5339_s12 + $0xa8] sm:$0xff] }
 0x6fd   :  { %2601 = vmatpush.msra.mxu0 %v3296_v39  ;;  %2545 = vmatpush.msra.mxu3 %v3278_v16  ;;  %v3314_v42 = vld [vmem:[%s5339_s12 + $0x188] sm:$0xff]  ;;  %v2678_v39 = vld [vmem:[%s5341_s14] sm:$0xff] }
 0x6fe   :  { %3233 = vmatmul.msk.f32.vlgmr.msra.gmra.mxu2 %vm2248_vm8, %v2225_v59  ;;  %3255 = vmatmul.msk.f32.vlgmr.msrb.gmra.mxu1 %vm2248_vm8, %v2225_v59 }
 0x6ff   :  { %2602 = vmatpush.msra.mxu0 %v3295_v12  ;;  %2546 = vmatpush.msra.mxu3 %v3277_v17 }
 0x700   :  { %2702 = vmatpush.msrb.mxu1 %v2692_v54 }
 0x701   :  { %2603 = vmatpush.msra.mxu0 %v3294_v19 }
 0x703   :  { %v2221_v41 = vpop.f32.mrf.mxu1  ;;  %2604 = vmatpush.msra.mxu0 %v3293_v49  ;;  %v2722_v49 = vld [vmem:[%s5343_s16] sm:$0xff] }
 0x704   :  { %v2227_v50 = vmax.f32 %v2166_v18, %v2221_v41 }
 0x705   :  { %2605 = vmatpush.msra.mxu0 %v3292_v36 }
 0x706   :  { %3234 = vmatmul.msk.f32.gmra.mxu2 %vm2248_vm8, %v2227_v50  ;;  %3256 = vmatmul.msk.f32.gmra.mxu1 %vm2248_vm8, %v2227_v50  ;;  %v3302_v50 = vld [vmem:[%s5338_s11 + $0x8] sm:$0x3] }
 0x707   :  { %2606 = vmatpush.msra.mxu0 %v3291_v28  ;;  %v3322_v28 = vld [vmem:[%s5344_s17] ss:$0 sm:$0xff] }
 0x771   :  { %v2272_v55 = vpop.f32.mrf.mxu0 }
 0x777   :  { %v2339_v25 = vpop.f32.mrf.mxu3 }
 0x779   :  { %v2275_v3 = vpop.f32.mrf.mxu0 }
 0x77b   :  { %v2362_v56 = vpop.f32.mrf.mxu1 }
 0x77c   :  { %v2363_v10 = vadd.f32 %v2362_v56, %v2339_v25  ;;  %v3313_v56 = vld [vmem:[%s5339_s12 + $0x180] sm:$0xff]  ;;  %v3311_v25 = vld [vmem:[%s5339_s12 + $0x170] sm:$0xff] }
 0x77f   :  { %v2342_v63 = vpop.f32.mrf.mxu3 }
 0x781   :  { %v2295_v27 = vpop.f32.mrf.mxu2 }
 0x782   :  { %v2296_v61 = vadd.f32 %v2295_v27, %v2272_v55  ;;  %v3312_v55 = vld [vmem:[%s5339_s12 + $0x178] sm:$0xff]  ;;  %v3310_v27 = vld [vmem:[%s5339_s12 + $0x168] sm:$0xff] }
 0x783   :  { %v2365_v48 = vpop.f32.mrf.mxu1 }
 0x784   :  { %v2366_v32 = vadd.f32 %v2365_v48, %v2342_v63  ;;  %v5055_v23 = vmax.f32 %v2296_v61, %v2363_v10  ;;  %v3309_v48 = vld [vmem:[%s5339_s12 + $0x160] sm:$0xff]  ;;  %v3306_v63 = vld [vmem:[%s5339_s12 + $0x148] sm:$0xff] }
 0x785   :  { %v2691_v61 = vld [vmem:[%s5341_s14 + $0x68] sm:$0xff] }
 0x786   :  { %2703 = vmatpush.msrb.mxu1 %v2691_v61  ;;  %v2687_v10 = vld [vmem:[%s5341_s14 + $0x48] sm:$0xff] }
 0x789   :  { %v2298_v31 = vpop.f32.mrf.mxu2 }
 0x78a   :  { %v2299_v5 = vadd.f32 %v2298_v31, %v2275_v3  ;;  %v3308_v3 = vld [vmem:[%s5339_s12 + $0x158] sm:$0xff]  ;;  %v3307_v31 = vld [vmem:[%s5339_s12 + $0x150] sm:$0xff] }
 0x78c   :  { %v5050_v15 = vmax.f32 %v2299_v5, %v2366_v32  ;;  %v2690_v5 = vld [vmem:[%s5341_s14 + $0x60] sm:$0xff]  ;;  %v2689_v32 = vld [vmem:[%s5341_s14 + $0x58] sm:$0xff] }
 0x78d   :  { %2704 = vmatpush.msrb.mxu1 %v2690_v5 }
 0x78e   :  { %3257 = vmatpush.msk.msrb.mxu2 %vm2375_vm9, %v5050_v15 }
 0x78f   :  { %2705 = vmatpush.msrb.mxu1 %v2689_v32 }
 0x790   :  { %2394 = vmatpush.msrb.mxu2 %v5055_v23 }
 0x791   :  { %3258 = vmatmul.msk.f32.vlgmr.msrb.gmra.mxu2 %vm2371_vm10, %v2370_v4  ;;  %2706 = vmatpush.msrb.mxu1 %v2688_v33 }
 0x792   :  { %3260 = vmatpush.msk.msra.mxu2 %vm2375_vm9, %v5050_v15 }
 0x793   :  { %2707 = vmatpush.msrb.mxu1 %v2687_v10 }
 0x794   :  { %2429 = vmatpush.msra.mxu2 %v5055_v23 }
 0x796   :  { %3275 = vmatpush.msk.msrb.mxu2 %vm2375_vm9, %v5050_v15 }
 0x798   :  { %2512 = vmatpush.msrb.mxu2 %v5055_v23 }
 0x799   :  { %3261 = vmatmul.msk.f32.vlgmr.msra.gmra.mxu2 %vm2371_vm10, %v3259_v30 }
 0x79a   :  { %3289 = vmatpush.msk.msra.mxu2 %vm2375_vm9, %v5050_v15 }
 0x79c   :  { %2572 = vmatpush.msra.mxu2 %v5055_v23 }
 0x7a1   :  { %3276 = vmatmul.msk.f32.vlgmr.msrb.gmra.mxu2 %vm2371_vm10, %v3274_v53  ;;  %v2681_v53 = vld [vmem:[%s5341_s14 + $0x18] sm:$0xff] }
 0x7a2   :  { %2657 = vmatpush.msrb.mxu2 %v3314_v42 }
 0x7a4   :  { %2658 = vmatpush.msrb.mxu2 %v3313_v56 }
 0x7a6   :  { %2659 = vmatpush.msrb.mxu2 %v3312_v55 }
 0x7a8   :  { %2660 = vmatpush.msrb.mxu2 %v3311_v25 }
 0x7a9   :  { %3290 = vmatmul.msk.f32.vlgmr.msra.gmra.mxu2 %vm2371_vm10, %v3288_v24  ;;  %v2732_v24 = vld [vmem:[%s5343_s16 + $0x50] sm:$0xf]  ;;  %s2772_s16 = sshll.u32 %s5345_s18, 4  ;;  %s2773_s16 = int_to_ptr.hbm [resolvable:$true] %s2772_s16 }
 0x7aa   :  { %2661 = vmatpush.msrb.mxu2 %v3310_v27  ;;  %3317 = vmatpush.msk.msrb.mxu3 %vm1436_vm4, %v2732_v24 }
 0x7ac   :  { %2662 = vmatpush.msrb.mxu2 %v3309_v48  ;;  %2749 = vmatpush.msrb.mxu3 %v2731_v26 }
 0x7ae   :  { %2663 = vmatpush.msrb.mxu2 %v3308_v3  ;;  %2750 = vmatpush.msrb.mxu3 %v2730_v35 }
 0x7b0   :  { %2664 = vmatpush.msrb.mxu2 %v3307_v31  ;;  %2751 = vmatpush.msrb.mxu3 %v2729_v40 }
 0x7b2   :  { %2665 = vmatpush.msrb.mxu2 %v3306_v63  ;;  %2752 = vmatpush.msrb.mxu3 %v2728_v44 }
 0x7b4   :  { %2666 = vmatpush.msrb.mxu2 %v3305_v29  ;;  %2753 = vmatpush.msrb.mxu3 %v2727_v47 }
 0x7b6   :  { %2754 = vmatpush.msrb.mxu3 %v2726_v45 }
 0x7b8   :  { %2755 = vmatpush.msrb.mxu3 %v2725_v46 }
 0x7ba   :  { %2756 = vmatpush.msrb.mxu3 %v2724_v22 }
 0x7bc   :  { %2757 = vmatpush.msrb.mxu3 %v2723_v0 }
 0x7be   :  { %2758 = vmatpush.msrb.mxu3 %v2722_v49 }
 0x814   :  { %v2396_v43 = vpop.f32.mrf.mxu2 }
 0x815   :  { %3273 = vmatmul.msk.f32.vlgmr.msra.gmra.mxu1 %vm2445_vm11, %v2396_v43 }
 0x81c   :  { %v2431_v59 = vpop.f32.mrf.mxu2 }
 0x81d   :  { %3272 = vmatmul.msk.f32.vlgmr.msrb.gmra.mxu0 %vm2445_vm11, %v2431_v59 }
 0x81e   :  { %3303 = vmatpush.msk.msrb.mxu0 %vm2375_vm9, %v5050_v15  ;;  %v2686_v15 = vld [vmem:[%s5341_s14 + $0x40] sm:$0xff] }
 0x81f   :  { %2708 = vmatpush.msrb.mxu1 %v2686_v15 }
 0x820   :  { %2632 = vmatpush.msrb.mxu0 %v5055_v23  ;;  %v2684_v23 = vld [vmem:[%s5341_s14 + $0x30] sm:$0xff] }
 0x821   :  { %2709 = vmatpush.msrb.mxu1 %v2685_v20 }
 0x823   :  { %2710 = vmatpush.msrb.mxu1 %v2684_v23 }
 0x824   :  { %v2514_v18 = vpop.f32.mrf.mxu2 }
 0x825   :  { %3287 = vmatmul.msk.f32.vlgmr.msra.gmra.mxu3 %vm2445_vm11, %v2514_v18  ;;  %2711 = vmatpush.msrb.mxu1 %v2683_v6 }
 0x827   :  { %2712 = vmatpush.msrb.mxu1 %v2682_v21 }
 0x829   :  { %2713 = vmatpush.msrb.mxu1 %v2681_v53 }
 0x82b   :  { %2714 = vmatpush.msrb.mxu1 %v2680_v37 }
 0x82c   :  { %v2574_v41 = vpop.f32.mrf.mxu2 }
 0x82d   :  { %3301 = vmatmul.msk.f32.vlgmr.msra.gmra.mxu0 %vm2445_vm11, %v2574_v41  ;;  %2715 = vmatpush.msrb.mxu1 %v2679_v38 }
 0x82f   :  { %2716 = vmatpush.msrb.mxu1 %v2678_v39 }
 0x835   :  { %3304 = vmatmul.msk.f32.vlgmr.msrb.gmra.mxu0 %vm2371_vm10, %v3302_v50 }
 0x892   :  { %v2489_v57 = vpop.f32.mrf.mxu1 }
 0x89a   :  { %v2466_v4 = vpop.f32.mrf.mxu0 }
 0x89b   :  { %v2490_v7 = vadd.f32 %v2489_v57, %v2466_v4 }
 0x8a8   :  { %v2548_v30 = vpop.f32.mrf.mxu3 }
 0x8a9   :  { %v2551_v62 = vadd.f32 %v2548_v30, %v2490_v7 }
 0x8aa   :  { %v2608_v51 = vpop.f32.mrf.mxu0 }
 0x8ab   :  { %v2611_v2 = vadd.f32 %v2608_v51, %v2551_v62 }
 0x8b2   :  { %v2634_v34 = vpop.f32.mrf.mxu0 }
 0x8b3   :  { %3315 = vmatmul.msk.f32.vlgmr.msrb.gmra.mxu2 %vm2445_vm11, %v2634_v34 }
 0x936   :  { %v2668_v60 = vpop.f32.mrf.mxu2 }
 0x937   :  { %v2671_v9 = vadd.f32 %v2668_v60, %v2611_v2 }
 0x939   :  { %v2676_v12 = vadd.f32 %v3320_v58, %v2671_v9 }
 0x93b   :  { %v2677_v19 = vmax.f32 %v2676_v12, 0.0 }
 0x93d   :  { %3316 = vmatmul.msk.f32.vlgmr.msrb.gmra.mxu1 %vm2697_vm12, %v2677_v19 }
 0x9ba   :  { %v2718_v36 = vpop.f32.mrf.mxu1 }
 0x9bb   :  { %v2719_v1 = vadd.f32 %v3321_v52, %v2718_v36 }
 0x9bd   :  { %v2721_v13 = vmax.f32 %v2719_v1, 0.0 }
 0x9bf   :  { %3318 = vmatmul.msk.f32.vlgmr.msrb.gmra.mxu3 %vm1550_vm6, %v2721_v13 }
 0xa42   :  { %v2760_v11 = vpop.f32.mrf.mxu3 }
 0xa43   :  { %v2761_v14 = vadd.f32 %v3322_v28, %v2760_v11 }
 0xa45   :  { %2764 = vst.msk [vmem:[#allocation2] sm:$0x3] %vm2763_vm13, %v2761_v14 }
 0xa46   :  { %2775 = dma.vmem_to_hbm [thread:$0]  %s2771_s21, 32, %s2773_s16, [#allocation3]  }
 0xa47   :  { %3347 = dma.done.wait [#allocation3], 32  }
 0xa48   :  { %3348 = vsyncadd [#allocation3], 4294967264 }
 0xa49   :  { %2780 = vsyncpa [#allocation3], 1 }

</bundles_post_ra>
